<compile_context>
chip_gen: v7x
topology: tpu7x:2x2x1
jax: 0.10.0
libtpu: 0.0.40
codegen_flags: <defaults>
</compile_context>

<pallas_src>
import math
from functools import partial

import jax
import jax.numpy as jnp
from jax.experimental import pallas as pl
from jax.experimental.pallas import tpu as pltpu


# ----------------------------------------------------------------------------------------
# Small helpers
# ----------------------------------------------------------------------------------------
def _round_up(x, m):
    return (x + m - 1) // m * m


def _choose_block(dim, tile, gran):
    """Pick (block, padded_dim): block obeys the (8,128) rule and divides padded_dim."""
    if dim < gran:
        return dim, dim                       # full-dim block (legal regardless of gran)
    b = min(tile, _round_up(dim, gran))
    return b, _round_up(dim, b)


def _bf16(x):
    return x if x.dtype == jnp.bfloat16 else x.astype(jnp.bfloat16)


def _pad2d(x, rows, cols):
    if x.shape == (rows, cols):
        return x
    return jnp.pad(x, ((0, rows - x.shape[0]), (0, cols - x.shape[1])))


def _apply_act(r, activation):
    if activation == "leaky_relu":
        return jnp.where(r >= 0, r, 0.2 * r)
    if activation == "relu":
        return jnp.maximum(r, 0.0)
    if activation == "tanh":
        return jnp.tanh(r)
    return r


_VMEM_LIMIT = 48 * 1024 * 1024
_GEMM_DIMS = ("parallel", "parallel", "arbitrary")


# ----------------------------------------------------------------------------------------
# Fused GEMM kernel: out = act(lhs @ rhs + bias)   (bf16 MXU inputs, f32 accumulation)
# The same body serves both orientations; only the bias broadcast shape differs.
# ----------------------------------------------------------------------------------------
def _gemm_bias_act_kernel(lhs_ref, rhs_ref, bias_ref, o_ref, acc_ref, *, activation):
    @pl.when(pl.program_id(2) == 0)
    def _init():
        acc_ref[...] = jnp.zeros_like(acc_ref)

    acc_ref[...] += jnp.dot(lhs_ref[...], rhs_ref[...], preferred_element_type=jnp.float32)

    @pl.when(pl.program_id(2) == pl.num_programs(2) - 1)
    def _finalize():
        o_ref[...] = _apply_act(acc_ref[...] + bias_ref[...], activation).astype(o_ref.dtype)


def fused_matmul(a, w, bias, activation="none", out_dtype=jnp.bfloat16,
                 tm=512, tn=512, tk=1024):
    """act(a @ w + bias) -> (M, N).   a:(M,K)  w:(K,N)  bias:(N,)."""
    M, K = a.shape
    K2, N = w.shape
    assert K == K2 and bias.shape == (N,)
    bm, Mp = _choose_block(M, tm, 8)
    bk, Kp = _choose_block(K, tk, 128)
    bn, Np = _choose_block(N, tn, 128)
    a_p = _pad2d(_bf16(a), Mp, Kp)
    w_p = _pad2d(_bf16(w), Kp, Np)
    b_p = _pad2d(bias.astype(jnp.float32).reshape(1, N), 1, Np)
    grid = (Mp // bm, Np // bn, Kp // bk)
    out = pl.pallas_call(
        partial(_gemm_bias_act_kernel, activation=activation),
        out_shape=jax.ShapeDtypeStruct((Mp, Np), out_dtype),
        grid_spec=pltpu.PrefetchScalarGridSpec(
            num_scalar_prefetch=0,
            grid=grid,
            in_specs=[pl.BlockSpec((bm, bk), lambda i, j, kk: (i, kk)),
                      pl.BlockSpec((bk, bn), lambda i, j, kk: (kk, j)),
                      pl.BlockSpec((1, bn), lambda i, j, kk: (0, j))],
            out_specs=pl.BlockSpec((bm, bn), lambda i, j, kk: (i, j)),
            scratch_shapes=[pltpu.VMEM((bm, bn), jnp.float32)]),
        compiler_params=pltpu.CompilerParams(
            dimension_semantics=_GEMM_DIMS, vmem_limit_bytes=_VMEM_LIMIT),
        cost_estimate=pl.CostEstimate(
            flops=2 * Mp * Np * Kp,
            transcendentals=Mp * Np if activation == "tanh" else 0,
            bytes_accessed=2 * (Mp * Kp + Kp * Np + Mp * Np) + 4 * Np),
    )(a_p, w_p, b_p)
    return out if (Mp == M and Np == N) else out[:M, :N]


def fused_matmul_t(wt, at, bias, activation="none", out_dtype=jnp.bfloat16,
                   tm=512, tn=512, tk=1024):
    """act(wt @ at + bias[:, None]) -> (N, M).   wt:(N,K)  at:(K,M)  bias:(N,).

    Transposed orientation: the large spatial axis M sits on the lane axis of the output,
    so small-Cout conv layers still emit unmasked, lane-dense stores."""
    N, K = wt.shape
    K2, M = at.shape
    assert K == K2 and bias.shape == (N,)
    if N < 8:
        bn, Np = 8, 8                          # keep the MXU lhs at least one sublane tall
    else:
        bn, Np = _choose_block(N, tn, 8)
    bk, Kp = _choose_block(K, tk, 128)
    bm, Mp = _choose_block(M, tm, 128)
    wt_p = _pad2d(_bf16(wt), Np, Kp)
    at_p = _pad2d(_bf16(at), Kp, Mp)
    b_p = _pad2d(bias.astype(jnp.float32).reshape(N, 1), Np, 1)
    grid = (Np // bn, Mp // bm, Kp // bk)
    out = pl.pallas_call(
        partial(_gemm_bias_act_kernel, activation=activation),
        out_shape=jax.ShapeDtypeStruct((Np, Mp), out_dtype),
        grid_spec=pltpu.PrefetchScalarGridSpec(
            num_scalar_prefetch=0,
            grid=grid,
            in_specs=[pl.BlockSpec((bn, bk), lambda i, j, kk: (i, kk)),
                      pl.BlockSpec((bk, bm), lambda i, j, kk: (kk, j)),
                      pl.BlockSpec((bn, 1), lambda i, j, kk: (i, 0))],
            out_specs=pl.BlockSpec((bn, bm), lambda i, j, kk: (i, j)),
            scratch_shapes=[pltpu.VMEM((bn, bm), jnp.float32)]),
        compiler_params=pltpu.CompilerParams(
            dimension_semantics=_GEMM_DIMS, vmem_limit_bytes=_VMEM_LIMIT),
        cost_estimate=pl.CostEstimate(
            flops=2 * Np * Mp * Kp,
            transcendentals=Np * Mp if activation == "tanh" else 0,
            bytes_accessed=2 * (Np * Kp + Kp * Mp + Np * Mp) + 4 * Np),
    )(wt_p, at_p, b_p)
    return out if (Np == N and Mp == M) else out[:N, :M]


# ----------------------------------------------------------------------------------------
# SelfAttention3D kernel (flash-style online softmax, single head, gamma folded into V):
#   o = x + softmax(q k^T) @ v        (no 1/sqrt(d) scaling, faithful to the module)
# ----------------------------------------------------------------------------------------
def _self_attention_kernel(x_ref, q_ref, kt_ref, v_ref, o_ref, m_sc, l_sc, acc_sc):
    kv = pl.program_id(2)

    @pl.when(kv == 0)
    def _init():
        m_sc[...] = jnp.full_like(m_sc, -jnp.inf)
        l_sc[...] = jnp.zeros_like(l_sc)
        acc_sc[...] = jnp.zeros_like(acc_sc)

    # scores: q (tq, dk) @ kT (dk, tkv) -- K is fed feature-major, native MXU orientation.
    s = jnp.dot(q_ref[0], kt_ref[0], preferred_element_type=jnp.float32)
    m_new = jnp.maximum(m_sc[...], jnp.max(s, axis=-1, keepdims=True))
    alpha = jnp.exp(m_sc[...] - m_new)
    # exp in bf16: the inner loop is EUP-bound on v6e/v7x; bf16 exp roughly doubles EUP
    # throughput there and only costs two cheap converts on v5e.
    p = jnp.exp((s - m_new).astype(jnp.bfloat16))
    l_sc[...] = alpha * l_sc[...] + jnp.sum(p.astype(jnp.float32), axis=-1, keepdims=True)
    acc_sc[...] = alpha * acc_sc[...] + jnp.dot(p, v_ref[0],
                                                preferred_element_type=jnp.float32)
    m_sc[...] = m_new

    @pl.when(kv == pl.num_programs(2) - 1)
    def _finalize():
        inv_l = pl.reciprocal(l_sc[...], approx=True)       # EUP, not a VALU divide
        o_ref[0] = (x_ref[0].astype(jnp.float32) + acc_sc[...] * inv_l).astype(o_ref.dtype)


def _attn_tile(S, cap, gran):
    if S <= cap:
        return S
    t = (cap // gran) * gran
    while t >= gran:
        if S % t == 0:
            return t
        t -= gran
    return S


def self_attention_3d(x_tok, q, kt, v, tq_cap=256, tkv_cap=512):
    """o = x + softmax(q kT) v.   x_tok,v:(B,S,C)  q:(B,S,dk)  kt:(B,dk,S)   (bf16)."""
    B, S, C = x_tok.shape
    dk = q.shape[-1]
    tq = _attn_tile(S, tq_cap, 8)
    tkv = _attn_tile(S, tkv_cap, 128)
    grid = (B, S // tq, S // tkv)
    return pl.pallas_call(
        _self_attention_kernel,
        out_shape=jax.ShapeDtypeStruct((B, S, C), jnp.bfloat16),
        grid_spec=pltpu.PrefetchScalarGridSpec(
            num_scalar_prefetch=0,
            grid=grid,
            in_specs=[pl.BlockSpec((1, tq, C), lambda b, qi, ki: (b, qi, 0)),
                      pl.BlockSpec((1, tq, dk), lambda b, qi, ki: (b, qi, 0)),
                      pl.BlockSpec((1, dk, tkv), lambda b, qi, ki: (b, 0, ki)),
                      pl.BlockSpec((1, tkv, C), lambda b, qi, ki: (b, ki, 0))],
            out_specs=pl.BlockSpec((1, tq, C), lambda b, qi, ki: (b, qi, 0)),
            scratch_shapes=[pltpu.VMEM((tq, 1), jnp.float32),
                            pltpu.VMEM((tq, 1), jnp.float32),
                            pltpu.VMEM((tq, C), jnp.float32)]),
        compiler_params=pltpu.CompilerParams(
            dimension_semantics=("parallel", "parallel", "arbitrary"),
            vmem_limit_bytes=_VMEM_LIMIT),
        cost_estimate=pl.CostEstimate(
            flops=2 * B * S * S * (dk + C),
            transcendentals=B * S * S,
            bytes_accessed=2 * B * S * (3 * C + 2 * dk)),
    )(_bf16(x_tok), _bf16(q), _bf16(kt), _bf16(v))


# ----------------------------------------------------------------------------------------
# Plain-JAX glue: channel-first patch extraction and weight repacking (data movement only).
# ----------------------------------------------------------------------------------------
def _conv_wt(w):
    """Conv3d weight (Cout, Cin, k, k, k) -> (Cout, k^3*Cin), columns (tap, ci)-major."""
    cout, cin, k = w.shape[0], w.shape[1], w.shape[2]
    return jnp.transpose(w, (0, 2, 3, 4, 1)).reshape(cout, k * k * k * cin)


def _conv1x1_mat(w):
    """1x1x1 Conv3d weight (Cout, Cin, 1, 1, 1) -> (Cin, Cout)."""
    cout, cin = w.shape[0], w.shape[1]
    return w.reshape(cout, cin).T


def _convT_phase_wt(w, rd, rh, rw):
    """ConvTranspose3d weight (Cin, Cout, 4,4,4) -> phase (rd,rh,rw) matrix (Cout, 8*Cin).

    Phase decomposition of ConvT(k=4,s=2,p=1): output[2m+r] = sum_j x_pad[m+r+j] w[3-r-2j],
    so tap j of phase r uses kernel index 3-r-2j along that axis."""
    cin, cout = w.shape[0], w.shape[1]
    sub = w[:, :, (3 - rd, 1 - rd), :, :]
    sub = sub[:, :, :, (3 - rh, 1 - rh), :]
    sub = sub[:, :, :, :, (3 - rw, 1 - rw)]                 # (ci, co, jd, jh, jw)
    return jnp.transpose(sub, (1, 2, 3, 4, 0)).reshape(cout, 8 * cin)


def _conv_patches_t(x_cf, k, stride, pad):
    """im2col in transposed layout.  x_cf: (C, B, D, H, W) -> (k^3*C, B*Do*Ho*Wo), bf16."""
    C, B, D, H, W = x_cf.shape
    xp = jnp.pad(x_cf, ((0, 0), (0, 0), (pad, pad), (pad, pad), (pad, pad))) if pad else x_cf
    Do = (D + 2 * pad - k) // stride + 1
    Ho = (H + 2 * pad - k) // stride + 1
    Wo = (W + 2 * pad - k) // stride + 1
    rows = []
    for kd in range(k):
        for kh in range(k):
            for kw in range(k):
                s = xp[:, :, kd:kd + stride * Do:stride,
                       kh:kh + stride * Ho:stride,
                       kw:kw + stride * Wo:stride]
                rows.append(s.reshape(C, B * Do * Ho * Wo))
    return jnp.concatenate(rows, axis=0), (Do, Ho, Wo)


def conv3d_down(x_cf, w, b, activation):
    """Conv3d(k=4, s=2, p=1) + activation, channel-first in/out, transposed GEMM."""
    cout = w.shape[0]
    B = x_cf.shape[1]
    at, (do, ho, wo) = _conv_patches_t(x_cf, 4, 2, 1)
    y = fused_matmul_t(_conv_wt(w), at, b, activation)
    return y.reshape(cout, B, do, ho, wo)


def conv_transpose3d_up(x_cf, w, b, activation, out_dtype=jnp.bfloat16, final_ncdhw=False):
    """ConvTranspose3d(k=4, s=2, p=1) + activation via 8 stride-phase (sub-pixel) GEMMs.

    x_cf: (Cin, B, D, H, W) -> (Cout, B, 2D, 2H, 2W) channel-first, or
    (B, Cout, 2D, 2H, 2W) when final_ncdhw (the network output layout)."""
    cin, B, D, H, W = x_cf.shape
    cout = w.shape[1]
    xp = jnp.pad(x_cf, ((0, 0), (0, 0), (1, 1), (1, 1), (1, 1)))
    phases = []
    for rd in (0, 1):
        for rh in (0, 1):
            for rw in (0, 1):
                rows = []
                for jd in (0, 1):
                    for jh in (0, 1):
                        for jw in (0, 1):
                            s = xp[:, :, rd + jd:rd + jd + D,
                                   rh + jh:rh + jh + H,
                                   rw + jw:rw + jw + W]
                            rows.append(s.reshape(cin, B * D * H * W))
                at = jnp.concatenate(rows, axis=0)
                y = fused_matmul_t(_convT_phase_wt(w, rd, rh, rw), at, b, activation,
                                   out_dtype=out_dtype)
                phases.append(y.reshape(cout, B, D, H, W))
    arr = jnp.stack(phases, axis=0).reshape(2, 2, 2, cout, B, D, H, W)
    if final_ncdhw:   # (b, co, m_d, rd, m_h, rh, m_w, rw) -> NCDHW
        arr = jnp.transpose(arr, (4, 3, 5, 0, 6, 1, 7, 2))
        return arr.reshape(B, cout, 2 * D, 2 * H, 2 * W)
    arr = jnp.transpose(arr, (3, 4, 5, 0, 6, 1, 7, 2))
    return arr.reshape(cout, B, 2 * D, 2 * H, 2 * W)


def spectral_normalize(w, dim=0, n_iter=10, eps=1e-12):
    """Inference-time spectral_norm: W / sigma_max(W reshaped with `dim` leading)."""
    w_mat = jnp.moveaxis(w, dim, 0).reshape(w.shape[dim], -1)
    u0 = jnp.ones((w_mat.shape[0],), jnp.float32) / math.sqrt(w_mat.shape[0])

    def body(_, u):
        v = w_mat.T @ u
        v = v / (jnp.linalg.norm(v) + eps)
        u = w_mat @ v
        return u / (jnp.linalg.norm(u) + eps)

    u = jax.lax.fori_loop(0, n_iter, body, u0)
    v = w_mat.T @ u
    v = v / (jnp.linalg.norm(v) + eps)
    sigma = u @ (w_mat @ v)
    return w / sigma


# ----------------------------------------------------------------------------------------
# Full forward pass
# ----------------------------------------------------------------------------------------
def unet_with_attention_3d(x, params):
    """UNetWithAttention3D.forward.  x: (B, Cin, D, H, W) f32 -> (B, Cin, D, H, W) f32."""
    B, Cin, D0, H0, W0 = x.shape
    nc = params["down1_w"].shape[0]
    c2 = 2 * nc
    dk = c2 // 8

    # Channel-first bf16 activations end-to-end; NCDHW is already channel-major so the only
    # layout shuffles are the tiny C<->B swap here and the token boundary around attention.
    x_cf = jnp.transpose(_bf16(x), (1, 0, 2, 3, 4))

    # down1 / down2: Conv3d(k4 s2 p1) + LeakyReLU(0.2)
    h1 = conv3d_down(x_cf, params["down1_w"], params["down1_b"], "leaky_relu")
    x2 = conv3d_down(h1, params["down2_w"], params["down2_b"], "leaky_relu")
    _, _, d2, h2s, w2s = x2.shape
    S = d2 * h2s * w2s

    # SelfAttention3D: one fused GEMM for the three 1x1-conv projections, ordered [V|Q|K]
    # so the widest slice (width c2) is aligned at column 0; gamma folded into V (exact).
    x2_tok = jnp.transpose(x2.reshape(c2, B, S), (1, 2, 0))            # (B, S, c2)
    gamma = params["gamma"]
    w_qkv = jnp.concatenate([gamma * _conv1x1_mat(params["v_w"]),
                             _conv1x1_mat(params["q_w"]),
                             _conv1x1_mat(params["k_w"])], axis=1)
    b_qkv = jnp.concatenate([gamma * params["v_b"], params["q_b"], params["k_b"]])
    qkv = fused_matmul(x2_tok.reshape(B * S, c2), w_qkv, b_qkv, "none")
    v = qkv[:, :c2].reshape(B, S, c2)
    q = qkv[:, c2:c2 + dk].reshape(B, S, dk)
    kt = jnp.transpose(qkv[:, c2 + dk:].reshape(B, S, dk), (0, 2, 1))  # (B, dk, S)
    att = self_attention_3d(x2_tok, q, kt, v)                          # = x2 + gamma*attn

    # up1: ConvTranspose3d(2nc->nc) + ReLU ; up2: ConvTranspose3d(nc->Cin) + Tanh
    att_cf = jnp.transpose(att, (2, 0, 1)).reshape(c2, B, d2, h2s, w2s)
    u1 = conv_transpose3d_up(att_cf, params["up1_w"], params["up1_b"], "relu")
    out = conv_transpose3d_up(u1, params["up2_w"], params["up2_b"], "tanh",
                              out_dtype=jnp.float32, final_ncdhw=True)
    return out


# ----------------------------------------------------------------------------------------
# Pure-JAX reference (f32, lax conv ops) for correctness verification.
# ----------------------------------------------------------------------------------------
def _ref_forward(x, params):
    f32 = jnp.float32

    def conv(x_, w, b, s, p):
        y = jax.lax.conv_general_dilated(
            x_.astype(f32), w.astype(f32), (s, s, s), [(p, p)] * 3,
            dimension_numbers=("NCDHW", "OIDHW", "NCDHW"))
        return y + b.reshape(1, -1, 1, 1, 1)

    def convT(x_, w, b, s, p):
        k = w.shape[2]
        w_f = jnp.flip(w, (2, 3, 4)).transpose(1, 0, 2, 3, 4)
        y = jax.lax.conv_general_dilated(
            x_.astype(f32), w_f.astype(f32), (1, 1, 1), [(k - 1 - p, k - 1 - p)] * 3,
            lhs_dilation=(s, s, s), dimension_numbers=("NCDHW", "OIDHW", "NCDHW"))
        return y + b.reshape(1, -1, 1, 1, 1)

    lrelu = lambda t: jnp.where(t >= 0, t, 0.2 * t)
    x1 = lrelu(conv(x, params["down1_w"], params["down1_b"], 2, 1))
    x2 = lrelu(conv(x1, params["down2_w"], params["down2_b"], 2, 1))
    B, C, D, H, W = x2.shape
    S = D * H * W
    q = conv(x2, params["q_w"], params["q_b"], 1, 0).reshape(B, -1, S).transpose(0, 2, 1)
    k = conv(x2, params["k_w"], params["k_b"], 1, 0).reshape(B, -1, S)
    v = conv(x2, params["v_w"], params["v_b"], 1, 0).reshape(B, -1, S)
    attn = jax.nn.softmax(jnp.einsum("bsd,bdt->bst", q, k), axis=-1)
    attn_out = jnp.einsum("bcj,bij->bci", v, attn).reshape(B, C, D, H, W)
    x2 = x2 + params["gamma"] * attn_out
    u1 = jax.nn.relu(convT(x2, params["up1_w"], params["up1_b"], 2, 1))
    return jnp.tanh(convT(u1, params["up2_w"], params["up2_b"], 2, 1))


def make_params(key, in_channels, num_channels):
    nc = num_channels
    c2 = 2 * nc
    dk = c2 // 8
    ks = jax.random.split(key, 14)
    std = 0.05

    def conv_w(k_, cout, cin, ksz):
        w = jax.random.normal(k_, (cout, cin, ksz, ksz, ksz), jnp.float32) * std
        return spectral_normalize(w, dim=0)

    def convT_w(k_, cin, cout, ksz):
        w = jax.random.normal(k_, (cin, cout, ksz, ksz, ksz), jnp.float32) * std
        return spectral_normalize(w, dim=1)   # PyTorch uses dim=1 for ConvTranspose

    def bias(k_, n):
        return jax.random.normal(k_, (n,), jnp.float32) * 0.01

    return {
        "down1_w": conv_w(ks[0], nc, in_channels, 4), "down1_b": bias(ks[1], nc),
        "down2_w": conv_w(ks[2], c2, nc, 4),          "down2_b": bias(ks[3], c2),
        "q_w": conv_w(ks[4], dk, c2, 1),              "q_b": bias(ks[5], dk),
        "k_w": conv_w(ks[6], dk, c2, 1),              "k_b": bias(ks[7], dk),
        "v_w": conv_w(ks[8], c2, c2, 1),              "v_b": bias(ks[9], c2),
        # PyTorch initializes gamma to 0 (attention branch disabled at init); nonzero here
        # so the attention kernel path is numerically exercised.
        "gamma": jnp.asarray(0.1, jnp.float32),
        "up1_w": convT_w(ks[10], c2, nc, 4),          "up1_b": bias(ks[11], nc),
        "up2_w": convT_w(ks[12], nc, in_channels, 4), "up2_b": bias(ks[13], in_channels),
    }


if __name__ == "__main__":
    # Small shapes consistent with the module (in_channels=Config.CHANNELS=1; num_channels
    # shrunk from the default 64 to keep the test tiny; spatial divisible by 4).
    B, Cin, D, H, W = 2, 1, 16, 16, 16
    num_channels = 16

    key = jax.random.PRNGKey(0)
    k_x, k_p = jax.random.split(key)
    x = jax.random.normal(k_x, (B, Cin, D, H, W), jnp.float32)
    params = make_params(k_p, Cin, num_channels)

    fwd = jax.jit(unet_with_attention_3d)
    out = fwd(x, params)
    jax.block_until_ready(out)
    assert out.shape == (B, Cin, D, H, W)
    assert bool(jnp.all(jnp.isfinite(out)))

    ref = jax.jit(_ref_forward)(x, params)
    jax.block_until_ready(ref)
    err = float(jnp.max(jnp.abs(out - ref)))
    assert err < 0.05, f"max abs error vs reference: {err}"
    print("KERNEL_OK")
</pallas_src>

<mosaic_0001>
module attributes {stable_mosaic.version = 11 : i64} {
  func.func @_gemm_bias_act_kernel(%arg0: i32, %arg1: i32, %arg2: i32, %arg3: memref<16x64xbf16, #tpu.memory_space<vmem>>, %arg4: memref<64x512xbf16, #tpu.memory_space<vmem>>, %arg5: memref<16x1xf32, #tpu.memory_space<vmem>>, %arg6: memref<16x512xbf16, #tpu.memory_space<vmem>>, %arg7: memref<16x512xf32, #tpu.memory_space<vmem>>) attributes {dimension_semantics = [#tpu.dimension_semantics<parallel>, #tpu.dimension_semantics<parallel>, #tpu.dimension_semantics<arbitrary>], iteration_bounds = array<i64: 1, 2, 1>, scalar_prefetch = 0 : i64, scratch_operands = 1 : i64, tpu.core_type = #tpu.core_type<tc>, window_params = [{transform_indices = @transform_0, window_bounds = array<i64: 16, 64>}, {transform_indices = @transform_1, window_bounds = array<i64: 64, 512>}, {transform_indices = @transform_2, window_bounds = array<i64: 16, 1>}, {transform_indices = @transform_3, window_bounds = array<i64: 16, 512>}]} {
    %c0_i32 = arith.constant 0 : i32
    %0 = arith.cmpi eq, %arg2, %c0_i32 : i32
    %1 = arith.extui %0 : i1 to i32
    %c0_i32_0 = arith.constant 0 : i32
    %2 = arith.cmpi ne, %1, %c0_i32_0 : i32
    scf.if %2 {
      %cst_10 = arith.constant 0.000000e+00 : f32
      %12 = vector.broadcast %cst_10 : f32 to vector<16x512xf32>
      %c0_11 = arith.constant 0 : index
      %c0_12 = arith.constant 0 : index
      %13 = vector.load %arg7[%c0_11, %c0_12] : memref<16x512xf32, #tpu.memory_space<vmem>>, vector<16x512xf32>
      tpu.vector_store %arg7[%c0_11, %c0_12], %12 {strides = array<i32>} : memref<16x512xf32, #tpu.memory_space<vmem>>, vector<16x512xf32>,
    } else {
    }
    %c0 = arith.constant 0 : index
    %c0_1 = arith.constant 0 : index
    %3 = vector.load %arg7[%c0, %c0_1] : memref<16x512xf32, #tpu.memory_space<vmem>>, vector<16x512xf32>
    %c0_2 = arith.constant 0 : index
    %c0_3 = arith.constant 0 : index
    %4 = vector.load %arg3[%c0_2, %c0_3] : memref<16x64xbf16, #tpu.memory_space<vmem>>, vector<16x64xbf16>
    %c0_4 = arith.constant 0 : index
    %c0_5 = arith.constant 0 : index
    %5 = vector.load %arg4[%c0_4, %c0_5] : memref<64x512xbf16, #tpu.memory_space<vmem>>, vector<64x512xbf16>
    %cst = arith.constant dense<0.000000e+00> : vector<16x512xf32>
    %6 = tpu.matmul %4, %5, %cst {dimension_numbers = #tpu.dot_dimension_numbers<[1], [0], [0], [1], [0, 0, 1, 1], [], []>} : vector<16x64xbf16>, vector<64x512xbf16>, vector<16x512xf32> -> vector<16x512xf32>
    %7 = arith.addf %3, %6 : vector<16x512xf32>
    %c0_6 = arith.constant 0 : index
    %c0_7 = arith.constant 0 : index
    %8 = vector.load %arg7[%c0_6, %c0_7] : memref<16x512xf32, #tpu.memory_space<vmem>>, vector<16x512xf32>
    tpu.vector_store %arg7[%c0_6, %c0_7], %7 {strides = array<i32>} : memref<16x512xf32, #tpu.memory_space<vmem>>, vector<16x512xf32>,
    %c0_i32_8 = arith.constant 0 : i32
    %9 = arith.cmpi eq, %arg2, %c0_i32_8 : i32
    %10 = arith.extui %9 : i1 to i32
    %c0_i32_9 = arith.constant 0 : i32
    %11 = arith.cmpi ne, %10, %c0_i32_9 : i32
    scf.if %11 {
      %c0_10 = arith.constant 0 : index
      %c0_11 = arith.constant 0 : index
      %12 = vector.load %arg7[%c0_10, %c0_11] : memref<16x512xf32, #tpu.memory_space<vmem>>, vector<16x512xf32>
      %c0_12 = arith.constant 0 : index
      %c0_13 = arith.constant 0 : index
      %13 = vector.load %arg5[%c0_12, %c0_13] : memref<16x1xf32, #tpu.memory_space<vmem>>, vector<16x1xf32>
      %14 = vector.broadcast %13 : vector<16x1xf32> to vector<16x512xf32>
      %15 = arith.addf %12, %14 : vector<16x512xf32>
      %cst_14 = arith.constant 0.000000e+00 : f32
      %16 = vector.broadcast %cst_14 : f32 to vector<16x512xf32>
      %17 = arith.cmpf oge, %15, %16 : vector<16x512xf32>
      %cst_15 = arith.constant 2.000000e-01 : f32
      %18 = vector.broadcast %cst_15 : f32 to vector<16x512xf32>
      %19 = arith.mulf %18, %15 : vector<16x512xf32>
      %20 = arith.select %17, %15, %19 : vector<16x512xi1>, vector<16x512xf32>
      %21 = arith.truncf %20 : vector<16x512xf32> to vector<16x512xbf16>
      %c0_16 = arith.constant 0 : index
      %c0_17 = arith.constant 0 : index
      %22 = vector.load %arg6[%c0_16, %c0_17] : memref<16x512xbf16, #tpu.memory_space<vmem>>, vector<16x512xbf16>
      tpu.vector_store %arg6[%c0_16, %c0_17], %21 {strides = array<i32>} : memref<16x512xbf16, #tpu.memory_space<vmem>>, vector<16x512xbf16>,
    } else {
    }
    return
  }
  func.func @transform_0(%arg0: i32, %arg1: i32, %arg2: i32) -> (i32, i32) {
    %c0_i32 = arith.constant 0 : i32
    return %arg0, %arg2 : i32, i32
  }
  func.func @transform_1(%arg0: i32, %arg1: i32, %arg2: i32) -> (i32, i32) {
    %c0_i32 = arith.constant 0 : i32
    return %arg2, %arg1 : i32, i32
  }
  func.func @transform_2(%arg0: i32, %arg1: i32, %arg2: i32) -> (i32, i32) {
    %c0_i32 = arith.constant 0 : i32
    %c0_i32_0 = arith.constant 0 : i32
    return %arg0, %c0_i32 : i32, i32
  }
  func.func @transform_3(%arg0: i32, %arg1: i32, %arg2: i32) -> (i32, i32) {
    %c0_i32 = arith.constant 0 : i32
    return %arg0, %arg1 : i32, i32
  }
}

module attributes {stable_mosaic.version = 11 : i64} {
  func.func @_gemm_bias_act_kernel(%arg0: i32, %arg1: i32, %arg2: i32, %arg3: memref<32x1024xbf16, #tpu.memory_space<vmem>>, %arg4: memref<1024x128xbf16, #tpu.memory_space<vmem>>, %arg5: memref<32x1xf32, #tpu.memory_space<vmem>>, %arg6: memref<32x128xbf16, #tpu.memory_space<vmem>>, %arg7: memref<32x128xf32, #tpu.memory_space<vmem>>) attributes {dimension_semantics = [#tpu.dimension_semantics<parallel>, #tpu.dimension_semantics<parallel>, #tpu.dimension_semantics<arbitrary>], iteration_bounds = array<i64: 1, 1, 1>, scalar_prefetch = 0 : i64, scratch_operands = 1 : i64, tpu.core_type = #tpu.core_type<tc>, window_params = [{transform_indices = @transform_0, window_bounds = array<i64: 32, 1024>}, {transform_indices = @transform_1, window_bounds = array<i64: 1024, 128>}, {transform_indices = @transform_2, window_bounds = array<i64: 32, 1>}, {transform_indices = @transform_3, window_bounds = array<i64: 32, 128>}]} {
    %c0_i32 = arith.constant 0 : i32
    %0 = arith.cmpi eq, %arg2, %c0_i32 : i32
    %1 = arith.extui %0 : i1 to i32
    %c0_i32_0 = arith.constant 0 : i32
    %2 = arith.cmpi ne, %1, %c0_i32_0 : i32
    scf.if %2 {
      %cst_10 = arith.constant 0.000000e+00 : f32
      %12 = vector.broadcast %cst_10 : f32 to vector<32x128xf32>
      %c0_11 = arith.constant 0 : index
      %c0_12 = arith.constant 0 : index
      %13 = vector.load %arg7[%c0_11, %c0_12] : memref<32x128xf32, #tpu.memory_space<vmem>>, vector<32x128xf32>
      tpu.vector_store %arg7[%c0_11, %c0_12], %12 {strides = array<i32>} : memref<32x128xf32, #tpu.memory_space<vmem>>, vector<32x128xf32>,
    } else {
    }
    %c0 = arith.constant 0 : index
    %c0_1 = arith.constant 0 : index
    %3 = vector.load %arg7[%c0, %c0_1] : memref<32x128xf32, #tpu.memory_space<vmem>>, vector<32x128xf32>
    %c0_2 = arith.constant 0 : index
    %c0_3 = arith.constant 0 : index
    %4 = vector.load %arg3[%c0_2, %c0_3] : memref<32x1024xbf16, #tpu.memory_space<vmem>>, vector<32x1024xbf16>
    %c0_4 = arith.constant 0 : index
    %c0_5 = arith.constant 0 : index
    %5 = vector.load %arg4[%c0_4, %c0_5] : memref<1024x128xbf16, #tpu.memory_space<vmem>>, vector<1024x128xbf16>
    %cst = arith.constant dense<0.000000e+00> : vector<32x128xf32>
    %6 = tpu.matmul %4, %5, %cst {dimension_numbers = #tpu.dot_dimension_numbers<[1], [0], [0], [1], [0, 0, 1, 1], [], []>} : vector<32x1024xbf16>, vector<1024x128xbf16>, vector<32x128xf32> -> vector<32x128xf32>
    %7 = arith.addf %3, %6 : vector<32x128xf32>
    %c0_6 = arith.constant 0 : index
    %c0_7 = arith.constant 0 : index
    %8 = vector.load %arg7[%c0_6, %c0_7] : memref<32x128xf32, #tpu.memory_space<vmem>>, vector<32x128xf32>
    tpu.vector_store %arg7[%c0_6, %c0_7], %7 {strides = array<i32>} : memref<32x128xf32, #tpu.memory_space<vmem>>, vector<32x128xf32>,
    %c0_i32_8 = arith.constant 0 : i32
    %9 = arith.cmpi eq, %arg2, %c0_i32_8 : i32
    %10 = arith.extui %9 : i1 to i32
    %c0_i32_9 = arith.constant 0 : i32
    %11 = arith.cmpi ne, %10, %c0_i32_9 : i32
    scf.if %11 {
      %c0_10 = arith.constant 0 : index
      %c0_11 = arith.constant 0 : index
      %12 = vector.load %arg7[%c0_10, %c0_11] : memref<32x128xf32, #tpu.memory_space<vmem>>, vector<32x128xf32>
      %c0_12 = arith.constant 0 : index
      %c0_13 = arith.constant 0 : index
      %13 = vector.load %arg5[%c0_12, %c0_13] : memref<32x1xf32, #tpu.memory_space<vmem>>, vector<32x1xf32>
      %14 = vector.broadcast %13 : vector<32x1xf32> to vector<32x128xf32>
      %15 = arith.addf %12, %14 : vector<32x128xf32>
      %cst_14 = arith.constant 0.000000e+00 : f32
      %16 = vector.broadcast %cst_14 : f32 to vector<32x128xf32>
      %17 = arith.cmpf oge, %15, %16 : vector<32x128xf32>
      %cst_15 = arith.constant 2.000000e-01 : f32
      %18 = vector.broadcast %cst_15 : f32 to vector<32x128xf32>
      %19 = arith.mulf %18, %15 : vector<32x128xf32>
      %20 = arith.select %17, %15, %19 : vector<32x128xi1>, vector<32x128xf32>
      %21 = arith.truncf %20 : vector<32x128xf32> to vector<32x128xbf16>
      %c0_16 = arith.constant 0 : index
      %c0_17 = arith.constant 0 : index
      %22 = vector.load %arg6[%c0_16, %c0_17] : memref<32x128xbf16, #tpu.memory_space<vmem>>, vector<32x128xbf16>
      tpu.vector_store %arg6[%c0_16, %c0_17], %21 {strides = array<i32>} : memref<32x128xbf16, #tpu.memory_space<vmem>>, vector<32x128xbf16>,
    } else {
    }
    return
  }
  func.func @transform_0(%arg0: i32, %arg1: i32, %arg2: i32) -> (i32, i32) {
    %c0_i32 = arith.constant 0 : i32
    return %arg0, %arg2 : i32, i32
  }
  func.func @transform_1(%arg0: i32, %arg1: i32, %arg2: i32) -> (i32, i32) {
    %c0_i32 = arith.constant 0 : i32
    return %arg2, %arg1 : i32, i32
  }
  func.func @transform_2(%arg0: i32, %arg1: i32, %arg2: i32) -> (i32, i32) {
    %c0_i32 = arith.constant 0 : i32
    %c0_i32_0 = arith.constant 0 : i32
    return %arg0, %c0_i32 : i32, i32
  }
  func.func @transform_3(%arg0: i32, %arg1: i32, %arg2: i32) -> (i32, i32) {
    %c0_i32 = arith.constant 0 : i32
    return %arg0, %arg1 : i32, i32
  }
}

module attributes {stable_mosaic.version = 11 : i64} {
  func.func @_gemm_bias_act_kernel(%arg0: i32, %arg1: i32, %arg2: i32, %arg3: memref<128x32xbf16, #tpu.memory_space<vmem>>, %arg4: memref<32x40xbf16, #tpu.memory_space<vmem>>, %arg5: memref<1x40xf32, #tpu.memory_space<vmem>>, %arg6: memref<128x40xbf16, #tpu.memory_space<vmem>>, %arg7: memref<128x40xf32, #tpu.memory_space<vmem>>) attributes {dimension_semantics = [#tpu.dimension_semantics<parallel>, #tpu.dimension_semantics<parallel>, #tpu.dimension_semantics<arbitrary>], iteration_bounds = array<i64: 1, 1, 1>, scalar_prefetch = 0 : i64, scratch_operands = 1 : i64, tpu.core_type = #tpu.core_type<tc>, window_params = [{transform_indices = @transform_0, window_bounds = array<i64: 128, 32>}, {transform_indices = @transform_1, window_bounds = array<i64: 32, 40>}, {transform_indices = @transform_2, window_bounds = array<i64: 1, 40>}, {transform_indices = @transform_3, window_bounds = array<i64: 128, 40>}]} {
    %c0_i32 = arith.constant 0 : i32
    %0 = arith.cmpi eq, %arg2, %c0_i32 : i32
    %1 = arith.extui %0 : i1 to i32
    %c0_i32_0 = arith.constant 0 : i32
    %2 = arith.cmpi ne, %1, %c0_i32_0 : i32
    scf.if %2 {
      %cst_10 = arith.constant 0.000000e+00 : f32
      %12 = vector.broadcast %cst_10 : f32 to vector<128x40xf32>
      %c0_11 = arith.constant 0 : index
      %c0_12 = arith.constant 0 : index
      %13 = vector.load %arg7[%c0_11, %c0_12] : memref<128x40xf32, #tpu.memory_space<vmem>>, vector<128x40xf32>
      tpu.vector_store %arg7[%c0_11, %c0_12], %12 {strides = array<i32>} : memref<128x40xf32, #tpu.memory_space<vmem>>, vector<128x40xf32>,
    } else {
    }
    %c0 = arith.constant 0 : index
    %c0_1 = arith.constant 0 : index
    %3 = vector.load %arg7[%c0, %c0_1] : memref<128x40xf32, #tpu.memory_space<vmem>>, vector<128x40xf32>
    %c0_2 = arith.constant 0 : index
    %c0_3 = arith.constant 0 : index
    %4 = vector.load %arg3[%c0_2, %c0_3] : memref<128x32xbf16, #tpu.memory_space<vmem>>, vector<128x32xbf16>
    %c0_4 = arith.constant 0 : index
    %c0_5 = arith.constant 0 : index
    %5 = vector.load %arg4[%c0_4, %c0_5] : memref<32x40xbf16, #tpu.memory_space<vmem>>, vector<32x40xbf16>
    %cst = arith.constant dense<0.000000e+00> : vector<128x40xf32>
    %6 = tpu.matmul %4, %5, %cst {dimension_numbers = #tpu.dot_dimension_numbers<[1], [0], [0], [1], [0, 0, 1, 1], [], []>} : vector<128x32xbf16>, vector<32x40xbf16>, vector<128x40xf32> -> vector<128x40xf32>
    %7 = arith.addf %3, %6 : vector<128x40xf32>
    %c0_6 = arith.constant 0 : index
    %c0_7 = arith.constant 0 : index
    %8 = vector.load %arg7[%c0_6, %c0_7] : memref<128x40xf32, #tpu.memory_space<vmem>>, vector<128x40xf32>
    tpu.vector_store %arg7[%c0_6, %c0_7], %7 {strides = array<i32>} : memref<128x40xf32, #tpu.memory_space<vmem>>, vector<128x40xf32>,
    %c0_i32_8 = arith.constant 0 : i32
    %9 = arith.cmpi eq, %arg2, %c0_i32_8 : i32
    %10 = arith.extui %9 : i1 to i32
    %c0_i32_9 = arith.constant 0 : i32
    %11 = arith.cmpi ne, %10, %c0_i32_9 : i32
    scf.if %11 {
      %c0_10 = arith.constant 0 : index
      %c0_11 = arith.constant 0 : index
      %12 = vector.load %arg7[%c0_10, %c0_11] : memref<128x40xf32, #tpu.memory_space<vmem>>, vector<128x40xf32>
      %c0_12 = arith.constant 0 : index
      %c0_13 = arith.constant 0 : index
      %13 = vector.load %arg5[%c0_12, %c0_13] : memref<1x40xf32, #tpu.memory_space<vmem>>, vector<1x40xf32>
      %14 = vector.broadcast %13 : vector<1x40xf32> to vector<128x40xf32>
      %15 = arith.addf %12, %14 : vector<128x40xf32>
      %16 = arith.truncf %15 : vector<128x40xf32> to vector<128x40xbf16>
      %c0_14 = arith.constant 0 : index
      %c0_15 = arith.constant 0 : index
      %17 = vector.load %arg6[%c0_14, %c0_15] : memref<128x40xbf16, #tpu.memory_space<vmem>>, vector<128x40xbf16>
      tpu.vector_store %arg6[%c0_14, %c0_15], %16 {strides = array<i32>} : memref<128x40xbf16, #tpu.memory_space<vmem>>, vector<128x40xbf16>,
    } else {
    }
    return
  }
  func.func @transform_0(%arg0: i32, %arg1: i32, %arg2: i32) -> (i32, i32) {
    %c0_i32 = arith.constant 0 : i32
    return %arg0, %arg2 : i32, i32
  }
  func.func @transform_1(%arg0: i32, %arg1: i32, %arg2: i32) -> (i32, i32) {
    %c0_i32 = arith.constant 0 : i32
    return %arg2, %arg1 : i32, i32
  }
  func.func @transform_2(%arg0: i32, %arg1: i32, %arg2: i32) -> (i32, i32) {
    %c0_i32 = arith.constant 0 : i32
    %c0_i32_0 = arith.constant 0 : i32
    return %c0_i32, %arg1 : i32, i32
  }
  func.func @transform_3(%arg0: i32, %arg1: i32, %arg2: i32) -> (i32, i32) {
    %c0_i32 = arith.constant 0 : i32
    return %arg0, %arg1 : i32, i32
  }
}

module attributes {stable_mosaic.version = 11 : i64} {
  func.func @_self_attention_kernel(%arg0: i32, %arg1: i32, %arg2: i32, %arg3: memref<1x64x32xbf16, #tpu.memory_space<vmem>>, %arg4: memref<1x64x4xbf16, #tpu.memory_space<vmem>>, %arg5: memref<1x4x64xbf16, #tpu.memory_space<vmem>>, %arg6: memref<1x64x32xbf16, #tpu.memory_space<vmem>>, %arg7: memref<1x64x32xbf16, #tpu.memory_space<vmem>>, %arg8: memref<64x1xf32, #tpu.memory_space<vmem>>, %arg9: memref<64x1xf32, #tpu.memory_space<vmem>>, %arg10: memref<64x32xf32, #tpu.memory_space<vmem>>) attributes {dimension_semantics = [#tpu.dimension_semantics<parallel>, #tpu.dimension_semantics<parallel>, #tpu.dimension_semantics<arbitrary>], iteration_bounds = array<i64: 2, 1, 1>, scalar_prefetch = 0 : i64, scratch_operands = 3 : i64, tpu.core_type = #tpu.core_type<tc>, window_params = [{transform_indices = @transform_0, window_bounds = array<i64: 1, 64, 32>}, {transform_indices = @transform_1, window_bounds = array<i64: 1, 64, 4>}, {transform_indices = @transform_2, window_bounds = array<i64: 1, 4, 64>}, {transform_indices = @transform_3, window_bounds = array<i64: 1, 64, 32>}, {transform_indices = @transform_4, window_bounds = array<i64: 1, 64, 32>}]} {
    %c0_i32 = arith.constant 0 : i32
    %0 = arith.cmpi eq, %arg2, %c0_i32 : i32
    %1 = arith.extui %0 : i1 to i32
    %c0_i32_0 = arith.constant 0 : i32
    %2 = arith.cmpi ne, %1, %c0_i32_0 : i32
    scf.if %2 {
      %cst_28 = arith.constant 0xFF800000 : f32
      %38 = vector.broadcast %cst_28 : f32 to vector<64x1xf32>
      %c0_29 = arith.constant 0 : index
      %c0_30 = arith.constant 0 : index
      %39 = vector.load %arg8[%c0_29, %c0_30] : memref<64x1xf32, #tpu.memory_space<vmem>>, vector<64x1xf32>
      tpu.vector_store %arg8[%c0_29, %c0_30], %38 {strides = array<i32>} : memref<64x1xf32, #tpu.memory_space<vmem>>, vector<64x1xf32>,
      %cst_31 = arith.constant 0.000000e+00 : f32
      %40 = vector.broadcast %cst_31 : f32 to vector<64x1xf32>
      %c0_32 = arith.constant 0 : index
      %c0_33 = arith.constant 0 : index
      %41 = vector.load %arg9[%c0_32, %c0_33] : memref<64x1xf32, #tpu.memory_space<vmem>>, vector<64x1xf32>
      tpu.vector_store %arg9[%c0_32, %c0_33], %40 {strides = array<i32>} : memref<64x1xf32, #tpu.memory_space<vmem>>, vector<64x1xf32>,
      %cst_34 = arith.constant 0.000000e+00 : f32
      %42 = vector.broadcast %cst_34 : f32 to vector<64x32xf32>
      %c0_35 = arith.constant 0 : index
      %c0_36 = arith.constant 0 : index
      %43 = vector.load %arg10[%c0_35, %c0_36] : memref<64x32xf32, #tpu.memory_space<vmem>>, vector<64x32xf32>
      tpu.vector_store %arg10[%c0_35, %c0_36], %42 {strides = array<i32>} : memref<64x32xf32, #tpu.memory_space<vmem>>, vector<64x32xf32>,
    } else {
    }
    %c0 = arith.constant 0 : index
    %c0_1 = arith.constant 0 : index
    %c0_2 = arith.constant 0 : index
    %3 = vector.load %arg4[%c0, %c0_1, %c0_2] : memref<1x64x4xbf16, #tpu.memory_space<vmem>>, vector<1x64x4xbf16>
    %4 = vector.shape_cast %3 : vector<1x64x4xbf16> to vector<64x4xbf16>
    %c0_3 = arith.constant 0 : index
    %c0_4 = arith.constant 0 : index
    %c0_5 = arith.constant 0 : index
    %5 = vector.load %arg5[%c0_3, %c0_4, %c0_5] : memref<1x4x64xbf16, #tpu.memory_space<vmem>>, vector<1x4x64xbf16>
    %6 = vector.shape_cast %5 : vector<1x4x64xbf16> to vector<4x64xbf16>
    %cst = arith.constant dense<0.000000e+00> : vector<64x64xf32>
    %7 = tpu.matmul %4, %6, %cst {dimension_numbers = #tpu.dot_dimension_numbers<[1], [0], [0], [1], [0, 0, 1, 1], [], []>} : vector<64x4xbf16>, vector<4x64xbf16>, vector<64x64xf32> -> vector<64x64xf32>
    %c0_6 = arith.constant 0 : index
    %c0_7 = arith.constant 0 : index
    %8 = vector.load %arg8[%c0_6, %c0_7] : memref<64x1xf32, #tpu.memory_space<vmem>>, vector<64x1xf32>
    %cst_8 = arith.constant dense<0xFF800000> : vector<64xf32>
    %9 = vector.multi_reduction <maximumf>, %7, %cst_8 [1] : vector<64x64xf32> to vector<64xf32>
    %10 = vector.shape_cast %9 : vector<64xf32> to vector<64x1xf32>
    %11 = arith.maximumf %8, %10 : vector<64x1xf32>
    %c0_9 = arith.constant 0 : index
    %c0_10 = arith.constant 0 : index
    %12 = vector.load %arg8[%c0_9, %c0_10] : memref<64x1xf32, #tpu.memory_space<vmem>>, vector<64x1xf32>
    %13 = arith.subf %12, %11 : vector<64x1xf32>
    %14 = math.exp %13 : vector<64x1xf32>
    %15 = vector.broadcast %11 : vector<64x1xf32> to vector<64x64xf32>
    %16 = arith.subf %7, %15 : vector<64x64xf32>
    %17 = arith.truncf %16 : vector<64x64xf32> to vector<64x64xbf16>
    %18 = math.exp %17 : vector<64x64xbf16>
    %c0_11 = arith.constant 0 : index
    %c0_12 = arith.constant 0 : index
    %19 = vector.load %arg9[%c0_11, %c0_12] : memref<64x1xf32, #tpu.memory_space<vmem>>, vector<64x1xf32>
    %20 = arith.mulf %14, %19 : vector<64x1xf32>
    %21 = arith.extf %18 : vector<64x64xbf16> to vector<64x64xf32>
    %cst_13 = arith.constant dense<0.000000e+00> : vector<64xf32>
    %22 = vector.multi_reduction <add>, %21, %cst_13 [1] : vector<64x64xf32> to vector<64xf32>
    %23 = vector.shape_cast %22 : vector<64xf32> to vector<64x1xf32>
    %24 = arith.addf %20, %23 : vector<64x1xf32>
    %c0_14 = arith.constant 0 : index
    %c0_15 = arith.constant 0 : index
    %25 = vector.load %arg9[%c0_14, %c0_15] : memref<64x1xf32, #tpu.memory_space<vmem>>, vector<64x1xf32>
    tpu.vector_store %arg9[%c0_14, %c0_15], %24 {strides = array<i32>} : memref<64x1xf32, #tpu.memory_space<vmem>>, vector<64x1xf32>,
    %c0_16 = arith.constant 0 : index
    %c0_17 = arith.constant 0 : index
    %26 = vector.load %arg10[%c0_16, %c0_17] : memref<64x32xf32, #tpu.memory_space<vmem>>, vector<64x32xf32>
    %27 = vector.broadcast %14 : vector<64x1xf32> to vector<64x32xf32>
    %28 = arith.mulf %27, %26 : vector<64x32xf32>
    %c0_18 = arith.constant 0 : index
    %c0_19 = arith.constant 0 : index
    %c0_20 = arith.constant 0 : index
    %29 = vector.load %arg6[%c0_18, %c0_19, %c0_20] : memref<1x64x32xbf16, #tpu.memory_space<vmem>>, vector<1x64x32xbf16>
    %30 = vector.shape_cast %29 : vector<1x64x32xbf16> to vector<64x32xbf16>
    %cst_21 = arith.constant dense<0.000000e+00> : vector<64x32xf32>
    %31 = tpu.matmul %18, %30, %cst_21 {dimension_numbers = #tpu.dot_dimension_numbers<[1], [0], [0], [1], [0, 0, 1, 1], [], []>} : vector<64x64xbf16>, vector<64x32xbf16>, vector<64x32xf32> -> vector<64x32xf32>
    %32 = arith.addf %28, %31 : vector<64x32xf32>
    %c0_22 = arith.constant 0 : index
    %c0_23 = arith.constant 0 : index
    %33 = vector.load %arg10[%c0_22, %c0_23] : memref<64x32xf32, #tpu.memory_space<vmem>>, vector<64x32xf32>
    tpu.vector_store %arg10[%c0_22, %c0_23], %32 {strides = array<i32>} : memref<64x32xf32, #tpu.memory_space<vmem>>, vector<64x32xf32>,
    %c0_24 = arith.constant 0 : index
    %c0_25 = arith.constant 0 : index
    %34 = vector.load %arg8[%c0_24, %c0_25] : memref<64x1xf32, #tpu.memory_space<vmem>>, vector<64x1xf32>
    tpu.vector_store %arg8[%c0_24, %c0_25], %11 {strides = array<i32>} : memref<64x1xf32, #tpu.memory_space<vmem>>, vector<64x1xf32>,
    %c0_i32_26 = arith.constant 0 : i32
    %35 = arith.cmpi eq, %arg2, %c0_i32_26 : i32
    %36 = arith.extui %35 : i1 to i32
    %c0_i32_27 = arith.constant 0 : i32
    %37 = arith.cmpi ne, %36, %c0_i32_27 : i32
    scf.if %37 {
      %c0_28 = arith.constant 0 : index
      %c0_29 = arith.constant 0 : index
      %38 = vector.load %arg9[%c0_28, %c0_29] : memref<64x1xf32, #tpu.memory_space<vmem>>, vector<64x1xf32>
      %39 = tpu.reciprocal %38 {approx = true} : vector<64x1xf32> -> vector<64x1xf32>
      %c0_30 = arith.constant 0 : index
      %c0_31 = arith.constant 0 : index
      %c0_32 = arith.constant 0 : index
      %40 = vector.load %arg3[%c0_30, %c0_31, %c0_32] : memref<1x64x32xbf16, #tpu.memory_space<vmem>>, vector<1x64x32xbf16>
      %41 = vector.shape_cast %40 : vector<1x64x32xbf16> to vector<64x32xbf16>
      %42 = arith.extf %41 : vector<64x32xbf16> to vector<64x32xf32>
      %c0_33 = arith.constant 0 : index
      %c0_34 = arith.constant 0 : index
      %43 = vector.load %arg10[%c0_33, %c0_34] : memref<64x32xf32, #tpu.memory_space<vmem>>, vector<64x32xf32>
      %44 = vector.broadcast %39 : vector<64x1xf32> to vector<64x32xf32>
      %45 = arith.mulf %43, %44 : vector<64x32xf32>
      %46 = arith.addf %42, %45 : vector<64x32xf32>
      %47 = arith.truncf %46 : vector<64x32xf32> to vector<64x32xbf16>
      %c0_35 = arith.constant 0 : index
      %c0_36 = arith.constant 0 : index
      %c0_37 = arith.constant 0 : index
      %48 = vector.load %arg7[%c0_35, %c0_36, %c0_37] : memref<1x64x32xbf16, #tpu.memory_space<vmem>>, vector<1x64x32xbf16>
      %49 = vector.shape_cast %48 : vector<1x64x32xbf16> to vector<64x32xbf16>
      %50 = vector.shape_cast %47 : vector<64x32xbf16> to vector<1x64x32xbf16>
      tpu.vector_store %arg7[%c0_35, %c0_36, %c0_37], %50 {strides = array<i32>} : memref<1x64x32xbf16, #tpu.memory_space<vmem>>, vector<1x64x32xbf16>,
    } else {
    }
    return
  }
  func.func @transform_0(%arg0: i32, %arg1: i32, %arg2: i32) -> (i32, i32, i32) {
    %c0_i32 = arith.constant 0 : i32
    %c0_i32_0 = arith.constant 0 : i32
    return %arg0, %arg1, %c0_i32 : i32, i32, i32
  }
  func.func @transform_1(%arg0: i32, %arg1: i32, %arg2: i32) -> (i32, i32, i32) {
    %c0_i32 = arith.constant 0 : i32
    %c0_i32_0 = arith.constant 0 : i32
    return %arg0, %arg1, %c0_i32 : i32, i32, i32
  }
  func.func @transform_2(%arg0: i32, %arg1: i32, %arg2: i32) -> (i32, i32, i32) {
    %c0_i32 = arith.constant 0 : i32
    %c0_i32_0 = arith.constant 0 : i32
    return %arg0, %c0_i32, %arg2 : i32, i32, i32
  }
  func.func @transform_3(%arg0: i32, %arg1: i32, %arg2: i32) -> (i32, i32, i32) {
    %c0_i32 = arith.constant 0 : i32
    %c0_i32_0 = arith.constant 0 : i32
    return %arg0, %arg2, %c0_i32 : i32, i32, i32
  }
  func.func @transform_4(%arg0: i32, %arg1: i32, %arg2: i32) -> (i32, i32, i32) {
    %c0_i32 = arith.constant 0 : i32
    %c0_i32_0 = arith.constant 0 : i32
    return %arg0, %arg1, %c0_i32 : i32, i32, i32
  }
}

module attributes {stable_mosaic.version = 11 : i64} {
  func.func @_gemm_bias_act_kernel(%arg0: i32, %arg1: i32, %arg2: i32, %arg3: memref<16x256xbf16, #tpu.memory_space<vmem>>, %arg4: memref<256x128xbf16, #tpu.memory_space<vmem>>, %arg5: memref<16x1xf32, #tpu.memory_space<vmem>>, %arg6: memref<16x128xbf16, #tpu.memory_space<vmem>>, %arg7: memref<16x128xf32, #tpu.memory_space<vmem>>) attributes {dimension_semantics = [#tpu.dimension_semantics<parallel>, #tpu.dimension_semantics<parallel>, #tpu.dimension_semantics<arbitrary>], iteration_bounds = array<i64: 1, 1, 1>, scalar_prefetch = 0 : i64, scratch_operands = 1 : i64, tpu.core_type = #tpu.core_type<tc>, window_params = [{transform_indices = @transform_0, window_bounds = array<i64: 16, 256>}, {transform_indices = @transform_1, window_bounds = array<i64: 256, 128>}, {transform_indices = @transform_2, window_bounds = array<i64: 16, 1>}, {transform_indices = @transform_3, window_bounds = array<i64: 16, 128>}]} {
    %c0_i32 = arith.constant 0 : i32
    %0 = arith.cmpi eq, %arg2, %c0_i32 : i32
    %1 = arith.extui %0 : i1 to i32
    %c0_i32_0 = arith.constant 0 : i32
    %2 = arith.cmpi ne, %1, %c0_i32_0 : i32
    scf.if %2 {
      %cst_10 = arith.constant 0.000000e+00 : f32
      %12 = vector.broadcast %cst_10 : f32 to vector<16x128xf32>
      %c0_11 = arith.constant 0 : index
      %c0_12 = arith.constant 0 : index
      %13 = vector.load %arg7[%c0_11, %c0_12] : memref<16x128xf32, #tpu.memory_space<vmem>>, vector<16x128xf32>
      tpu.vector_store %arg7[%c0_11, %c0_12], %12 {strides = array<i32>} : memref<16x128xf32, #tpu.memory_space<vmem>>, vector<16x128xf32>,
    } else {
    }
    %c0 = arith.constant 0 : index
    %c0_1 = arith.constant 0 : index
    %3 = vector.load %arg7[%c0, %c0_1] : memref<16x128xf32, #tpu.memory_space<vmem>>, vector<16x128xf32>
    %c0_2 = arith.constant 0 : index
    %c0_3 = arith.constant 0 : index
    %4 = vector.load %arg3[%c0_2, %c0_3] : memref<16x256xbf16, #tpu.memory_space<vmem>>, vector<16x256xbf16>
    %c0_4 = arith.constant 0 : index
    %c0_5 = arith.constant 0 : index
    %5 = vector.load %arg4[%c0_4, %c0_5] : memref<256x128xbf16, #tpu.memory_space<vmem>>, vector<256x128xbf16>
    %cst = arith.constant dense<0.000000e+00> : vector<16x128xf32>
    %6 = tpu.matmul %4, %5, %cst {dimension_numbers = #tpu.dot_dimension_numbers<[1], [0], [0], [1], [0, 0, 1, 1], [], []>} : vector<16x256xbf16>, vector<256x128xbf16>, vector<16x128xf32> -> vector<16x128xf32>
    %7 = arith.addf %3, %6 : vector<16x128xf32>
    %c0_6 = arith.constant 0 : index
    %c0_7 = arith.constant 0 : index
    %8 = vector.load %arg7[%c0_6, %c0_7] : memref<16x128xf32, #tpu.memory_space<vmem>>, vector<16x128xf32>
    tpu.vector_store %arg7[%c0_6, %c0_7], %7 {strides = array<i32>} : memref<16x128xf32, #tpu.memory_space<vmem>>, vector<16x128xf32>,
    %c0_i32_8 = arith.constant 0 : i32
    %9 = arith.cmpi eq, %arg2, %c0_i32_8 : i32
    %10 = arith.extui %9 : i1 to i32
    %c0_i32_9 = arith.constant 0 : i32
    %11 = arith.cmpi ne, %10, %c0_i32_9 : i32
    scf.if %11 {
      %c0_10 = arith.constant 0 : index
      %c0_11 = arith.constant 0 : index
      %12 = vector.load %arg7[%c0_10, %c0_11] : memref<16x128xf32, #tpu.memory_space<vmem>>, vector<16x128xf32>
      %c0_12 = arith.constant 0 : index
      %c0_13 = arith.constant 0 : index
      %13 = vector.load %arg5[%c0_12, %c0_13] : memref<16x1xf32, #tpu.memory_space<vmem>>, vector<16x1xf32>
      %14 = vector.broadcast %13 : vector<16x1xf32> to vector<16x128xf32>
      %15 = arith.addf %12, %14 : vector<16x128xf32>
      %cst_14 = arith.constant 0.000000e+00 : f32
      %16 = vector.broadcast %cst_14 : f32 to vector<16x128xf32>
      %17 = arith.maximumf %15, %16 : vector<16x128xf32>
      %18 = arith.truncf %17 : vector<16x128xf32> to vector<16x128xbf16>
      %c0_15 = arith.constant 0 : index
      %c0_16 = arith.constant 0 : index
      %19 = vector.load %arg6[%c0_15, %c0_16] : memref<16x128xbf16, #tpu.memory_space<vmem>>, vector<16x128xbf16>
      tpu.vector_store %arg6[%c0_15, %c0_16], %18 {strides = array<i32>} : memref<16x128xbf16, #tpu.memory_space<vmem>>, vector<16x128xbf16>,
    } else {
    }
    return
  }
  func.func @transform_0(%arg0: i32, %arg1: i32, %arg2: i32) -> (i32, i32) {
    %c0_i32 = arith.constant 0 : i32
    return %arg0, %arg2 : i32, i32
  }
  func.func @transform_1(%arg0: i32, %arg1: i32, %arg2: i32) -> (i32, i32) {
    %c0_i32 = arith.constant 0 : i32
    return %arg2, %arg1 : i32, i32
  }
  func.func @transform_2(%arg0: i32, %arg1: i32, %arg2: i32) -> (i32, i32) {
    %c0_i32 = arith.constant 0 : i32
    %c0_i32_0 = arith.constant 0 : i32
    return %arg0, %c0_i32 : i32, i32
  }
  func.func @transform_3(%arg0: i32, %arg1: i32, %arg2: i32) -> (i32, i32) {
    %c0_i32 = arith.constant 0 : i32
    return %arg0, %arg1 : i32, i32
  }
}

module attributes {stable_mosaic.version = 11 : i64} {
  func.func @_gemm_bias_act_kernel(%arg0: i32, %arg1: i32, %arg2: i32, %arg3: memref<8x128xbf16, #tpu.memory_space<vmem>>, %arg4: memref<128x512xbf16, #tpu.memory_space<vmem>>, %arg5: memref<8x1xf32, #tpu.memory_space<vmem>>, %arg6: memref<8x512xf32, #tpu.memory_space<vmem>>, %arg7: memref<8x512xf32, #tpu.memory_space<vmem>>) attributes {dimension_semantics = [#tpu.dimension_semantics<parallel>, #tpu.dimension_semantics<parallel>, #tpu.dimension_semantics<arbitrary>], iteration_bounds = array<i64: 1, 2, 1>, scalar_prefetch = 0 : i64, scratch_operands = 1 : i64, tpu.core_type = #tpu.core_type<tc>, window_params = [{transform_indices = @transform_0, window_bounds = array<i64: 8, 128>}, {transform_indices = @transform_1, window_bounds = array<i64: 128, 512>}, {transform_indices = @transform_2, window_bounds = array<i64: 8, 1>}, {transform_indices = @transform_3, window_bounds = array<i64: 8, 512>}]} {
    %c0_i32 = arith.constant 0 : i32
    %0 = arith.cmpi eq, %arg2, %c0_i32 : i32
    %1 = arith.extui %0 : i1 to i32
    %c0_i32_0 = arith.constant 0 : i32
    %2 = arith.cmpi ne, %1, %c0_i32_0 : i32
    scf.if %2 {
      %cst_10 = arith.constant 0.000000e+00 : f32
      %12 = vector.broadcast %cst_10 : f32 to vector<8x512xf32>
      %c0_11 = arith.constant 0 : index
      %c0_12 = arith.constant 0 : index
      %13 = vector.load %arg7[%c0_11, %c0_12] : memref<8x512xf32, #tpu.memory_space<vmem>>, vector<8x512xf32>
      tpu.vector_store %arg7[%c0_11, %c0_12], %12 {strides = array<i32>} : memref<8x512xf32, #tpu.memory_space<vmem>>, vector<8x512xf32>,
    } else {
    }
    %c0 = arith.constant 0 : index
    %c0_1 = arith.constant 0 : index
    %3 = vector.load %arg7[%c0, %c0_1] : memref<8x512xf32, #tpu.memory_space<vmem>>, vector<8x512xf32>
    %c0_2 = arith.constant 0 : index
    %c0_3 = arith.constant 0 : index
    %4 = vector.load %arg3[%c0_2, %c0_3] : memref<8x128xbf16, #tpu.memory_space<vmem>>, vector<8x128xbf16>
    %c0_4 = arith.constant 0 : index
    %c0_5 = arith.constant 0 : index
    %5 = vector.load %arg4[%c0_4, %c0_5] : memref<128x512xbf16, #tpu.memory_space<vmem>>, vector<128x512xbf16>
    %cst = arith.constant dense<0.000000e+00> : vector<8x512xf32>
    %6 = tpu.matmul %4, %5, %cst {dimension_numbers = #tpu.dot_dimension_numbers<[1], [0], [0], [1], [0, 0, 1, 1], [], []>} : vector<8x128xbf16>, vector<128x512xbf16>, vector<8x512xf32> -> vector<8x512xf32>
    %7 = arith.addf %3, %6 : vector<8x512xf32>
    %c0_6 = arith.constant 0 : index
    %c0_7 = arith.constant 0 : index
    %8 = vector.load %arg7[%c0_6, %c0_7] : memref<8x512xf32, #tpu.memory_space<vmem>>, vector<8x512xf32>
    tpu.vector_store %arg7[%c0_6, %c0_7], %7 {strides = array<i32>} : memref<8x512xf32, #tpu.memory_space<vmem>>, vector<8x512xf32>,
    %c0_i32_8 = arith.constant 0 : i32
    %9 = arith.cmpi eq, %arg2, %c0_i32_8 : i32
    %10 = arith.extui %9 : i1 to i32
    %c0_i32_9 = arith.constant 0 : i32
    %11 = arith.cmpi ne, %10, %c0_i32_9 : i32
    scf.if %11 {
      %c0_10 = arith.constant 0 : index
      %c0_11 = arith.constant 0 : index
      %12 = vector.load %arg7[%c0_10, %c0_11] : memref<8x512xf32, #tpu.memory_space<vmem>>, vector<8x512xf32>
      %c0_12 = arith.constant 0 : index
      %c0_13 = arith.constant 0 : index
      %13 = vector.load %arg5[%c0_12, %c0_13] : memref<8x1xf32, #tpu.memory_space<vmem>>, vector<8x1xf32>
      %14 = vector.broadcast %13 : vector<8x1xf32> to vector<8x512xf32>
      %15 = arith.addf %12, %14 : vector<8x512xf32>
      %16 = math.tanh %15 : vector<8x512xf32>
      %c0_14 = arith.constant 0 : index
      %c0_15 = arith.constant 0 : index
      %17 = vector.load %arg6[%c0_14, %c0_15] : memref<8x512xf32, #tpu.memory_space<vmem>>, vector<8x512xf32>
      tpu.vector_store %arg6[%c0_14, %c0_15], %16 {strides = array<i32>} : memref<8x512xf32, #tpu.memory_space<vmem>>, vector<8x512xf32>,
    } else {
    }
    return
  }
  func.func @transform_0(%arg0: i32, %arg1: i32, %arg2: i32) -> (i32, i32) {
    %c0_i32 = arith.constant 0 : i32
    return %arg0, %arg2 : i32, i32
  }
  func.func @transform_1(%arg0: i32, %arg1: i32, %arg2: i32) -> (i32, i32) {
    %c0_i32 = arith.constant 0 : i32
    return %arg2, %arg1 : i32, i32
  }
  func.func @transform_2(%arg0: i32, %arg1: i32, %arg2: i32) -> (i32, i32) {
    %c0_i32 = arith.constant 0 : i32
    %c0_i32_0 = arith.constant 0 : i32
    return %arg0, %c0_i32 : i32, i32
  }
  func.func @transform_3(%arg0: i32, %arg1: i32, %arg2: i32) -> (i32, i32) {
    %c0_i32 = arith.constant 0 : i32
    return %arg0, %arg1 : i32, i32
  }
}

</mosaic_0001>

<bundles_post_ra>
// kernel: unet_with_attention_3d.20
= control target key start
LH: loop header
LB: loop body
LE: loop exit
PB: predicated region body
PF: predicated region fallthrough
CT: control target
= control target key end

     0   :  { %s930_s12 = smov 0   ;;  %s932_s13 = smov 0   ;;  %s1054_s0 = inlined_call_operand.vmem [shape: bf16[16,64], index: 0, kind: input, shape index: {}]   ;;  %s1055_s1 = inlined_call_operand.vmem [shape: bf16[64,1024], index: 1, kind: input, shape index: {}]   ;;  %s1056_s2 = inlined_call_operand.vmem [shape: f32[16,1], index: 2, kind: input, shape index: {}]   ;;  %s1057_s3 = inlined_call_operand.vmem [shape: bf16[16,1024], index: 3, kind: output, shape index: {}]  }
   0x1   :  { %s934_s14 = smov 0   ;;  %s936_s15 = smov 0  }
   0x2   :  { %s938_s16 = smov 0  }
   0x3 LB: > { %s28_s17 = sadd.s32 1, %s903_s15  ;;  %s756_s18 = sadd.s32 4294967295, %s907_s16   ;;  %s907_s16 = sphi %s938_s16, %s13_s16   ;;  %s903_s15 = sphi %s936_s15, %s1062_s15   ;;  %s899_s14 = sphi %s934_s14, %s1061_s14   ;;  %s895_s13 = sphi %s932_s13, %s1060_s13   ;;  %s891_s12 = sphi %s930_s12, %s1059_s12  }
   0x4   : > { %p30_p0 = scmp.ge.s32.totalorder %s28_s17, 2  ;;  %p76_p1 = scmp.ne.s32.totalorder %s895_s13, %s891_s12 }
   0x5   : > { %p77_p2 = scmp.eq.s32.totalorder %s907_s16, 0  ;;  %p134_p4 = scmp.eq.s32.totalorder %s756_s18, 1 }
   0x6   : > { %s1064_s17 = smov (%p30_p0, %s28_s17), 0  ;;  %s69_s20 = sadd.s32 1, %s895_s13 }
   0x7   : > { %p78_p3 = por %p77_p2, %p76_p1  ;;  %s65_s19 = ssub.s32 %s903_s15, %s1064_s17 }
   0x8   : > { %p67_p5 = scmp.eq.s32.totalorder %s65_s19, 0  ;;  %p965_p6 = por %p134_p4, %p76_p1 }
   0x9   : > { %p761_p7 = scmp.ge.s32.totalorder %s907_s16, 2 }
   0xa   : > { %s970_s22 = scalar_select %p67_p5, %s895_s13, %s69_s20  }
   0xb   : > { %177 = sbr.rel (%p761_p7) target bundleno = 30 (0x1e), region = 24 }
  0x12   : > { %180 = sbr.rel (!%p78_p3) target bundleno = 30 (0x1e), region = 28  ;;  %s182_s23 = sand.u32 (%p78_p3), 1, %s895_s13  }
  0x13   : > { %s796_s24 = sshll.u32 (%p78_p3), %s903_s15, 4  ;;  %s762_s25 = sshll.u32 (%p78_p3), %s182_s23, 7 }
  0x14   : > { %s978_s28 = scalar_lea.vmem (%p78_p3), %s1055_s1, %s796_s24  ;;  %s184_s29 = scalar_lea.vmem (%p78_p3), [#allocation3], %s762_s25 }
  0x15   : > { %v203_v0 = vld [vmem:[%s978_s28] sm:$0xff] (%p78_p3)  ;;  %v205_v1 = vld [vmem:[%s978_s28 + $0x8] sm:$0xff] (%p78_p3) }
  0x16   : > { %v207_v2 = vld [vmem:[%s978_s28 + $0x20] sm:$0xff] (%p78_p3)  ;;  %204 = vst [vmem:[%s184_s29] sm:$0xff] (%p78_p3), %v203_v0  ;;  %206 = vst [vmem:[%s184_s29 + $0x8] sm:$0xff] (%p78_p3), %v205_v1  ;;  %v209_v3 = vld [vmem:[%s978_s28 + $0x28] sm:$0xff] (%p78_p3) }
  0x17   : > { %208 = vst [vmem:[%s184_s29 + $0x10] sm:$0xff] (%p78_p3), %v207_v2  ;;  %v211_v4 = vld [vmem:[%s978_s28 + $0x40] sm:$0xff] (%p78_p3)  ;;  %v213_v5 = vld [vmem:[%s978_s28 + $0x48] sm:$0xff] (%p78_p3)  ;;  %210 = vst [vmem:[%s184_s29 + $0x18] sm:$0xff] (%p78_p3), %v209_v3 }
  0x18   : > { %212 = vst [vmem:[%s184_s29 + $0x20] sm:$0xff] (%p78_p3), %v211_v4  ;;  %214 = vst [vmem:[%s184_s29 + $0x28] sm:$0xff] (%p78_p3), %v213_v5  ;;  %v215_v6 = vld [vmem:[%s978_s28 + $0x60] sm:$0xff] (%p78_p3)  ;;  %v217_v7 = vld [vmem:[%s978_s28 + $0x68] sm:$0xff] (%p78_p3) }
  0x19   : > { %v219_v8 = vld [vmem:[%s978_s28 + $0x80] sm:$0xff]  ;;  %216 = vst [vmem:[%s184_s29 + $0x30] sm:$0xff] %v215_v6  ;;  %218 = vst [vmem:[%s184_s29 + $0x38] sm:$0xff] %v217_v7  ;;  %v221_v9 = vld [vmem:[%s978_s28 + $0x88] sm:$0xff] }
  0x1a   : > { %220 = vst [vmem:[%s184_s29 + $0x40] sm:$0xff] %v219_v8  ;;  %v223_v10 = vld [vmem:[%s978_s28 + $0xa0] sm:$0xff]  ;;  %v225_v11 = vld [vmem:[%s978_s28 + $0xa8] sm:$0xff]  ;;  %222 = vst [vmem:[%s184_s29 + $0x48] sm:$0xff] %v221_v9 }
  0x1b   : > { %224 = vst [vmem:[%s184_s29 + $0x50] sm:$0xff] %v223_v10  ;;  %226 = vst [vmem:[%s184_s29 + $0x58] sm:$0xff] %v225_v11  ;;  %v227_v12 = vld [vmem:[%s978_s28 + $0xc0] sm:$0xff]  ;;  %v229_v13 = vld [vmem:[%s978_s28 + $0xc8] sm:$0xff] }
  0x1c   : > { %v231_v14 = vld [vmem:[%s978_s28 + $0xe0] sm:$0xff]  ;;  %228 = vst [vmem:[%s184_s29 + $0x60] sm:$0xff] %v227_v12  ;;  %230 = vst [vmem:[%s184_s29 + $0x68] sm:$0xff] %v229_v13  ;;  %v233_v15 = vld [vmem:[%s978_s28 + $0xe8] sm:$0xff] }
  0x1d   : > { %232 = vst [vmem:[%s184_s29 + $0x70] sm:$0xff] %v231_v14  ;;  %234 = vst [vmem:[%s184_s29 + $0x78] sm:$0xff] %v233_v15 }
  0x1e PF: > { %p765_p8 = scmp.ge.s32.totalorder %s907_s16, 1  ;;  %p239_p9 = scmp.lt.s32.totalorder %s907_s16, 3 }
  0x20   : > { %p240_p10 = pnand %p765_p8, %p239_p9 }
  0x21   : > { %s246_s30 = sand.u32 (!%p240_p10), 1, %s891_s12   ;;  %v909_v16 = vmov (!%p240_p10), 0   ;;  %v541_v17 = vld [vmem:[%s1056_s2] sm:$0xff] (!%p240_p10)  ;;  %v542_v19 = vld [vmem:[%s1056_s2 + $0x8] sm:$0xff] (!%p240_p10)  ;;  %vm424_vm0 = vcmask (!%p240_p10), 523264  }
  0x22   : > { %243 = sbr.rel (%p240_p10) target bundleno = 287 (0x11f), region = 51  ;;  %s766_s4 = sshll.u32 (!%p240_p10), %s246_s30, 7  ;;  %460 = vmatprep.mubr.bf16.mxu0 (!%p240_p10), %v909_v16  ;;  %503 = vmatprep.mubr.bf16.mxu1 (!%p240_p10), %v909_v16  ;;  %v868_v35 = vld [vmem:[%s1054_s0] sm:$0xff] (!%p240_p10)  }
  0x23   : > { %843 = vset.pattern.permute.xlu0 (!%p240_p10), %v909_v16  ;;  %s1004_s7 = scalar_lea.vmem (!%p240_p10), [#allocation3], %s766_s4  ;;  %s1030_s18 = sshll.u32 (!%p240_p10), %s246_s30, 5 }
  0x24   : > { %v844_v18 = vld [vmem:[%s1004_s7 + $0x4] ss:$16 sps:$4 sm:$0xff] (!%p240_p10)   ;;  %545 = vperm.xlu0 (!%p240_p10), %843, %v541_v17   ;;  %v846_v20 = vld [vmem:[%s1004_s7 + $0xc] ss:$16 sps:$4 sm:$0xff] (!%p240_p10)   ;;  %v848_v21 = vld [vmem:[%s1004_s7] ss:$16 sps:$4 sm:$0xff] (!%p240_p10)  }
  0x25   : > { %428 = vmatprep.subr.bf16.mxu0 (!%p240_p10), %v844_v18  ;;  %v849_v22 = vld [vmem:[%s1004_s7 + $0x8] ss:$16 sps:$4 sm:$0xff] (!%p240_p10)   ;;  %471 = vmatprep.subr.bf16.mxu1 (!%p240_p10), %v846_v20  ;;  %v850_v23 = vld [vmem:[%s1004_s7 + $0x24] ss:$16 sps:$4 sm:$0xff] (!%p240_p10)   ;;  %v852_v24 = vld [vmem:[%s1004_s7 + $0x2c] ss:$16 sps:$4 sm:$0xff] (!%p240_p10)  }
  0x26   : > { %429 = vmatpush1.bf16.msra.mxu0 (!%p240_p10), %v848_v21  ;;  %472 = vmatpush1.bf16.msra.mxu1 (!%p240_p10), %v849_v22  ;;  %v854_v25 = vld [vmem:[%s1004_s7 + $0x20] ss:$16 sps:$4 sm:$0xff] (!%p240_p10)   ;;  %v855_v26 = vld [vmem:[%s1004_s7 + $0x28] ss:$16 sps:$4 sm:$0xff] (!%p240_p10)   ;;  %v856_v27 = vld [vmem:[%s1004_s7 + $0x44] ss:$16 sps:$4 sm:$0xff] (!%p240_p10)  }
  0x27   : > { %430 = vmatprep.subr.bf16.mxu0 (!%p240_p10), %v850_v23  ;;  %473 = vmatprep.subr.bf16.mxu1 (!%p240_p10), %v852_v24  ;;  %v858_v28 = vld [vmem:[%s1004_s7 + $0x4c] ss:$16 sps:$4 sm:$0xff] (!%p240_p10)   ;;  %v860_v29 = vld [vmem:[%s1004_s7 + $0x40] ss:$16 sps:$4 sm:$0xff] (!%p240_p10)   ;;  %v861_v30 = vld [vmem:[%s1004_s7 + $0x48] ss:$16 sps:$4 sm:$0xff] (!%p240_p10)  }
  0x28   : > { %550 = vperm.xlu0 (!%p240_p10), %843, %v542_v19   ;;  %v862_v31 = vld [vmem:[%s1004_s7 + $0x64] ss:$16 sps:$4 sm:$0xff] (!%p240_p10)   ;;  %v864_v32 = vld [vmem:[%s1004_s7 + $0x6c] ss:$16 sps:$4 sm:$0xff] (!%p240_p10)   ;;  %v866_v33 = vld [vmem:[%s1004_s7 + $0x60] ss:$16 sps:$4 sm:$0xff] (!%p240_p10)  }
  0x29   : > { %v867_v34 = vld [vmem:[%s1004_s7 + $0x68] ss:$16 sps:$4 sm:$0xff]   ;;  %s280_s12 = scalar_lea.vmem [#allocation4], %s1030_s18  ;;  %s801_s19 = sshll.u32 (%p965_p6), %s899_s14, 4 }
  0x2a   : > { %431 = vmatpush1.bf16.msra.mxu0 %v854_v25  ;;  %474 = vmatpush1.bf16.msra.mxu1 %v855_v26  ;;  %s625_s24 = scalar_lea.vmem (%p965_p6), %s1057_s3, %s801_s19 }
  0x2b   : > { %432 = vmatprep.subr.bf16.mxu0 %v856_v27  ;;  %475 = vmatprep.subr.bf16.mxu1 %v858_v28 }
  0x2e   : > { %433 = vmatpush1.bf16.msra.mxu0 %v860_v29  ;;  %476 = vmatpush1.bf16.msra.mxu1 %v861_v30 }
  0x2f   : > { %434 = vmatprep.subr.bf16.mxu0 %v862_v31  ;;  %477 = vmatprep.subr.bf16.mxu1 %v864_v32 }
  0x32   : > { %435 = vmatpush1.bf16.msra.mxu0 %v866_v33  ;;  %478 = vmatpush1.bf16.msra.mxu1 %v867_v34 }
  0x35   : > { %785 = vmatmul.mubr.msk.bf16.vlgmr.msra.gmra.mrb[0].mxu0 %vm424_vm0, %v868_v35  ;;  %786 = vmatmul.mubr.msk.bf16.vlgmr.msra.gmra.mrb[0].mxu1 %vm424_vm0, %v868_v35 }
  0xa3   : > { %v546_v36 = vpop.permute.xlu0 %545 }
  0xa7   : > { %v551_v49 = vpop.permute.xlu0 %550 }
 0x108   : > { %v462_v37 = vpop.f32.mrb[0].mxu0  ;;  %v505_v38 = vpop.f32.mrb[0].mxu1 }
 0x109   : > { %v553_v39 = vadd.f32 %v546_v36, %v462_v37  ;;  %v555_v40 = vadd.f32 %v546_v36, %v505_v38  ;;  %v464_v41 = vpop.f32.mrb[1].mxu0  ;;  %v507_v42 = vpop.f32.mrb[1].mxu1 }
 0x10a   : > { %v554_v43 = vadd.f32 %v546_v36, %v464_v41  ;;  %v556_v44 = vadd.f32 %v546_v36, %v507_v42  ;;  %v466_v45 = vpop.f32.mrb[2].mxu0  ;;  %v509_v46 = vpop.f32.mrb[2].mxu1 }
 0x10b   : > { %vm561_vm1 = vcmp.ge.f32.partialorder %v553_v39, 0.0  ;;  %v569_v47 = vmul.f32 0.2, %v553_v39  ;;  %vm563_vm2 = vcmp.ge.f32.partialorder %v555_v40, 0.0  ;;  %v571_v48 = vmul.f32 0.2, %v555_v40 }
 0x10c   : > { %vm562_vm3 = vcmp.ge.f32.partialorder %v554_v43, 0.0  ;;  %v570_v50 = vmul.f32 0.2, %v554_v43  ;;  %vm564_vm4 = vcmp.ge.f32.partialorder %v556_v44, 0.0  ;;  %v572_v51 = vmul.f32 0.2, %v556_v44 }
 0x10d   : > { %v577_v52 = vsel %vm561_vm1, %v553_v39, %v569_v47  ;;  %v579_v53 = vsel %vm563_vm2, %v555_v40, %v571_v48  ;;  %v557_v54 = vadd.f32 %v551_v49, %v466_v45  ;;  %v559_v55 = vadd.f32 %v551_v49, %v509_v46  ;;  %v468_v56 = vpop.f32.mrb[3].mxu0  ;;  %v511_v57 = vpop.f32.mrb[3].mxu1 }
 0x10e   : > { %v578_v58 = vsel %vm562_vm3, %v554_v43, %v570_v50  ;;  %v580_v59 = vsel %vm564_vm4, %v556_v44, %v572_v51  ;;  %v558_v60 = vadd.f32 %v551_v49, %v468_v56  ;;  %v560_v61 = vadd.f32 %v551_v49, %v511_v57 }
 0x10f   : > { %v797_v62 = vpack.c.bf16 %v578_v58, %v577_v52  ;;  %v798_v63 = vpack.c.bf16 %v580_v59, %v579_v53  ;;  %vm565_vm5 = vcmp.ge.f32.partialorder %v557_v54, 0.0  ;;  %v573_v0 = vmul.f32 0.2, %v557_v54 }
 0x110   : > { %vm567_vm6 = vcmp.ge.f32.partialorder %v559_v55, 0.0  ;;  %v575_v1 = vmul.f32 0.2, %v559_v55  ;;  %vm566_vm7 = vcmp.ge.f32.partialorder %v558_v60, 0.0  ;;  %v574_v2 = vmul.f32 0.2, %v558_v60 }
 0x111   : > { %609 = vst [vmem:[%s280_s12] sm:$0xff] %v797_v62  ;;  %610 = vst [vmem:[%s280_s12 + $0x8] sm:$0xff] %v798_v63  ;;  %v581_v3 = vsel %vm565_vm5, %v557_v54, %v573_v0  ;;  %vm568_vm8 = vcmp.ge.f32.partialorder %v560_v61, 0.0  ;;  %v576_v4 = vmul.f32 0.2, %v560_v61  ;;  %619 = sbr.rel (!%p965_p6) target bundleno = 287 (0x11f), region = 67 }
 0x112   : > { %v583_v5 = vsel %vm567_vm6, %v559_v55, %v575_v1  ;;  %v582_v6 = vsel %vm566_vm7, %v558_v60, %v574_v2 }
 0x113   : > { %v799_v7 = vpack.c.bf16 %v582_v6, %v581_v3  ;;  %v584_v8 = vsel %vm568_vm8, %v560_v61, %v576_v4 }
 0x114   : > { %v800_v9 = vpack.c.bf16 %v584_v8, %v583_v5 }
 0x115   : > { %611 = vst [vmem:[%s280_s12 + $0x10] sm:$0xff] %v799_v7 }
 0x116   : > { %612 = vst [vmem:[%s280_s12 + $0x18] sm:$0xff] %v800_v9 }
 0x118   : > { %v638_v10 = vld [vmem:[%s280_s12] sm:$0xff]  ;;  %v640_v11 = vld [vmem:[%s280_s12 + $0x8] sm:$0xff] }
 0x119   : > { %639 = vst [vmem:[%s625_s24] sm:$0xff] %v638_v10  ;;  %641 = vst [vmem:[%s625_s24 + $0x8] sm:$0xff] %v640_v11 }
 0x11c   : > { %v642_v12 = vld [vmem:[%s280_s12 + $0x10] sm:$0xff] }
 0x11d   : > { %v644_v13 = vld [vmem:[%s280_s12 + $0x18] sm:$0xff]  ;;  %643 = vst [vmem:[%s625_s24 + $0x20] sm:$0xff] %v642_v12 }
 0x11e   : > { %645 = vst [vmem:[%s625_s24 + $0x28] sm:$0xff] %v644_v13 }
 0x11f PF: > { %s13_s16 = sadd.s32 1, %s907_s16   ;;  %s1059_s12 = smov %s895_s13 }
 0x120   : > { %p10_p11 = scmp.ge.s32.totalorder %s13_s16, 4   ;;  %s1060_s13 = smov %s970_s22 }
 0x121   : > { %s1061_s14 = smov %s903_s15  ;;  %s1062_s15 = smov %s1064_s17 }
 0x122   :  { %12 = sbr.rel (!%p10_p11) target bundleno = 3 (0x3), region = 127 }

// kernel: unet_with_attention_3d.22
= control target key start
LH: loop header
LB: loop body
LE: loop exit
PB: predicated region body
PF: predicated region fallthrough
CT: control target
= control target key end

     0   :  { %vm19_vm0 = vcmask 326656   ;;  %v502_v1 = vmov 0.0   ;;  %vm124_vm1 = vcmask 261120   ;;  %vm385_vm2 = vcmask 322560   ;;  %s678_s1 = inlined_call_operand.vmem [shape: bf16[32,40], index: 1, kind: input, shape index: {}]   ;;  %s679_s0 = inlined_call_operand.vmem [shape: bf16[128,32], index: 0, kind: input, shape index: {}]   ;;  %s680_s2 = inlined_call_operand.vmem [shape: f32[1,40], index: 2, kind: input, shape index: {}]   ;;  %s681_s3 = inlined_call_operand.vmem [shape: bf16[128,40], index: 3, kind: output, shape index: {}]  }
   0x1   :  { %v492_v0 = vld [vmem:[%s678_s1] sm:$0xff]   ;;  %22 = vst.msk [vmem:[#allocation2 + $0x10] sm:$0xff] %vm19_vm0, %v502_v1  ;;  %20 = vst.msk [vmem:[#allocation2] sm:$0xff] %vm19_vm0, %v502_v1  ;;  %v493_v2 = vld [vmem:[%s678_s1 + $0x8] sm:$0xff]  }
   0x2   :  { %21 = vst.msk [vmem:[#allocation2 + $0x8] sm:$0xff] %vm19_vm0, %v502_v1  ;;  %23 = vst.msk [vmem:[#allocation2 + $0x18] sm:$0xff] %vm19_vm0, %v502_v1  ;;  %467 = vmatprep.subr.bf16.mxu0 %v492_v0  ;;  %487 = vmatprep.subr.bf16.mxu1 %v492_v0  ;;  %v494_v3 = vld [vmem:[%s679_s0] sm:$0xff]   ;;  %v496_v5 = vld [vmem:[%s679_s0 + $0x8] sm:$0xff]  }
   0x3   :  { %24 = vst.msk [vmem:[#allocation2 + $0x20] sm:$0xff] %vm19_vm0, %v502_v1  ;;  %25 = vst.msk [vmem:[#allocation2 + $0x28] sm:$0xff] %vm19_vm0, %v502_v1  ;;  %468 = vmatpush3.bf16.msra.mxu0 %v492_v0  ;;  %489 = vmatpush3.bf16.msra.mxu1 %v492_v0  ;;  %v495_v4 = vld [vmem:[%s679_s0 + $0x20] sm:$0xff]   ;;  %v497_v6 = vld [vmem:[%s679_s0 + $0x28] sm:$0xff]  }
   0x4   :  { %26 = vst.msk [vmem:[#allocation2 + $0x30] sm:$0xff] %vm19_vm0, %v502_v1  ;;  %27 = vst.msk [vmem:[#allocation2 + $0x38] sm:$0xff] %vm19_vm0, %v502_v1  ;;  %469 = vmatprep.subr.bf16.mxu0 %v493_v2  ;;  %488 = vmatprep.subr.bf16.mxu1 %v493_v2  ;;  %v498_v7 = vld [vmem:[%s679_s0 + $0x10] sm:$0xff]   ;;  %v500_v9 = vld [vmem:[%s679_s0 + $0x18] sm:$0xff]  }
   0x5   :  { %28 = vst.msk [vmem:[#allocation2 + $0x40] sm:$0xff] %vm19_vm0, %v502_v1  ;;  %29 = vst.msk [vmem:[#allocation2 + $0x48] sm:$0xff] %vm19_vm0, %v502_v1  ;;  %471 = vmatprep.mubr.msk.bf16.mxu0 %vm124_vm1, %v494_v3  ;;  %479 = vmatprep.mubr.msk.bf16.mxu1 %vm124_vm1, %v495_v4  ;;  %v499_v8 = vld [vmem:[%s679_s0 + $0x30] sm:$0xff]   ;;  %v501_v10 = vld [vmem:[%s679_s0 + $0x38] sm:$0xff]  }
   0x6   :  { %30 = vst.msk [vmem:[#allocation2 + $0x50] sm:$0xff] %vm19_vm0, %v502_v1  ;;  %31 = vst.msk [vmem:[#allocation2 + $0x58] sm:$0xff] %vm19_vm0, %v502_v1  ;;  %v588_v39 = vld [vmem:[%s680_s2] ss:$0 sm:$0xff] }
   0x7   :  { %32 = vst.msk [vmem:[#allocation2 + $0x60] sm:$0xff] %vm19_vm0, %v502_v1  ;;  %33 = vst.msk [vmem:[#allocation2 + $0x68] sm:$0xff] %vm19_vm0, %v502_v1  ;;  %470 = vmatpush3.bf16.msra.mxu0 %v493_v2  ;;  %490 = vmatpush3.bf16.msra.mxu1 %v493_v2 }
   0x8   :  { %34 = vst.msk [vmem:[#allocation2 + $0x70] sm:$0xff] %vm19_vm0, %v502_v1  ;;  %35 = vst.msk [vmem:[#allocation2 + $0x78] sm:$0xff] %vm19_vm0, %v502_v1  ;;  %v38_v11 = vld [vmem:[#allocation2 + $0x10] sm:$0xff]  ;;  %v36_v13 = vld [vmem:[#allocation2] sm:$0xff] }
   0x9   :  { %v39_v17 = vld [vmem:[#allocation2 + $0x18] sm:$0xff]  ;;  %v37_v23 = vld [vmem:[#allocation2 + $0x8] sm:$0xff] }
   0xa   :  { %472 = vmatmul.mubr.msk.bf16.vlgmr.msra.gmra.mrb[0].mxu0 %vm124_vm1, %v496_v5  ;;  %480 = vmatmul.mubr.msk.bf16.vlgmr.msra.gmra.mrb[0].mxu1 %vm124_vm1, %v497_v6  ;;  %v40_v37 = vld [vmem:[#allocation2 + $0x20] sm:$0xff]  ;;  %v41_v48 = vld [vmem:[#allocation2 + $0x28] sm:$0xff] }
   0xb   :  { %475 = vmatprep.mubr.msk.bf16.mxu0 %vm124_vm1, %v498_v7  ;;  %483 = vmatprep.mubr.msk.bf16.mxu1 %vm124_vm1, %v499_v8  ;;  %v42_v35 = vld [vmem:[#allocation2 + $0x30] sm:$0xff]  ;;  %v43_v42 = vld [vmem:[#allocation2 + $0x38] sm:$0xff] }
   0xc   :  { %v44_v14 = vld [vmem:[#allocation2 + $0x40] sm:$0xff]  ;;  %v45_v24 = vld [vmem:[#allocation2 + $0x48] sm:$0xff] }
   0xd   :  { %v46_v12 = vld [vmem:[#allocation2 + $0x50] sm:$0xff]  ;;  %v47_v18 = vld [vmem:[#allocation2 + $0x58] sm:$0xff] }
   0xe   :  { %v48_v38 = vld [vmem:[#allocation2 + $0x60] sm:$0xff]  ;;  %v49_v49 = vld [vmem:[#allocation2 + $0x68] sm:$0xff] }
   0xf   :  { %v50_v36 = vld [vmem:[#allocation2 + $0x70] sm:$0xff]  ;;  %v51_v43 = vld [vmem:[#allocation2 + $0x78] sm:$0xff] }
  0x12   :  { %476 = vmatmul.mubr.msk.bf16.gmra.mrb[4].mxu0 %vm124_vm1, %v500_v9  ;;  %484 = vmatmul.mubr.msk.bf16.gmra.mrb[4].mxu1 %vm124_vm1, %v501_v10 }
  0xdd   :  { %v473_v15 = vpop.f32.mrb[0].mxu0  ;;  %v481_v16 = vpop.f32.mrb[0].mxu1 }
  0xde   :  { %v248_v19 = vadd.f32 %v473_v15, %v38_v11  ;;  %v256_v20 = vadd.f32 %v481_v16, %v46_v12  ;;  %v183_v21 = vpop.f32.mrb[1].mxu0  ;;  %v215_v22 = vpop.f32.mrb[1].mxu1 }
  0xdf   :  { %v246_v25 = vadd.f32 %v183_v21, %v36_v13  ;;  %v254_v26 = vadd.f32 %v215_v22, %v44_v14  ;;  %v474_v27 = vpop.f32.mrb[2].mxu0  ;;  %v482_v28 = vpop.f32.mrb[2].mxu1 }
  0xe0   :  { %265 = vst.msk [vmem:[#allocation2 + $0x10] sm:$0xff] %vm19_vm0, %v248_v19  ;;  %273 = vst.msk [vmem:[#allocation2 + $0x50] sm:$0xff] %vm19_vm0, %v256_v20  ;;  %v249_v29 = vadd.f32 %v474_v27, %v39_v17  ;;  %v257_v30 = vadd.f32 %v482_v28, %v47_v18  ;;  %v186_v31 = vpop.f32.mrb[3].mxu0  ;;  %v218_v32 = vpop.f32.mrb[3].mxu1 }
  0xe1   :  { %263 = vst.msk [vmem:[#allocation2] sm:$0xff] %vm19_vm0, %v246_v25  ;;  %271 = vst.msk [vmem:[#allocation2 + $0x40] sm:$0xff] %vm19_vm0, %v254_v26  ;;  %v247_v33 = vadd.f32 %v186_v31, %v37_v23  ;;  %v255_v34 = vadd.f32 %v218_v32, %v45_v24 }
  0xe2   :  { %266 = vst.msk [vmem:[#allocation2 + $0x18] sm:$0xff] %vm19_vm0, %v249_v29  ;;  %274 = vst.msk [vmem:[#allocation2 + $0x58] sm:$0xff] %vm19_vm0, %v257_v30 }
  0xe3   :  { %264 = vst.msk [vmem:[#allocation2 + $0x8] sm:$0xff] %vm19_vm0, %v247_v33  ;;  %272 = vst.msk [vmem:[#allocation2 + $0x48] sm:$0xff] %vm19_vm0, %v255_v34 }
  0xe5   :  { %v477_v40 = vpop.f32.mrb[4].mxu0  ;;  %v485_v41 = vpop.f32.mrb[4].mxu1 }
  0xe6   :  { %v252_v44 = vadd.f32 %v477_v40, %v42_v35  ;;  %v260_v45 = vadd.f32 %v485_v41, %v50_v36  ;;  %v199_v46 = vpop.f32.mrb[5].mxu0  ;;  %v231_v47 = vpop.f32.mrb[5].mxu1 }
  0xe7   :  { %v284_v50 = vld [vmem:[#allocation2 + $0x10] sm:$0xff]  ;;  %v250_v52 = vadd.f32 %v199_v46, %v40_v37  ;;  %v258_v53 = vadd.f32 %v231_v47, %v48_v38  ;;  %v478_v54 = vpop.f32.mrb[6].mxu0  ;;  %v486_v55 = vpop.f32.mrb[6].mxu1 }
  0xe8   :  { %v292_v51 = vld [vmem:[#allocation2 + $0x50] sm:$0xff]  ;;  %v307_v56 = vadd.f32 %v588_v39, %v284_v50  ;;  %v282_v58 = vld [vmem:[#allocation2] sm:$0xff]  ;;  %269 = vst.msk [vmem:[#allocation2 + $0x30] sm:$0xff] %vm19_vm0, %v252_v44  ;;  %277 = vst.msk [vmem:[#allocation2 + $0x70] sm:$0xff] %vm19_vm0, %v260_v45  ;;  %v253_v60 = vadd.f32 %v478_v54, %v43_v42  ;;  %v261_v61 = vadd.f32 %v486_v55, %v51_v43  ;;  %v202_v62 = vpop.f32.mrb[7].mxu0  ;;  %v234_v63 = vpop.f32.mrb[7].mxu1 }
  0xe9   :  { %v315_v57 = vadd.f32 %v588_v39, %v292_v51  ;;  %v290_v59 = vld [vmem:[#allocation2 + $0x40] sm:$0xff]  ;;  %v305_v0 = vadd.f32 %v588_v39, %v282_v58  ;;  %v285_v2 = vld [vmem:[#allocation2 + $0x18] sm:$0xff]  ;;  %267 = vst.msk [vmem:[#allocation2 + $0x20] sm:$0xff] %vm19_vm0, %v250_v52  ;;  %275 = vst.msk [vmem:[#allocation2 + $0x60] sm:$0xff] %vm19_vm0, %v258_v53  ;;  %v251_v4 = vadd.f32 %v202_v62, %v41_v48 }
  0xea   :  { %v313_v1 = vadd.f32 %v588_v39, %v290_v59  ;;  %v293_v3 = vld [vmem:[#allocation2 + $0x58] sm:$0xff]  ;;  %v259_v5 = vadd.f32 %v234_v63, %v49_v49  ;;  %v443_v6 = vpack.c.bf16 %v307_v56, %v307_v56  ;;  %v308_v8 = vadd.f32 %v588_v39, %v285_v2  ;;  %v283_v10 = vld [vmem:[#allocation2 + $0x8] sm:$0xff]  ;;  %270 = vst.msk [vmem:[#allocation2 + $0x38] sm:$0xff] %vm19_vm0, %v253_v60 }
  0xeb   :  { %v451_v7 = vpack.c.bf16 %v315_v57, %v315_v57  ;;  %v316_v9 = vadd.f32 %v588_v39, %v293_v3  ;;  %v291_v11 = vld [vmem:[#allocation2 + $0x48] sm:$0xff]  ;;  %278 = vst.msk [vmem:[#allocation2 + $0x78] sm:$0xff] %vm19_vm0, %v261_v61  ;;  %v441_v12 = vpack.c.bf16 %v305_v0, %v305_v0  ;;  %v306_v14 = vadd.f32 %v588_v39, %v283_v10 }
  0xec   :  { %v449_v13 = vpack.c.bf16 %v313_v1, %v313_v1  ;;  %v314_v15 = vadd.f32 %v588_v39, %v291_v11  ;;  %268 = vst.msk [vmem:[#allocation2 + $0x28] sm:$0xff] %vm19_vm0, %v251_v4  ;;  %276 = vst.msk [vmem:[#allocation2 + $0x68] sm:$0xff] %vm19_vm0, %v259_v5  ;;  %v444_v16 = vpack.c.bf16 %v308_v8, %v308_v8 }
  0xed   :  { %388 = vst.msk [vmem:[%s681_s3 + $0x8] sm:$0xf] %vm385_vm2, %v443_v6  ;;  %396 = vst.msk [vmem:[%s681_s3 + $0x28] sm:$0xf] %vm385_vm2, %v451_v7  ;;  %v452_v17 = vpack.c.bf16 %v316_v9, %v316_v9  ;;  %v442_v18 = vpack.c.bf16 %v306_v14, %v306_v14 }
  0xee   :  { %386 = vst.msk [vmem:[%s681_s3] sm:$0xf] %vm385_vm2, %v441_v12  ;;  %394 = vst.msk [vmem:[%s681_s3 + $0x20] sm:$0xf] %vm385_vm2, %v449_v13  ;;  %v450_v19 = vpack.c.bf16 %v314_v15, %v314_v15 }
  0xef   :  { %389 = vst.msk [vmem:[%s681_s3 + $0xc] sm:$0xf] %vm385_vm2, %v444_v16  ;;  %397 = vst.msk [vmem:[%s681_s3 + $0x2c] sm:$0xf] %vm385_vm2, %v452_v17  ;;  %v288_v20 = vld [vmem:[#allocation2 + $0x30] sm:$0xff] }
  0xf0   :  { %387 = vst.msk [vmem:[%s681_s3 + $0x4] sm:$0xf] %vm385_vm2, %v442_v18  ;;  %395 = vst.msk [vmem:[%s681_s3 + $0x24] sm:$0xf] %vm385_vm2, %v450_v19  ;;  %v296_v21 = vld [vmem:[#allocation2 + $0x70] sm:$0xff]  ;;  %v311_v22 = vadd.f32 %v588_v39, %v288_v20  ;;  %v286_v24 = vld [vmem:[#allocation2 + $0x20] sm:$0xff] }
  0xf1   :  { %v319_v23 = vadd.f32 %v588_v39, %v296_v21  ;;  %v294_v25 = vld [vmem:[#allocation2 + $0x60] sm:$0xff]  ;;  %v309_v26 = vadd.f32 %v588_v39, %v286_v24  ;;  %v289_v28 = vld [vmem:[#allocation2 + $0x38] sm:$0xff] }
  0xf2   :  { %v317_v27 = vadd.f32 %v588_v39, %v294_v25  ;;  %v297_v29 = vld [vmem:[#allocation2 + $0x78] sm:$0xff]  ;;  %v447_v30 = vpack.c.bf16 %v311_v22, %v311_v22  ;;  %v312_v32 = vadd.f32 %v588_v39, %v289_v28 }
  0xf3   :  { %v455_v31 = vpack.c.bf16 %v319_v23, %v319_v23  ;;  %v320_v33 = vadd.f32 %v588_v39, %v297_v29  ;;  %v287_v34 = vld [vmem:[#allocation2 + $0x28] sm:$0xff]  ;;  %v445_v36 = vpack.c.bf16 %v309_v26, %v309_v26 }
  0xf4   :  { %v295_v35 = vld [vmem:[#allocation2 + $0x68] sm:$0xff]  ;;  %v453_v37 = vpack.c.bf16 %v317_v27, %v317_v27  ;;  %v310_v38 = vadd.f32 %v588_v39, %v287_v34  ;;  %392 = vst.msk [vmem:[%s681_s3 + $0x18] sm:$0xf] %vm385_vm2, %v447_v30  ;;  %v448_v41 = vpack.c.bf16 %v312_v32, %v312_v32 }
  0xf5   :  { %v318_v40 = vadd.f32 %v588_v39, %v295_v35  ;;  %400 = vst.msk [vmem:[%s681_s3 + $0x38] sm:$0xf] %vm385_vm2, %v455_v31  ;;  %v456_v42 = vpack.c.bf16 %v320_v33, %v320_v33  ;;  %390 = vst.msk [vmem:[%s681_s3 + $0x10] sm:$0xf] %vm385_vm2, %v445_v36 }
  0xf6   :  { %398 = vst.msk [vmem:[%s681_s3 + $0x30] sm:$0xf] %vm385_vm2, %v453_v37  ;;  %v446_v39 = vpack.c.bf16 %v310_v38, %v310_v38  ;;  %393 = vst.msk [vmem:[%s681_s3 + $0x1c] sm:$0xf] %vm385_vm2, %v448_v41 }
  0xf7   :  { %v454_v43 = vpack.c.bf16 %v318_v40, %v318_v40  ;;  %401 = vst.msk [vmem:[%s681_s3 + $0x3c] sm:$0xf] %vm385_vm2, %v456_v42 }
  0xf8   :  { %391 = vst.msk [vmem:[%s681_s3 + $0x14] sm:$0xf] %vm385_vm2, %v446_v39 }
  0xf9   :  { %399 = vst.msk [vmem:[%s681_s3 + $0x34] sm:$0xf] %vm385_vm2, %v454_v43 }

// kernel: unet_with_attention_3d.21
= control target key start
LH: loop header
LB: loop body
LE: loop exit
PB: predicated region body
PF: predicated region fallthrough
CT: control target
= control target key end

     0   :  { %v1188_v1 = vmov 0   ;;  %s1467_s1 = inlined_call_operand.vmem [shape: bf16[1024,128], index: 1, kind: input, shape index: {}]   ;;  %s1468_s0 = inlined_call_operand.vmem [shape: bf16[32,1024], index: 0, kind: input, shape index: {}]   ;;  %s1469_s2 = inlined_call_operand.vmem [shape: f32[32,1], index: 2, kind: input, shape index: {}]   ;;  %s1470_s3 = inlined_call_operand.vmem [shape: bf16[32,128], index: 3, kind: output, shape index: {}]  }
   0x1   :  { %v1124_v0 = vld [vmem:[%s1467_s1 + $0x40] sm:$0xff]   ;;  %1122 = vset.pattern.permute.xlu0 %v1188_v1  ;;  %1123 = vset.pattern.permute.xlu1 %v1188_v1  ;;  %v1128_v5 = vld [vmem:[%s1467_s1 + $0x48] sm:$0xff]   ;;  %v1132_v9 = vld [vmem:[%s1467_s1 + $0x50] sm:$0xff]  }
   0x2   :  { %v1125_v2 = vld [vmem:[%s1467_s1 + $0xc0] sm:$0xff]   ;;  %1009 = vmatprep.subr.bf16.mxu0 %v1124_v0  ;;  %v1129_v6 = vld [vmem:[%s1467_s1 + $0xc8] sm:$0xff]   ;;  %v1133_v10 = vld [vmem:[%s1467_s1 + $0xd0] sm:$0xff]  }
   0x3   :  { %v1126_v3 = vld [vmem:[%s1467_s1] sm:$0xff]   ;;  %1037 = vmatprep.subr.bf16.mxu1 %v1125_v2  ;;  %v1130_v7 = vld [vmem:[%s1467_s1 + $0x8] sm:$0xff]   ;;  %v1134_v11 = vld [vmem:[%s1467_s1 + $0x10] sm:$0xff]  }
   0x4   :  { %v1127_v4 = vld [vmem:[%s1467_s1 + $0x80] sm:$0xff]   ;;  %1010 = vmatpush3.bf16.msra.mxu0 %v1126_v3  ;;  %v1131_v8 = vld [vmem:[%s1467_s1 + $0x88] sm:$0xff]   ;;  %v1135_v12 = vld [vmem:[%s1467_s1 + $0x90] sm:$0xff]  }
   0x5   :  { %1038 = vmatpush3.bf16.msra.mxu1 %v1127_v4  ;;  %1011 = vmatprep.subr.bf16.mxu0 %v1128_v5  ;;  %v1136_v13 = vld [vmem:[%s1467_s1 + $0x58] sm:$0xff]   ;;  %v1140_v17 = vld [vmem:[%s1467_s1 + $0x60] sm:$0xff]   ;;  %v1144_v21 = vld [vmem:[%s1467_s1 + $0x68] sm:$0xff]  }
   0x6   :  { %1039 = vmatprep.subr.bf16.mxu1 %v1129_v6  ;;  %v1137_v14 = vld [vmem:[%s1467_s1 + $0xd8] sm:$0xff]   ;;  %v1141_v18 = vld [vmem:[%s1467_s1 + $0xe0] sm:$0xff]   ;;  %v1145_v22 = vld [vmem:[%s1467_s1 + $0xe8] sm:$0xff]  }
   0x7   :  { %v1138_v15 = vld [vmem:[%s1467_s1 + $0x18] sm:$0xff]   ;;  %v1142_v19 = vld [vmem:[%s1467_s1 + $0x20] sm:$0xff]   ;;  %v1146_v23 = vld [vmem:[%s1467_s1 + $0x28] sm:$0xff]  }
   0x8   :  { %1012 = vmatpush3.bf16.msra.mxu0 %v1130_v7  ;;  %v1139_v16 = vld [vmem:[%s1467_s1 + $0x98] sm:$0xff]   ;;  %v1143_v20 = vld [vmem:[%s1467_s1 + $0xa0] sm:$0xff]   ;;  %v1147_v24 = vld [vmem:[%s1467_s1 + $0xa8] sm:$0xff]  }
   0x9   :  { %1040 = vmatpush3.bf16.msra.mxu1 %v1131_v8  ;;  %1013 = vmatprep.subr.bf16.mxu0 %v1132_v9  ;;  %v1148_v25 = vld [vmem:[%s1467_s1 + $0x70] sm:$0xff]   ;;  %v1152_v29 = vld [vmem:[%s1467_s1 + $0x78] sm:$0xff]   ;;  %v27_v33 = vld [vmem:[%s1468_s0] sm:$0xff] }
   0xa   :  { %1041 = vmatprep.subr.bf16.mxu1 %v1133_v10  ;;  %v1149_v26 = vld [vmem:[%s1467_s1 + $0xf0] sm:$0xff]   ;;  %v1153_v30 = vld [vmem:[%s1467_s1 + $0xf8] sm:$0xff]   ;;  %v31_v34 = vld [vmem:[%s1468_s0 + $0x20] sm:$0xff] }
   0xb   :  { %v1150_v27 = vld [vmem:[%s1467_s1 + $0x30] sm:$0xff]   ;;  %v1154_v31 = vld [vmem:[%s1467_s1 + $0x38] sm:$0xff]   ;;  %v28_v35 = vld [vmem:[%s1468_s0 + $0x8] sm:$0xff]  ;;  %v910_v36 = vcombine.low %v27_v33, %v31_v34  ;;  %v911_v37 = vcombine.high %v27_v33, %v31_v34 }
   0xc   :  { %1014 = vmatpush3.bf16.msra.mxu0 %v1134_v11  ;;  %v1151_v28 = vld [vmem:[%s1467_s1 + $0xb0] sm:$0xff]   ;;  %v1155_v32 = vld [vmem:[%s1467_s1 + $0xb8] sm:$0xff]   ;;  %v32_v38 = vld [vmem:[%s1468_s0 + $0x28] sm:$0xff] }
   0xd   :  { %1042 = vmatpush3.bf16.msra.mxu1 %v1135_v12  ;;  %1015 = vmatprep.subr.bf16.mxu0 %v1136_v13  ;;  %v912_v39 = vcombine.low %v28_v35, %v32_v38  ;;  %v913_v40 = vcombine.high %v28_v35, %v32_v38  ;;  %v1156_v41 = vld [vmem:[%s1467_s1 + $0x140] sm:$0xff]   ;;  %v1160_v45 = vld [vmem:[%s1467_s1 + $0x148] sm:$0xff]   ;;  %v1164_v49 = vld [vmem:[%s1467_s1 + $0x150] sm:$0xff]  }
   0xe   :  { %1043 = vmatprep.subr.bf16.mxu1 %v1137_v14  ;;  %667 = vmatprep.mubr.bf16.mxu0 %v911_v37  ;;  %v1157_v42 = vld [vmem:[%s1467_s1 + $0x1c0] sm:$0xff]   ;;  %v1161_v46 = vld [vmem:[%s1467_s1 + $0x1c8] sm:$0xff]   ;;  %v1165_v50 = vld [vmem:[%s1467_s1 + $0x1d0] sm:$0xff]  }
   0xf   :  { %716 = vmatprep.mubr.bf16.mxu1 %v913_v40  ;;  %v1158_v43 = vld [vmem:[%s1467_s1 + $0x100] sm:$0xff]   ;;  %v1162_v47 = vld [vmem:[%s1467_s1 + $0x108] sm:$0xff]   ;;  %v1166_v51 = vld [vmem:[%s1467_s1 + $0x110] sm:$0xff]  }
  0x10   :  { %1016 = vmatpush3.bf16.msra.mxu0 %v1138_v15  ;;  %v1159_v44 = vld [vmem:[%s1467_s1 + $0x180] sm:$0xff]   ;;  %v1163_v48 = vld [vmem:[%s1467_s1 + $0x188] sm:$0xff]   ;;  %v1167_v52 = vld [vmem:[%s1467_s1 + $0x190] sm:$0xff]  }
  0x11   :  { %1044 = vmatpush3.bf16.msra.mxu1 %v1139_v16  ;;  %1017 = vmatprep.subr.bf16.mxu0 %v1140_v17  ;;  %v1168_v53 = vld [vmem:[%s1467_s1 + $0x158] sm:$0xff]   ;;  %v1172_v57 = vld [vmem:[%s1467_s1 + $0x160] sm:$0xff]   ;;  %v36_v0 = vld [vmem:[%s1468_s0 + $0x48] sm:$0xff] }
  0x12   :  { %1045 = vmatprep.subr.bf16.mxu1 %v1141_v18  ;;  %v1169_v54 = vld [vmem:[%s1467_s1 + $0x1d8] sm:$0xff]   ;;  %v1173_v58 = vld [vmem:[%s1467_s1 + $0x1e0] sm:$0xff]   ;;  %v40_v1 = vld [vmem:[%s1468_s0 + $0x68] sm:$0xff] }
  0x13   :  { %v1170_v55 = vld [vmem:[%s1467_s1 + $0x118] sm:$0xff]   ;;  %v1174_v59 = vld [vmem:[%s1467_s1 + $0x120] sm:$0xff]   ;;  %v921_v3 = vcombine.high %v36_v0, %v40_v1  ;;  %v1176_v4 = vld [vmem:[%s1467_s1 + $0x168] sm:$0xff]   ;;  %v920_v5 = vcombine.low %v36_v0, %v40_v1 }
  0x14   :  { %1018 = vmatpush3.bf16.msra.mxu0 %v1142_v19  ;;  %v1171_v56 = vld [vmem:[%s1467_s1 + $0x198] sm:$0xff]   ;;  %v1175_v60 = vld [vmem:[%s1467_s1 + $0x1a0] sm:$0xff]   ;;  %v1177_v6 = vld [vmem:[%s1467_s1 + $0x1e8] sm:$0xff]  }
  0x15   :  { %1046 = vmatpush3.bf16.msra.mxu1 %v1143_v20  ;;  %1019 = vmatprep.subr.bf16.mxu0 %v1144_v21  ;;  %v35_v61 = vld [vmem:[%s1468_s0 + $0x40] sm:$0xff]  ;;  %v1178_v7 = vld [vmem:[%s1467_s1 + $0x128] sm:$0xff]   ;;  %v1180_v9 = vld [vmem:[%s1467_s1 + $0x170] sm:$0xff]  }
  0x16   :  { %1047 = vmatprep.subr.bf16.mxu1 %v1145_v22  ;;  %v39_v62 = vld [vmem:[%s1468_s0 + $0x60] sm:$0xff]  ;;  %v1179_v8 = vld [vmem:[%s1467_s1 + $0x1a8] sm:$0xff]   ;;  %v1181_v10 = vld [vmem:[%s1467_s1 + $0x1f0] sm:$0xff]  }
  0x17   :  { %v919_v63 = vcombine.high %v35_v61, %v39_v62  ;;  %v918_v2 = vcombine.low %v35_v61, %v39_v62  ;;  %v1182_v11 = vld [vmem:[%s1467_s1 + $0x130] sm:$0xff]   ;;  %v1184_v13 = vld [vmem:[%s1467_s1 + $0x178] sm:$0xff]   ;;  %v847_v33 = vld [vmem:[%s1469_s2 + $0x8] sm:$0xff] }
  0x18   :  { %1020 = vmatpush3.bf16.msra.mxu0 %v1146_v23  ;;  %v1183_v12 = vld [vmem:[%s1467_s1 + $0x1b0] sm:$0xff]   ;;  %v1185_v14 = vld [vmem:[%s1467_s1 + $0x1f8] sm:$0xff]  }
  0x19   :  { %1048 = vmatpush3.bf16.msra.mxu1 %v1147_v24  ;;  %1021 = vmatprep.subr.bf16.mxu0 %v1148_v25  ;;  %v1186_v15 = vld [vmem:[%s1467_s1 + $0x138] sm:$0xff]   ;;  %v29_v17 = vld [vmem:[%s1468_s0 + $0x10] sm:$0xff] }
  0x1a   :  { %1049 = vmatprep.subr.bf16.mxu1 %v1149_v26  ;;  %v1187_v16 = vld [vmem:[%s1467_s1 + $0x1b8] sm:$0xff]   ;;  %v33_v18 = vld [vmem:[%s1468_s0 + $0x30] sm:$0xff] }
  0x1b   :  { %v30_v19 = vld [vmem:[%s1468_s0 + $0x18] sm:$0xff]  ;;  %v914_v21 = vcombine.low %v29_v17, %v33_v18  ;;  %v915_v22 = vcombine.high %v29_v17, %v33_v18  ;;  %v37_v25 = vld [vmem:[%s1468_s0 + $0x50] sm:$0xff] }
  0x1c   :  { %1022 = vmatpush3.bf16.msra.mxu0 %v1150_v27  ;;  %v34_v20 = vld [vmem:[%s1468_s0 + $0x38] sm:$0xff]  ;;  %v41_v26 = vld [vmem:[%s1468_s0 + $0x70] sm:$0xff] }
  0x1d   :  { %1050 = vmatpush3.bf16.msra.mxu1 %v1151_v28  ;;  %1023 = vmatprep.subr.bf16.mxu0 %v1152_v29  ;;  %v916_v23 = vcombine.low %v30_v19, %v34_v20  ;;  %v917_v24 = vcombine.high %v30_v19, %v34_v20  ;;  %v38_v27 = vld [vmem:[%s1468_s0 + $0x58] sm:$0xff]  ;;  %v923_v28 = vcombine.high %v37_v25, %v41_v26 }
  0x1e   :  { %1051 = vmatprep.subr.bf16.mxu1 %v1153_v30  ;;  %v42_v29 = vld [vmem:[%s1468_s0 + $0x78] sm:$0xff]  ;;  %v922_v35 = vcombine.low %v37_v25, %v41_v26 }
  0x1f   :  { %v925_v30 = vcombine.high %v38_v27, %v42_v29  ;;  %v849_v34 = vld [vmem:[%s1469_s2 + $0x18] sm:$0xff] }
  0x20   :  { %1024 = vmatpush3.bf16.msra.mxu0 %v1154_v31  ;;  %v846_v31 = vld [vmem:[%s1469_s2] sm:$0xff] }
  0x21   :  { %1052 = vmatpush3.bf16.msra.mxu1 %v1155_v32  ;;  %1065 = vmatprep.subr.bf16.mxu0 %v1156_v41  ;;  %v848_v32 = vld [vmem:[%s1469_s2 + $0x10] sm:$0xff] }
  0x22   :  { %1093 = vmatprep.subr.bf16.mxu1 %v1157_v42  ;;  %852 = vperm.xlu0 %1122, %v846_v31  }
  0x23   :  { %668 = vmatmul.mubr.bf16.vlgmr.msra.gmra.mrb[0].mxu0 %v910_v36  ;;  %862 = vperm.xlu1 %1123, %v848_v32   ;;  %v924_v36 = vcombine.low %v38_v27, %v42_v29 }
  0x24   :  { %717 = vmatmul.mubr.bf16.vlgmr.msra.gmra.mrb[0].mxu1 %v912_v39  ;;  %1066 = vmatpush3.bf16.msra.mxu0 %v1158_v43 }
  0x25   :  { %1094 = vmatpush3.bf16.msra.mxu1 %v1159_v44  ;;  %1067 = vmatprep.subr.bf16.mxu0 %v1160_v45 }
  0x26   :  { %1095 = vmatprep.subr.bf16.mxu1 %v1161_v46  ;;  %675 = vmatprep.mubr.bf16.mxu0 %v919_v63 }
  0x27   :  { %724 = vmatprep.mubr.bf16.mxu1 %v921_v3  ;;  %857 = vperm.xlu0 %1122, %v847_v33  }
  0x28   :  { %1068 = vmatpush3.bf16.msra.mxu0 %v1162_v47  ;;  %867 = vperm.xlu1 %1123, %v849_v34  }
  0x29   :  { %1096 = vmatpush3.bf16.msra.mxu1 %v1163_v48  ;;  %1069 = vmatprep.subr.bf16.mxu0 %v1164_v49 }
  0x2a   :  { %1097 = vmatprep.subr.bf16.mxu1 %v1165_v50 }
  0x2b   :  { %676 = vmatmul.mubr.bf16.gmra.mrb[4].mxu0 %v918_v2 }
  0x2c   :  { %1070 = vmatpush3.bf16.msra.mxu0 %v1166_v51  ;;  %725 = vmatmul.mubr.bf16.gmra.mrb[4].mxu1 %v920_v5 }
  0x2d   :  { %1098 = vmatpush3.bf16.msra.mxu1 %v1167_v52  ;;  %1071 = vmatprep.subr.bf16.mxu0 %v1168_v53 }
  0x2e   :  { %1099 = vmatprep.subr.bf16.mxu1 %v1169_v54  ;;  %765 = vmatprep.mubr.bf16.mxu0 %v915_v22 }
  0x2f   :  { %814 = vmatprep.mubr.bf16.mxu1 %v917_v24 }
  0x30   :  { %1072 = vmatpush3.bf16.msra.mxu0 %v1170_v55 }
  0x31   :  { %1100 = vmatpush3.bf16.msra.mxu1 %v1171_v56  ;;  %1073 = vmatprep.subr.bf16.mxu0 %v1172_v57 }
  0x32   :  { %1101 = vmatprep.subr.bf16.mxu1 %v1173_v58 }
  0x34   :  { %1074 = vmatpush3.bf16.msra.mxu0 %v1174_v59 }
  0x35   :  { %1102 = vmatpush3.bf16.msra.mxu1 %v1175_v60  ;;  %1075 = vmatprep.subr.bf16.mxu0 %v1176_v4 }
  0x36   :  { %1103 = vmatprep.subr.bf16.mxu1 %v1177_v6 }
  0x38   :  { %1076 = vmatpush3.bf16.msra.mxu0 %v1178_v7 }
  0x39   :  { %1104 = vmatpush3.bf16.msra.mxu1 %v1179_v8  ;;  %1077 = vmatprep.subr.bf16.mxu0 %v1180_v9 }
  0x3a   :  { %1105 = vmatprep.subr.bf16.mxu1 %v1181_v10 }
  0x3c   :  { %1078 = vmatpush3.bf16.msra.mxu0 %v1182_v11 }
  0x3d   :  { %1106 = vmatpush3.bf16.msra.mxu1 %v1183_v12  ;;  %1079 = vmatprep.subr.bf16.mxu0 %v1184_v13 }
  0x3e   :  { %1107 = vmatprep.subr.bf16.mxu1 %v1185_v14 }
  0x40   :  { %1080 = vmatpush3.bf16.msra.mxu0 %v1186_v15 }
  0x41   :  { %1108 = vmatpush3.bf16.msra.mxu1 %v1187_v16 }
  0x43   :  { %766 = vmatmul.mubr.bf16.vlgmr.msra.gmra.mrb[8].mxu0 %v914_v21 }
  0x44   :  { %815 = vmatmul.mubr.bf16.vlgmr.msra.gmra.mrb[8].mxu1 %v916_v23  ;;  %773 = vmatprep.mubr.bf16.mxu0 %v923_v28 }
  0x45   :  { %822 = vmatprep.mubr.bf16.mxu1 %v925_v30 }
  0x4b   :  { %774 = vmatmul.mubr.bf16.gmra.mrb[12].mxu0 %v922_v35 }
  0x4c   :  { %823 = vmatmul.mubr.bf16.gmra.mrb[12].mxu1 %v924_v36 }
  0xa1   :  { %v853_v1 = vpop.permute.xlu0 %852 }
  0xa2   :  { %v863_v32 = vpop.permute.xlu1 %862 }
  0xa6   :  { %v858_v17 = vpop.permute.xlu0 %857 }
  0xf6   :  { %v1025_v37 = vpop.f32.mrb[0].mxu0 }
  0xf7   :  { %v1053_v38 = vpop.f32.mrb[0].mxu1  ;;  %v1026_v39 = vpop.f32.mrb[1].mxu0 }
  0xf8   :  { %v1027_v40 = vadd.f32 %v1026_v39, %v1025_v37  ;;  %v1054_v41 = vpop.f32.mrb[1].mxu1  ;;  %v1028_v42 = vpop.f32.mrb[2].mxu0 }
  0xf9   :  { %v1055_v43 = vadd.f32 %v1054_v41, %v1053_v38  ;;  %v1056_v44 = vpop.f32.mrb[2].mxu1  ;;  %v1029_v45 = vpop.f32.mrb[3].mxu0 }
  0xfa   :  { %v1030_v46 = vadd.f32 %v1029_v45, %v1028_v42  ;;  %v1057_v47 = vpop.f32.mrb[3].mxu1 }
  0xfb   :  { %v719_v48 = vadd.f32 %v1055_v43, %v1027_v40  ;;  %v1058_v49 = vadd.f32 %v1057_v47, %v1056_v44  ;;  %v868_v44 = vpop.permute.xlu1 %867 }
  0xfd   :  { %v722_v50 = vadd.f32 %v1058_v49, %v1030_v46 }
  0xfe   :  { %v1031_v51 = vpop.f32.mrb[4].mxu0 }
  0xff   :  { %v1059_v52 = vpop.f32.mrb[4].mxu1  ;;  %v1032_v53 = vpop.f32.mrb[5].mxu0 }
 0x100   :  { %v1033_v54 = vadd.f32 %v1032_v53, %v1031_v51  ;;  %v1060_v55 = vpop.f32.mrb[5].mxu1  ;;  %v1034_v56 = vpop.f32.mrb[6].mxu0 }
 0x101   :  { %v1061_v57 = vadd.f32 %v1060_v55, %v1059_v52  ;;  %v1062_v58 = vpop.f32.mrb[6].mxu1  ;;  %v1035_v59 = vpop.f32.mrb[7].mxu0 }
 0x102   :  { %v1036_v60 = vadd.f32 %v1035_v59, %v1034_v56  ;;  %v1063_v61 = vpop.f32.mrb[7].mxu1 }
 0x103   :  { %v727_v62 = vadd.f32 %v1061_v57, %v1033_v54  ;;  %v1064_v63 = vadd.f32 %v1063_v61, %v1062_v58 }
 0x105   :  { %v730_v0 = vadd.f32 %v1064_v63, %v1036_v60 }
 0x116   :  { %v1081_v2 = vpop.f32.mrb[8].mxu0 }
 0x117   :  { %v1109_v3 = vpop.f32.mrb[8].mxu1  ;;  %v1082_v4 = vpop.f32.mrb[9].mxu0 }
 0x118   :  { %v1110_v5 = vpop.f32.mrb[9].mxu1  ;;  %v1083_v6 = vadd.f32 %v1082_v4, %v1081_v2  ;;  %v1084_v8 = vpop.f32.mrb[10].mxu0 }
 0x119   :  { %v1111_v7 = vadd.f32 %v1110_v5, %v1109_v3  ;;  %v1112_v9 = vpop.f32.mrb[10].mxu1  ;;  %v1085_v10 = vpop.f32.mrb[11].mxu0 }
 0x11a   :  { %v1113_v11 = vpop.f32.mrb[11].mxu1  ;;  %v768_v12 = vadd.f32 %v1083_v6, %v719_v48  ;;  %v1086_v13 = vadd.f32 %v1085_v10, %v1084_v8 }
 0x11b   :  { %v1114_v14 = vadd.f32 %v1113_v11, %v1112_v9 }
 0x11c   :  { %v771_v15 = vadd.f32 %v1086_v13, %v722_v50  ;;  %v817_v16 = vadd.f32 %v1111_v7, %v768_v12 }
 0x11e   :  { %v870_v18 = vadd.f32 %v853_v1, %v817_v16  ;;  %v1087_v19 = vpop.f32.mrb[12].mxu0  ;;  %v820_v21 = vadd.f32 %v1114_v14, %v771_v15 }
 0x11f   :  { %v1115_v20 = vpop.f32.mrb[12].mxu1  ;;  %v1088_v22 = vpop.f32.mrb[13].mxu0 }
 0x120   :  { %v1116_v23 = vpop.f32.mrb[13].mxu1  ;;  %v878_v24 = vmul.f32 0.2, %v870_v18  ;;  %v871_v25 = vadd.f32 %v858_v17, %v820_v21  ;;  %v1089_v26 = vadd.f32 %v1088_v22, %v1087_v19  ;;  %v1090_v27 = vpop.f32.mrb[14].mxu0  ;;  %vm874_vm0 = vcmp.ge.f32.partialorder %v870_v18, 0.0 }
 0x121   :  { %v1118_v28 = vpop.f32.mrb[14].mxu1  ;;  %v1117_v29 = vadd.f32 %v1116_v23, %v1115_v20  ;;  %v1091_v30 = vpop.f32.mrb[15].mxu0 }
 0x122   :  { %v1119_v31 = vpop.f32.mrb[15].mxu1  ;;  %vm875_vm1 = vcmp.ge.f32.partialorder %v871_v25, 0.0  ;;  %v879_v33 = vmul.f32 0.2, %v871_v25  ;;  %v776_v34 = vadd.f32 %v1089_v26, %v727_v62  ;;  %v1092_v35 = vadd.f32 %v1091_v30, %v1090_v27 }
 0x123   :  { %v1120_v36 = vadd.f32 %v1119_v31, %v1118_v28  ;;  %v882_v37 = vsel %vm874_vm0, %v870_v18, %v878_v24 }
 0x124   :  { %v883_v38 = vsel %vm875_vm1, %v871_v25, %v879_v33  ;;  %v825_v39 = vadd.f32 %v1117_v29, %v776_v34  ;;  %v779_v41 = vadd.f32 %v1092_v35, %v730_v0 }
 0x125   :  { %v1001_v40 = vpack.c.bf16 %v883_v38, %v882_v37 }
 0x126   :  { %v872_v42 = vadd.f32 %v863_v32, %v825_v39  ;;  %v828_v43 = vadd.f32 %v1120_v36, %v779_v41 }
 0x127   :  { %1002 = vst [vmem:[%s1470_s3] sm:$0xff] %v1001_v40  }
 0x128   :  { %v880_v45 = vmul.f32 0.2, %v872_v42  ;;  %v873_v46 = vadd.f32 %v868_v44, %v828_v43  ;;  %vm876_vm2 = vcmp.ge.f32.partialorder %v872_v42, 0.0 }
 0x12a   :  { %vm877_vm3 = vcmp.ge.f32.partialorder %v873_v46, 0.0  ;;  %v881_v47 = vmul.f32 0.2, %v873_v46  ;;  %v884_v48 = vsel %vm876_vm2, %v872_v42, %v880_v45 }
 0x12c   :  { %v885_v49 = vsel %vm877_vm3, %v873_v46, %v881_v47 }
 0x12d   :  { %v1006_v50 = vpack.c.bf16 %v885_v49, %v884_v48 }
 0x12f   :  { %1008 = vst [vmem:[%s1470_s3 + $0x8] sm:$0xff] %v1006_v50  }

// kernel: unet_with_attention_3d.23
= control target key start
LH: loop header
LB: loop body
LE: loop exit
PB: predicated region body
PF: predicated region fallthrough
CT: control target
= control target key end

     0   :  { %s1399_s15 = smov 0   ;;  %s1401_s16 = smov 0   ;;  %s1689_s0 = inlined_call_operand.vmem [shape: bf16[2,64,32], index: 0, kind: input, shape index: {}]   ;;  %s1690_s1 = inlined_call_operand.vmem [shape: bf16[2,64,4], index: 1, kind: input, shape index: {}]   ;;  %s1691_s2 = inlined_call_operand.vmem [shape: bf16[2,4,64], index: 2, kind: input, shape index: {}]   ;;  %s1692_s3 = inlined_call_operand.vmem [shape: bf16[2,64,32], index: 3, kind: input, shape index: {}]   ;;  %s1693_s4 = inlined_call_operand.vmem [shape: bf16[2,64,32], index: 4, kind: output, shape index: {}]  }
   0x1   :  { %s1403_s17 = smov 0  }
   0x2 LB: > { %s33_s18 = sadd.s32 1, %s1365_s16  ;;  %p1155_p0 = scmp.ge.s32.totalorder %s1369_s17, 1  ;;  %s1369_s17 = sphi %s1403_s17, %s14_s17   ;;  %s1365_s16 = sphi %s1401_s16, %s1695_s16   ;;  %s1361_s15 = sphi %s1399_s15, %s1694_s15  }
   0x3   : > { %p35_p1 = scmp.ge.s32.totalorder %s33_s18, 2  ;;  %p238_p2 = scmp.lt.s32.totalorder %s1369_s17, 3 }
   0x5   : > { %s1697_s18 = smov (%p35_p1, %s33_s18), 0  ;;  %p239_p3 = pnand %p1155_p0, %p238_p2 }
   0x6   : > { %p298_p4 = scmp.lt.s32.totalorder (!%p239_p3), %s1361_s15, 1  ;;  %vm417_vm0 = vcmask (!%p239_p3), 1041408   ;;  %vm404_vm1 = vcmask (!%p239_p3), 31744   ;;  %vm349_vm2 = vcmask (!%p239_p3), 7168   ;;  %v1371_v6 = vmov (!%p239_p3), -inf  }
   0x7   : > { %242 = sbr.rel (%p239_p3) target bundleno = 852 (0x354), region = 36  ;;  %352 = vst.msk [vmem:[#allocation2 + $0x10] sm:$0xff] (!%p239_p3), %vm349_vm2, %v1371_v6  ;;  %350 = vst.msk [vmem:[#allocation2] sm:$0xff] (!%p239_p3), %vm349_vm2, %v1371_v6  ;;  %vm494_vm3 = vcmask (!%p239_p3), 523264   ;;  %v1372_v22 = vmov (!%p239_p3), 0   ;;  %v1373_v24 = vmov (!%p239_p3), 0.0  }
   0x8   : > { %351 = vst.msk [vmem:[#allocation2 + $0x8] sm:$0xff] (!%p239_p3), %vm349_vm2, %v1371_v6  ;;  %353 = vst.msk [vmem:[#allocation2 + $0x18] sm:$0xff] (!%p239_p3), %vm349_vm2, %v1371_v6  ;;  %1298 = vset.pattern.permute.xlu1 (!%p239_p3), %v1372_v22  ;;  %1297 = vset.pattern.permute.xlu0 (!%p239_p3), %v1372_v22  ;;  %vm366_vm4 = vcmask (!%p239_p3), 261120   ;;  %vm1001_vm5 = vcmask (!%p239_p3), 257024  }
   0x9   : > { %354 = vst.msk [vmem:[#allocation2 + $0x20] sm:$0xff] (!%p239_p3), %vm349_vm2, %v1371_v6  ;;  %355 = vst.msk [vmem:[#allocation2 + $0x28] sm:$0xff] (!%p239_p3), %vm349_vm2, %v1371_v6 }
   0xa   : > { %356 = vst.msk [vmem:[#allocation2 + $0x30] sm:$0xff] (!%p239_p3), %vm349_vm2, %v1371_v6  ;;  %357 = vst.msk [vmem:[#allocation2 + $0x38] sm:$0xff] (!%p239_p3), %vm349_vm2, %v1371_v6 }
   0xb   : > { %360 = vst.msk [vmem:[#allocation3 + $0x10] sm:$0xff] (!%p239_p3), %vm349_vm2, %v1373_v24  ;;  %358 = vst.msk [vmem:[#allocation3] sm:$0xff] (!%p239_p3), %vm349_vm2, %v1373_v24 }
   0xc   : > { %359 = vst.msk [vmem:[#allocation3 + $0x8] sm:$0xff] (!%p239_p3), %vm349_vm2, %v1373_v24  ;;  %361 = vst.msk [vmem:[#allocation3 + $0x18] sm:$0xff] (!%p239_p3), %vm349_vm2, %v1373_v24 }
   0xd   : > { %362 = vst.msk [vmem:[#allocation3 + $0x20] sm:$0xff] (!%p239_p3), %vm349_vm2, %v1373_v24  ;;  %363 = vst.msk [vmem:[#allocation3 + $0x28] sm:$0xff] (!%p239_p3), %vm349_vm2, %v1373_v24 }
   0xe   : > { %s1699_s15 = smov (!%p298_p4, %s1361_s15), 1  ;;  %364 = vst.msk [vmem:[#allocation3 + $0x30] sm:$0xff] %vm349_vm2, %v1373_v24  ;;  %365 = vst.msk [vmem:[#allocation3 + $0x38] sm:$0xff] %vm349_vm2, %v1373_v24  ;;  %v1488_v25 = vld [vmem:[#allocation2 + $0x10] sm:$0xff]  ;;  %v1495_v30 = vld [vmem:[#allocation2] sm:$0xff] }
   0xf   : > { %s1417_s19 = sshll.u32 %s1699_s15, 5  ;;  %s1160_s20 = sshll.u32 %s1699_s15, 1  ;;  %v1490_v27 = vld [vmem:[#allocation2 + $0x18] sm:$0xff]  ;;  %v1512_v36 = vld [vmem:[#allocation2 + $0x8] sm:$0xff]  ;;  %368 = vst.msk [vmem:[#allocation4 + $0x8] sm:$0xff] %vm366_vm4, %v1373_v24  ;;  %367 = vst.msk [vmem:[#allocation4] sm:$0xff] %vm366_vm4, %v1373_v24 }
  0x10   : > { %s315_s23 = scalar_lea.vmem %s1690_s1, %s1417_s19  ;;  %s323_s26 = scalar_lea.vmem %s1691_s2, %s1160_s20  ;;  %v1520_v38 = vld [vmem:[#allocation2 + $0x20] sm:$0xff]  ;;  %v1535_v45 = vld [vmem:[#allocation2 + $0x28] sm:$0xff]  ;;  %369 = vst.msk [vmem:[#allocation4 + $0x10] sm:$0xff] %vm366_vm4, %v1373_v24  ;;  %370 = vst.msk [vmem:[#allocation4 + $0x18] sm:$0xff] %vm366_vm4, %v1373_v24 }
  0x11   : > { %v1299_v0 = vld [vmem:[%s315_s23] sm:$0xff]   ;;  %v1300_v3 = vld [vmem:[%s315_s23 + $0x8] sm:$0xff]   ;;  %s1430_s29 = scalar_lea.vmem %s1692_s3, %s1417_s19  ;;  %v1301_v4 = vld [vmem:[%s315_s23 + $0x10] sm:$0xff]   ;;  %371 = vst.msk [vmem:[#allocation4 + $0x20] sm:$0xff] %vm366_vm4, %v1373_v24  ;;  %s1652_s6 = scalar_lea.vmem %s1689_s0, %s1417_s19 }
  0x12   : > { %v383_v1 = vld [vmem:[%s323_s26] sm:$0x3]  ;;  %1237 = vmatprep.mubr.msk.bf16.mxu0 %vm404_vm1, %v1299_v0  ;;  %v1302_v5 = vld [vmem:[%s315_s23 + $0x18] sm:$0xff]   ;;  %v1528_v43 = vld [vmem:[#allocation2 + $0x30] sm:$0xff]  ;;  %372 = vst.msk [vmem:[#allocation4 + $0x28] sm:$0xff] %vm366_vm4, %v1373_v24  ;;  %s1660_s9 = scalar_lea.vmem %s1693_s4, %s1417_s19 }
  0x13   : > { %1269 = vmatprep.subr.msk.bf16.mxu0 %vm417_vm0, %v383_v1  ;;  %v419_v2 = vsel %vm417_vm0, %v383_v1, 0  ;;  %v1303_v48 = vld [vmem:[%s1430_s29] sm:$0xff]   ;;  %v1553_v53 = vld [vmem:[#allocation2 + $0x38] sm:$0xff]  ;;  %v1304_v55 = vld [vmem:[%s1430_s29 + $0x8] sm:$0xff]   ;;  %373 = vst.msk [vmem:[#allocation4 + $0x30] sm:$0xff] %vm366_vm4, %v1373_v24 }
  0x14   : > { %1236 = vmatpush3.bf16.msra.mxu0 %v419_v2  ;;  %1261 = vmatprep.subr.bf16.mxu1 %v1303_v48  ;;  %v1305_v58 = vld [vmem:[%s1430_s29 + $0x10] sm:$0xff]   ;;  %v1306_v60 = vld [vmem:[%s1430_s29 + $0x18] sm:$0xff]   ;;  %374 = vst.msk [vmem:[#allocation4 + $0x38] sm:$0xff] %vm366_vm4, %v1373_v24 }
  0x15   : > { %1245 = vmatprep.subr.bf16.mxu0 %v1303_v48  ;;  %1265 = vmatpush3.bf16.msra.mxu1 %v1303_v48 }
  0x16   : > { %1262 = vmatprep.subr.bf16.mxu1 %v1304_v55 }
  0x17   : > { %1238 = vmatmul.mubr.msk.bf16.vlgmr.msra.gmra.mrb[0].mxu0 %vm404_vm1, %v1300_v3 }
  0x18   : > { %1241 = vmatprep.mubr.msk.bf16.mxu0 %vm404_vm1, %v1301_v4  ;;  %1246 = vmatpush3.bf16.msra.mxu0 %v1303_v48 }
  0x19   : > { %1247 = vmatprep.subr.bf16.mxu0 %v1304_v55  ;;  %1266 = vmatpush3.bf16.msra.mxu1 %v1304_v55 }
  0x1a   : > { %1263 = vmatprep.subr.bf16.mxu1 %v1305_v58 }
  0x1c   : > { %1248 = vmatpush3.bf16.msra.mxu0 %v1304_v55 }
  0x1d   : > { %1249 = vmatprep.subr.bf16.mxu0 %v1305_v58  ;;  %1267 = vmatpush3.bf16.msra.mxu1 %v1305_v58 }
  0x1e   : > { %1264 = vmatprep.subr.bf16.mxu1 %v1306_v60 }
  0x1f   : > { %1242 = vmatmul.mubr.msk.bf16.gmra.mrb[4].mxu0 %vm404_vm1, %v1302_v5 }
  0x20   : > { %1250 = vmatpush3.bf16.msra.mxu0 %v1305_v58 }
  0x21   : > { %1251 = vmatprep.subr.bf16.mxu0 %v1306_v60  ;;  %1268 = vmatpush3.bf16.msra.mxu1 %v1306_v60 }
  0x24   : > { %1252 = vmatpush3.bf16.msra.mxu0 %v1306_v60 }
  0xea   : > { %v1440_v7 = vpop.f32.mrb[0].mxu0 }
  0xeb   : > { %v1442_v8 = vpop.f32.mrb[1].mxu0  ;;  %v501_v9 = vsel %vm494_vm3, %v1440_v7, -inf }
  0xec   : > { %502 = vmax.xlane.f32.xlu0 %v501_v9  ;;  %v1446_v10 = vpop.f32.mrb[2].mxu0  ;;  %v495_v13 = vsel %vm494_vm3, %v1442_v8, -inf }
  0xed   : > { %v1448_v11 = vpop.f32.mrb[3].mxu0  ;;  %v504_v12 = vsel %vm494_vm3, %v1446_v10, -inf }
  0xee   : > { %505 = vmax.xlane.f32.xlu1 %v504_v12  ;;  %v498_v16 = vsel %vm494_vm3, %v1448_v11, -inf }
  0xf0   : > { %496 = vmax.xlane.f32.xlu0 %v495_v13 }
  0xf2   : > { %v1454_v14 = vpop.f32.mrb[4].mxu0 }
  0xf3   : > { %v1456_v15 = vpop.f32.mrb[5].mxu0  ;;  %v513_v20 = vsel %vm494_vm3, %v1454_v14, -inf }
  0xf4   : > { %499 = vmax.xlane.f32.xlu0 %v498_v16  ;;  %v507_v17 = vsel %vm494_vm3, %v1456_v15, -inf  ;;  %v1462_v18 = vpop.f32.mrb[6].mxu0 }
  0xf5   : > { %508 = vmax.xlane.f32.xlu1 %v507_v17  ;;  %v1464_v19 = vpop.f32.mrb[7].mxu0  ;;  %v516_v23 = vsel %vm494_vm3, %v1462_v18, -inf }
  0xf6   : > { %v510_v21 = vsel %vm494_vm3, %v1464_v19, -inf }
  0xf8   : > { %514 = vmax.xlane.f32.xlu0 %v513_v20 }
  0xf9   : > { %511 = vmax.xlane.f32.xlu1 %v510_v21 }
  0xfd   : > { %517 = vmax.xlane.f32.xlu1 %v516_v23 }
 0x179   : > { %v503_v26 = vpop.xlane.xlu0 %502 }
 0x17a   : > { %v1493_v28 = vmax.f32 %v1488_v25, %v503_v26 }
 0x17b   : > { %v506_v29 = vpop.xlane.xlu1 %505 }
 0x17c   : > { %v529_v31 = vsub.f32 %v1488_v25, %v1493_v28  ;;  %864 = vst.msk [vmem:[#allocation2 + $0x10] sm:$0xff] %vm349_vm2, %v1493_v28  ;;  %v1502_v32 = vmax.f32 %v1490_v27, %v506_v29  ;;  %563 = vperm.xlu1 %1298, %v1493_v28  }
 0x17d   : > { %v497_v33 = vpop.xlane.xlu0 %496 }
 0x17e   : > { %v530_v34 = vsub.f32 %v1490_v27, %v1502_v32  ;;  %865 = vst.msk [vmem:[#allocation2 + $0x18] sm:$0xff] %vm349_vm2, %v1502_v32  ;;  %v1510_v35 = vmax.f32 %v1495_v30, %v497_v33 }
 0x180   : > { %v527_v37 = vsub.f32 %v1495_v30, %v1510_v35  ;;  %862 = vst.msk [vmem:[#allocation2] sm:$0xff] %vm349_vm2, %v1510_v35  ;;  %553 = vperm.xlu0 %1297, %v1510_v35   ;;  %568 = vperm.xlu1 %1298, %v1502_v32  }
 0x181   : > { %v500_v39 = vpop.xlane.xlu0 %499 }
 0x182   : > { %v1523_v40 = vmax.f32 %v1512_v36, %v500_v39  ;;  %v509_v41 = vpop.xlane.xlu1 %508 }
 0x183   : > { %v1526_v42 = vmax.f32 %v1520_v38, %v509_v41 }
 0x184   : > { %v528_v44 = vsub.f32 %v1512_v36, %v1523_v40  ;;  %863 = vst.msk [vmem:[#allocation2 + $0x8] sm:$0xff] %vm349_vm2, %v1523_v40  ;;  %558 = vperm.xlu1 %1298, %v1523_v40   ;;  %v541_v36 = vmul.f32 1.442695, %v530_v34  ;;  %v617_v40 = vld [vmem:[#allocation3 + $0x10] sm:$0xff] }
 0x185   : > { %v531_v46 = vsub.f32 %v1520_v38, %v1526_v42  ;;  %866 = vst.msk [vmem:[#allocation2 + $0x20] sm:$0xff] %vm349_vm2, %v1526_v42  ;;  %v515_v47 = vpop.xlane.xlu0 %514 }
 0x186   : > { %v1543_v49 = vmax.f32 %v1528_v43, %v515_v47  ;;  %v512_v50 = vpop.xlane.xlu1 %511 }
 0x187   : > { %v1546_v51 = vmax.f32 %v1535_v45, %v512_v50 }
 0x188   : > { %v533_v52 = vsub.f32 %v1528_v43, %v1543_v49  ;;  %868 = vst.msk [vmem:[#allocation2 + $0x30] sm:$0xff] %vm349_vm2, %v1543_v49  ;;  %583 = vperm.xlu1 %1298, %v1543_v49   ;;  %v616_v49 = vld [vmem:[#allocation3 + $0x8] sm:$0xff] }
 0x189   : > { %v532_v54 = vsub.f32 %v1535_v45, %v1546_v51  ;;  %867 = vst.msk [vmem:[#allocation2 + $0x28] sm:$0xff] %vm349_vm2, %v1546_v51 }
 0x18a   : > { %v518_v56 = vpop.xlane.xlu1 %517  ;;  %v547_v25 = vmul.f32 1.442695, %v533_v52 }
 0x18b   : > { %v1561_v57 = vmax.f32 %v1553_v53, %v518_v56  ;;  %v545_v27 = vmul.f32 1.442695, %v532_v54 }
 0x18c   : > { %573 = vperm.xlu1 %1298, %v1526_v42   ;;  %v618_v42 = vld [vmem:[#allocation3 + $0x18] sm:$0xff] }
 0x18d   : > { %v534_v59 = vsub.f32 %v1553_v53, %v1561_v57  ;;  %869 = vst.msk [vmem:[#allocation2 + $0x38] sm:$0xff] %vm349_vm2, %v1561_v57 }
 0x18f   : > { %v549_v30 = vmul.f32 1.442695, %v534_v59 }
 0x190   : > { %578 = vperm.xlu1 %1298, %v1546_v51   ;;  %v615_v51 = vld [vmem:[#allocation3] sm:$0xff] }
 0x194   : > { %588 = vperm.xlu1 %1298, %v1561_v57  }
 0x1fb   : > { %v564_v61 = vpop.permute.xlu1 %563 }
 0x1fc   : > { %v593_v63 = vsub.f32 %v1440_v7, %v564_v61 }
 0x1ff   : > { %v569_v62 = vpop.permute.xlu1 %568  ;;  %v554_v1 = vpop.permute.xlu0 %553 }
 0x200   : > { %v594_v0 = vsub.f32 %v1446_v10, %v569_v62  ;;  %v591_v4 = vsub.f32 %v1442_v8, %v554_v1 }
 0x202   : > { %v600_v2 = vpack.c.bf16 %v594_v0, %v593_v63 }
 0x203   : > { %v559_v3 = vpop.permute.xlu1 %558 }
 0x204   : > { %v607_v5 = vmul.bf16 1069105081, %v600_v2  ;;  %v592_v6 = vsub.f32 %v1448_v11, %v559_v3  ;;  %v537_v2 = vmul.f32 1.442695, %v528_v44  ;;  %v539_v3 = vmul.f32 1.442695, %v529_v31 }
 0x206   : > { %1307 = vpow.bf16 %v607_v5  ;;  %v599_v9 = vpack.c.bf16 %v592_v6, %v591_v4  ;;  %v535_v4 = vmul.f32 1.442695, %v527_v37  ;;  %v543_v5 = vmul.f32 1.442695, %v531_v46 }
 0x207   : > { %v584_v12 = vpop.permute.xlu1 %583 }
 0x208   : > { %v604_v13 = vmul.bf16 1069105081, %v599_v9  ;;  %v597_v8 = vsub.f32 %v1454_v14, %v584_v12 }
 0x20a   : > { %1309 = vpow.bf16 %v604_v13 }
 0x20b   : > { %v574_v16 = vpop.permute.xlu1 %573 }
 0x20c   : > { %v595_v20 = vsub.f32 %v1456_v15, %v574_v16 }
 0x20f   : > { %v579_v17 = vpop.permute.xlu1 %578 }
 0x210   : > { %v596_v7 = vsub.f32 %v1464_v19, %v579_v17  ;;  %v619_v17 = vld [vmem:[#allocation3 + $0x20] sm:$0xff] }
 0x211   : > { %v1308_v10 = vpop.eup %1307 }
 0x212   : > { %v601_v21 = vpack.c.bf16 %v596_v7, %v595_v20  ;;  %v634_v22 = vunpack.c.h.bf16 %v1308_v10  ;;  %v633_v23 = vunpack.c.l.bf16 %v1308_v10  ;;  %v620_v20 = vld [vmem:[#allocation3 + $0x28] sm:$0xff] }
 0x213   : > { %v589_v26 = vpop.permute.xlu1 %588 }
 0x214   : > { %v610_v29 = vmul.bf16 1069105081, %v601_v21  ;;  %v598_v11 = vsub.f32 %v1462_v18, %v589_v26  ;;  %v648_v33 = vsel %vm494_vm3, %v634_v22, 0.0  ;;  %v645_v39 = vsel %vm494_vm3, %v633_v23, 0.0  ;;  %v621_v26 = vld [vmem:[#allocation3 + $0x30] sm:$0xff] }
 0x215   : > { %v1310_v41 = vpop.eup %1309  ;;  %649 = vadd.xlane.f32.xlu1 %v648_v33  ;;  %646 = vadd.xlane.f32.xlu0 %v645_v39 }
 0x216   : > { %1311 = vpow.bf16 %v610_v29  ;;  %v602_v15 = vpack.c.bf16 %v598_v11, %v597_v8  ;;  %1253 = vmatprep.mubr.msk.bf16.mxu0 %vm494_vm3, %v1310_v41  ;;  %v632_v19 = vunpack.c.h.bf16 %v1310_v41  ;;  %v631_v47 = vunpack.c.l.bf16 %v1310_v41  ;;  %v622_v29 = vld [vmem:[#allocation3 + $0x38] sm:$0xff] }
 0x217   : > { %1254 = vmatmul.mubr.msk.bf16.vlgmr.msra.gmra.mrb[8].mxu0 %vm494_vm3, %v1308_v10 }
 0x218   : > { %v613_v14 = vmul.bf16 1069105081, %v602_v15  ;;  %v642_v48 = vsel %vm494_vm3, %v632_v19, 0.0  ;;  %v639_v18 = vsel %vm494_vm3, %v631_v47, 0.0 }
 0x219   : > { %643 = vadd.xlane.f32.xlu0 %v642_v48  ;;  %640 = vadd.xlane.f32.xlu1 %v639_v18 }
 0x21a   : > { %1313 = vpow.bf16 %v613_v14 }
 0x21b   : > { %1315 = vpow2.f32 %v537_v2 }
 0x21c   : > { %1317 = vpow2.f32 %v539_v3 }
 0x21d   : > { %1319 = vpow2.f32 %v535_v4  ;;  %v682_v4 = vld [vmem:[#allocation4 + $0x10] sm:$0xff] }
 0x21e   : > { %1321 = vpow2.f32 %v543_v5 }
 0x21f   : > { %1323 = vpow2.f32 %v541_v36  ;;  %v680_v36 = vld [vmem:[#allocation4] sm:$0xff] }
 0x220   : > { %1325 = vpow2.f32 %v547_v25  ;;  %v683_v25 = vld [vmem:[#allocation4 + $0x18] sm:$0xff] }
 0x221   : > { %v1312_v50 = vpop.eup %1311  ;;  %1327 = vpow2.f32 %v545_v27 }
 0x222   : > { %1257 = vmatprep.mubr.msk.bf16.mxu1 %vm494_vm3, %v1312_v50  ;;  %v636_v55 = vunpack.c.h.bf16 %v1312_v50  ;;  %v635_v56 = vunpack.c.l.bf16 %v1312_v50  ;;  %1329 = vpow2.f32 %v549_v30 }
 0x224   : > { %v654_v58 = vsel %vm494_vm3, %v636_v55, 0.0  ;;  %v651_v60 = vsel %vm494_vm3, %v635_v56, 0.0 }
 0x225   : > { %v1314_v61 = vpop.eup %1313  ;;  %655 = vadd.xlane.f32.xlu1 %v654_v58  ;;  %652 = vadd.xlane.f32.xlu0 %v651_v60 }
 0x226   : > { %1258 = vmatmul.mubr.msk.bf16.vlgmr.msra.gmra.mrb[0].mxu1 %vm494_vm3, %v1314_v61  ;;  %v638_v62 = vunpack.c.h.bf16 %v1314_v61  ;;  %v637_v63 = vunpack.c.l.bf16 %v1314_v61  ;;  %v1316_v28 = vpop.eup %1315 }
 0x227   : > { %v1318_v31 = vpop.eup %1317  ;;  %v624_v54 = vmul.f32 %v1316_v28, %v616_v49  ;;  %v686_v49 = vld [vmem:[#allocation4 + $0x30] sm:$0xff] }
 0x228   : > { %v660_v0 = vsel %vm494_vm3, %v638_v62, 0.0  ;;  %v657_v1 = vsel %vm494_vm3, %v637_v63, 0.0  ;;  %v1320_v24 = vpop.eup %1319  ;;  %v625_v43 = vmul.f32 %v1318_v31, %v617_v40 }
 0x229   : > { %661 = vadd.xlane.f32.xlu1 %v660_v0  ;;  %658 = vadd.xlane.f32.xlu0 %v657_v1  ;;  %v1322_v32 = vpop.eup %1321  ;;  %v623_v57 = vmul.f32 %v1320_v24, %v615_v51 }
 0x22a   : > { %v1324_v34 = vpop.eup %1323  ;;  %v627_v21 = vmul.f32 %v1322_v32, %v619_v17 }
 0x22b   : > { %v1326_v35 = vpop.eup %1325  ;;  %v626_v44 = vmul.f32 %v1324_v34, %v618_v42 }
 0x22c   : > { %v1328_v37 = vpop.eup %1327  ;;  %v629_v39 = vmul.f32 %v1326_v35, %v621_v26 }
 0x22d   : > { %v1330_v38 = vpop.eup %1329  ;;  %v628_v22 = vmul.f32 %v1328_v37, %v620_v20 }
 0x22e   : > { %v630_v41 = vmul.f32 %v1330_v38, %v622_v29 }
 0x23a   : > { %695 = vperm.xlu1 %1298, %v1316_v28   ;;  %v681_v28 = vld [vmem:[#allocation4 + $0x8] sm:$0xff] }
 0x23e   : > { %700 = vperm.xlu1 %1298, %v1318_v31  }
 0x23f   : > { %690 = vperm.xlu0 %1297, %v1320_v24  }
 0x242   : > { %710 = vperm.xlu1 %1298, %v1322_v32  }
 0x243   : > { %705 = vperm.xlu0 %1297, %v1324_v34  }
 0x246   : > { %720 = vperm.xlu1 %1298, %v1326_v35  }
 0x247   : > { %715 = vperm.xlu0 %1297, %v1328_v37  }
 0x24b   : > { %725 = vperm.xlu0 %1297, %v1330_v38  }
 0x2a2   : > { %v647_v45 = vpop.xlane.xlu0 %646  ;;  %v650_v46 = vpop.xlane.xlu1 %649 }
 0x2a3   : > { %v665_v52 = vadd.f32 %v647_v45, %v625_v43  ;;  %v666_v53 = vadd.f32 %v650_v46, %v626_v44 }
 0x2a5   : > { %674 = vst.msk [vmem:[#allocation3 + $0x10] sm:$0xff] %vm349_vm2, %v665_v52  ;;  %675 = vst.msk [vmem:[#allocation3 + $0x18] sm:$0xff] %vm349_vm2, %v666_v53  ;;  %v684_v52 = vld [vmem:[#allocation4 + $0x20] sm:$0xff]  ;;  %v687_v53 = vld [vmem:[#allocation4 + $0x38] sm:$0xff] }
 0x2a6   : > { %v644_v59 = vpop.xlane.xlu0 %643  ;;  %v641_v6 = vpop.xlane.xlu1 %640 }
 0x2a7   : > { %v664_v9 = vadd.f32 %v644_v59, %v624_v54  ;;  %v663_v12 = vadd.f32 %v641_v6, %v623_v57  ;;  %v685_v57 = vld [vmem:[#allocation4 + $0x28] sm:$0xff] }
 0x2a9   : > { %673 = vst.msk [vmem:[#allocation3 + $0x8] sm:$0xff] %vm349_vm2, %v664_v9  ;;  %672 = vst.msk [vmem:[#allocation3] sm:$0xff] %vm349_vm2, %v663_v12 }
 0x2ac   : > { %v875_v13 = vld [vmem:[#allocation3 + $0x10] sm:$0xff]  ;;  %v876_v16 = vld [vmem:[#allocation3 + $0x18] sm:$0xff] }
 0x2ad   : > { %1331 = vrcp.f32 %v875_v13 }
 0x2ae   : > { %1333 = vrcp.f32 %v876_v16 }
 0x2b0   : > { %v874_v7 = vld [vmem:[#allocation3 + $0x8] sm:$0xff]  ;;  %v873_v10 = vld [vmem:[#allocation3] sm:$0xff] }
 0x2b1   : > { %1335 = vrcp.f32 %v874_v7 }
 0x2b2   : > { %v653_v23 = vpop.xlane.xlu0 %652  ;;  %v656_v8 = vpop.xlane.xlu1 %655  ;;  %1337 = vrcp.f32 %v873_v10 }
 0x2b3   : > { %v667_v11 = vadd.f32 %v653_v23, %v627_v21  ;;  %v668_v33 = vadd.f32 %v656_v8, %v628_v22  ;;  %v1219_v23 = vld [vmem:[%s1652_s6 + $0x8] sm:$0xff]  }
 0x2b4   : > { %v1209_v8 = vunpack.c.l.bf16 %v1219_v23  ;;  %v1210_v26 = vunpack.c.h.bf16 %v1219_v23 }
 0x2b5   : > { %676 = vst.msk [vmem:[#allocation3 + $0x20] sm:$0xff] %vm349_vm2, %v667_v11  ;;  %677 = vst.msk [vmem:[#allocation3 + $0x28] sm:$0xff] %vm349_vm2, %v668_v33 }
 0x2b6   : > { %v659_v15 = vpop.xlane.xlu0 %658  ;;  %v662_v19 = vpop.xlane.xlu1 %661 }
 0x2b7   : > { %v1332_v47 = vpop.eup %1331  ;;  %v669_v14 = vadd.f32 %v659_v15, %v629_v39  ;;  %v670_v48 = vadd.f32 %v662_v19, %v630_v41  ;;  %v1204_v15 = vld [vmem:[%s1652_s6] sm:$0xff]  }
 0x2b8   : > { %v1334_v18 = vpop.eup %1333  ;;  %925 = vperm.xlu1 %1298, %v1332_v47  }
 0x2b9   : > { %678 = vst.msk [vmem:[#allocation3 + $0x30] sm:$0xff] %vm349_vm2, %v669_v14  ;;  %679 = vst.msk [vmem:[#allocation3 + $0x38] sm:$0xff] %vm349_vm2, %v670_v48  ;;  %930 = vperm.xlu0 %1297, %v1334_v18   ;;  %v1206_v48 = vunpack.c.h.bf16 %v1204_v15  ;;  %v1205_v18 = vunpack.c.l.bf16 %v1204_v15 }
 0x2ba   : > { %v696_v2 = vpop.permute.xlu1 %695 }
 0x2bb   : > { %v1336_v50 = vpop.eup %1335  ;;  %v729_v37 = vmul.f32 %v696_v2, %v681_v28  ;;  %v1221_v28 = vld [vmem:[%s1652_s6 + $0x18] sm:$0xff]  }
 0x2bc   : > { %v1338_v55 = vpop.eup %1337  ;;  %v877_v56 = vld [vmem:[#allocation3 + $0x20] sm:$0xff]  ;;  %v878_v58 = vld [vmem:[#allocation3 + $0x28] sm:$0xff] }
 0x2bd   : > { %920 = vperm.xlu0 %1297, %v1336_v50   ;;  %915 = vperm.xlu1 %1298, %v1338_v55   ;;  %1339 = vrcp.f32 %v877_v56 }
 0x2be   : > { %1341 = vrcp.f32 %v878_v58  ;;  %v691_v3 = vpop.permute.xlu0 %690  ;;  %v701_v5 = vpop.permute.xlu1 %700 }
 0x2bf   : > { %v730_v30 = vmul.f32 %v701_v5, %v682_v4  ;;  %v728_v31 = vmul.f32 %v691_v3, %v680_v36  ;;  %v1220_v4 = vld [vmem:[%s1652_s6 + $0x10] sm:$0xff]  }
 0x2c0   : > { %v879_v60 = vld [vmem:[#allocation3 + $0x30] sm:$0xff]  ;;  %v880_v61 = vld [vmem:[#allocation3 + $0x38] sm:$0xff]  ;;  %v1213_v5 = vunpack.c.l.bf16 %v1220_v4  ;;  %v1214_v36 = vunpack.c.h.bf16 %v1220_v4 }
 0x2c1   : > { %1343 = vrcp.f32 %v879_v60 }
 0x2c2   : > { %1345 = vrcp.f32 %v880_v61  ;;  %v706_v27 = vpop.permute.xlu0 %705  ;;  %v711_v45 = vpop.permute.xlu1 %710 }
 0x2c3   : > { %v731_v32 = vmul.f32 %v706_v27, %v683_v25  ;;  %v732_v6 = vmul.f32 %v711_v45, %v684_v52 }
 0x2c6   : > { %v716_v46 = vpop.permute.xlu0 %715  ;;  %v721_v51 = vpop.permute.xlu1 %720 }
 0x2c7   : > { %v1340_v62 = vpop.eup %1339  ;;  %v734_v59 = vmul.f32 %v721_v51, %v686_v49  ;;  %v733_v17 = vmul.f32 %v716_v46, %v685_v57 }
 0x2c8   : > { %v1342_v63 = vpop.eup %1341  ;;  %935 = vperm.xlu1 %1298, %v1340_v62  }
 0x2c9   : > { %940 = vperm.xlu0 %1297, %v1342_v63  }
 0x2ca   : > { %v726_v54 = vpop.permute.xlu0 %725 }
 0x2cb   : > { %v1344_v0 = vpop.eup %1343  ;;  %v735_v12 = vmul.f32 %v726_v54, %v687_v53 }
 0x2cc   : > { %v1346_v1 = vpop.eup %1345  ;;  %945 = vperm.xlu1 %1298, %v1344_v0  }
 0x2cd   : > { %950 = vperm.xlu0 %1297, %v1346_v1  }
 0x2ea   : > { %v1255_v24 = vpop.f32.mrb[8].mxu0 }
 0x2eb   : > { %v847_v34 = vadd.f32 %v1255_v24, %v730_v30  ;;  %v814_v35 = vpop.f32.mrb[9].mxu0 }
 0x2ec   : > { %v845_v38 = vadd.f32 %v814_v35, %v728_v31  ;;  %v1256_v40 = vpop.f32.mrb[10].mxu0  ;;  %v1217_v35 = vunpack.c.l.bf16 %v1221_v28 }
 0x2ed   : > { %856 = vst.msk [vmem:[#allocation4 + $0x10] sm:$0xff] %vm366_vm4, %v847_v34  ;;  %v848_v42 = vadd.f32 %v1256_v40, %v731_v32  ;;  %v817_v43 = vpop.f32.mrb[11].mxu0 }
 0x2ee   : > { %854 = vst.msk [vmem:[#allocation4] sm:$0xff] %vm366_vm4, %v845_v38  ;;  %v846_v44 = vadd.f32 %v817_v43, %v729_v37  ;;  %v1218_v38 = vunpack.c.h.bf16 %v1221_v28 }
 0x2ef   : > { %857 = vst.msk [vmem:[#allocation4 + $0x18] sm:$0xff] %vm366_vm4, %v848_v42 }
 0x2f0   : > { %855 = vst.msk [vmem:[#allocation4 + $0x8] sm:$0xff] %vm366_vm4, %v846_v44 }
 0x2f4   : > { %v907_v29 = vld [vmem:[#allocation4 + $0x10] sm:$0xff] }
 0x2f5   : > { %v905_v58 = vld [vmem:[#allocation4] sm:$0xff] }
 0x2f6   : > { %v908_v33 = vld [vmem:[#allocation4 + $0x18] sm:$0xff] }
 0x2f7   : > { %v906_v56 = vld [vmem:[#allocation4 + $0x8] sm:$0xff] }
 0x2f9   : > { %v1259_v9 = vpop.f32.mrb[0].mxu1 }
 0x2fa   : > { %v851_v13 = vadd.f32 %v1259_v9, %v734_v59  ;;  %v830_v16 = vpop.f32.mrb[1].mxu1 }
 0x2fb   : > { %v849_v20 = vadd.f32 %v830_v16, %v732_v6  ;;  %v1260_v7 = vpop.f32.mrb[2].mxu1 }
 0x2fc   : > { %860 = vst.msk [vmem:[#allocation4 + $0x30] sm:$0xff] %vm366_vm4, %v851_v13  ;;  %v852_v10 = vadd.f32 %v1260_v7, %v735_v12  ;;  %v833_v21 = vpop.f32.mrb[3].mxu1 }
 0x2fd   : > { %858 = vst.msk [vmem:[#allocation4 + $0x20] sm:$0xff] %vm366_vm4, %v849_v20  ;;  %v850_v22 = vadd.f32 %v833_v21, %v733_v17 }
 0x2fe   : > { %861 = vst.msk [vmem:[#allocation4 + $0x38] sm:$0xff] %vm366_vm4, %v852_v10 }
 0x2ff   : > { %859 = vst.msk [vmem:[#allocation4 + $0x28] sm:$0xff] %vm366_vm4, %v850_v22 }
 0x303   : > { %v911_v40 = vld [vmem:[#allocation4 + $0x30] sm:$0xff] }
 0x304   : > { %v909_v25 = vld [vmem:[#allocation4 + $0x20] sm:$0xff] }
 0x305   : > { %v912_v44 = vld [vmem:[#allocation4 + $0x38] sm:$0xff] }
 0x306   : > { %v910_v30 = vld [vmem:[#allocation4 + $0x28] sm:$0xff] }
 0x337   : > { %v926_v11 = vpop.permute.xlu1 %925 }
 0x338   : > { %v931_v39 = vpop.permute.xlu0 %930  ;;  %v955_v41 = vmul.f32 %v926_v11, %v907_v29 }
 0x339   : > { %v956_v19 = vmul.f32 %v931_v39, %v908_v33 }
 0x33a   : > { %v963_v47 = vadd.f32 %v1209_v8, %v955_v41 }
 0x33b   : > { %v964_v14 = vadd.f32 %v1210_v26, %v956_v19 }
 0x33c   : > { %v1197_v50 = vpack.c.bf16 %v963_v47, %v963_v47  ;;  %v921_v55 = vpop.permute.xlu0 %920  ;;  %v916_v60 = vpop.permute.xlu1 %915 }
 0x33d   : > { %v1198_v61 = vpack.c.bf16 %v964_v14, %v964_v14  ;;  %v954_v62 = vmul.f32 %v921_v55, %v906_v56  ;;  %v953_v63 = vmul.f32 %v916_v60, %v905_v58 }
 0x33e   : > { %1004 = vst.msk [vmem:[%s1660_s9 + $0x8] sm:$0xf] %vm1001_vm5, %v1197_v50 }
 0x33f   : > { %1005 = vst.msk [vmem:[%s1660_s9 + $0xc] sm:$0xf] %vm1001_vm5, %v1198_v61  ;;  %v962_v0 = vadd.f32 %v1206_v48, %v954_v62  ;;  %v961_v1 = vadd.f32 %v1205_v18, %v953_v63 }
 0x341   : > { %v1196_v2 = vpack.c.bf16 %v962_v0, %v962_v0  ;;  %v1195_v3 = vpack.c.bf16 %v961_v1, %v961_v1 }
 0x343   : > { %1003 = vst.msk [vmem:[%s1660_s9 + $0x4] sm:$0xf] %vm1001_vm5, %v1196_v2  ;;  %1002 = vst.msk [vmem:[%s1660_s9] sm:$0xf] %vm1001_vm5, %v1195_v3 }
 0x347   : > { %v936_v27 = vpop.permute.xlu1 %935 }
 0x348   : > { %v941_v31 = vpop.permute.xlu0 %940  ;;  %v957_v24 = vmul.f32 %v936_v27, %v909_v25 }
 0x349   : > { %v958_v32 = vmul.f32 %v941_v31, %v910_v30 }
 0x34a   : > { %v965_v34 = vadd.f32 %v1213_v5, %v957_v24 }
 0x34b   : > { %v966_v37 = vadd.f32 %v1214_v36, %v958_v32  ;;  %v946_v42 = vpop.permute.xlu1 %945 }
 0x34c   : > { %v1199_v43 = vpack.c.bf16 %v965_v34, %v965_v34  ;;  %v951_v45 = vpop.permute.xlu0 %950  ;;  %v959_v46 = vmul.f32 %v946_v42, %v911_v40 }
 0x34d   : > { %v1200_v49 = vpack.c.bf16 %v966_v37, %v966_v37  ;;  %v960_v51 = vmul.f32 %v951_v45, %v912_v44 }
 0x34e   : > { %1006 = vst.msk [vmem:[%s1660_s9 + $0x10] sm:$0xf] %vm1001_vm5, %v1199_v43  ;;  %v967_v52 = vadd.f32 %v1217_v35, %v959_v46 }
 0x34f   : > { %1007 = vst.msk [vmem:[%s1660_s9 + $0x14] sm:$0xf] %vm1001_vm5, %v1200_v49  ;;  %v968_v53 = vadd.f32 %v1218_v38, %v960_v51 }
 0x350   : > { %v1201_v54 = vpack.c.bf16 %v967_v52, %v967_v52 }
 0x351   : > { %v1202_v57 = vpack.c.bf16 %v968_v53, %v968_v53 }
 0x352   : > { %1008 = vst.msk [vmem:[%s1660_s9 + $0x18] sm:$0xf] %vm1001_vm5, %v1201_v54 }
 0x353   : > { %1009 = vst.msk [vmem:[%s1660_s9 + $0x1c] sm:$0xf] %vm1001_vm5, %v1202_v57 }
 0x354 PF: > { %s14_s17 = sadd.s32 1, %s1369_s17   ;;  %s1694_s15 = smov %s1365_s16 }
 0x355   : > { %p11_p5 = scmp.ge.s32.totalorder %s14_s17, 4   ;;  %s1695_s16 = smov %s1697_s18 }
 0x357   :  { %13 = sbr.rel (!%p11_p5) target bundleno = 2 (0x2), region = 83 }

// kernel: unet_with_attention_3d.24
= control target key start
LH: loop header
LB: loop body
LE: loop exit
PB: predicated region body
PF: predicated region fallthrough
CT: control target
= control target key end

     0   :  { %v313_v1 = vmov 0   ;;  %s397_s1 = inlined_call_operand.vmem [shape: bf16[256,128], index: 1, kind: input, shape index: {}]   ;;  %s398_s0 = inlined_call_operand.vmem [shape: bf16[16,256], index: 0, kind: input, shape index: {}]   ;;  %s399_s2 = inlined_call_operand.vmem [shape: f32[16,1], index: 2, kind: input, shape index: {}]   ;;  %s400_s3 = inlined_call_operand.vmem [shape: bf16[16,128], index: 3, kind: output, shape index: {}]  }
   0x1   :  { %v294_v0 = vld [vmem:[%s397_s1 + $0x40] sm:$0xff]   ;;  %293 = vset.pattern.permute.xlu0 %v313_v1  ;;  %v296_v3 = vld [vmem:[%s397_s1 + $0x48] sm:$0xff]   ;;  %v298_v5 = vld [vmem:[%s397_s1 + $0x50] sm:$0xff]  }
   0x2   :  { %v295_v2 = vld [vmem:[%s397_s1] sm:$0xff]   ;;  %270 = vmatprep.subr.bf16.mxu0 %v294_v0  ;;  %v297_v4 = vld [vmem:[%s397_s1 + $0x8] sm:$0xff]   ;;  %v299_v6 = vld [vmem:[%s397_s1 + $0x10] sm:$0xff]  }
   0x3   :  { %271 = vmatpush3.bf16.msra.mxu0 %v295_v2  ;;  %v300_v7 = vld [vmem:[%s397_s1 + $0x58] sm:$0xff]   ;;  %v302_v9 = vld [vmem:[%s397_s1 + $0x60] sm:$0xff]   ;;  %v304_v11 = vld [vmem:[%s397_s1 + $0x68] sm:$0xff]  }
   0x4   :  { %272 = vmatprep.subr.bf16.mxu0 %v296_v3  ;;  %v301_v8 = vld [vmem:[%s397_s1 + $0x18] sm:$0xff]   ;;  %v303_v10 = vld [vmem:[%s397_s1 + $0x20] sm:$0xff]   ;;  %v305_v14 = vld [vmem:[%s397_s1 + $0x28] sm:$0xff]  }
   0x5   :  { %v312_v12 = vld [vmem:[%s398_s0 + $0x4] ss:$8 sps:$4 sm:$0xff]   ;;  %v306_v16 = vld [vmem:[%s397_s1 + $0x70] sm:$0xff]   ;;  %v308_v18 = vld [vmem:[%s397_s1 + $0x78] sm:$0xff]  }
   0x6   :  { %v213_v13 = vld [vmem:[%s399_s2] sm:$0xff]  ;;  %195 = vmatprep.mubr.bf16.mxu0 %v312_v12  ;;  %v214_v15 = vld [vmem:[%s399_s2 + $0x8] sm:$0xff]  ;;  %v307_v17 = vld [vmem:[%s397_s1 + $0x30] sm:$0xff]  }
   0x7   :  { %273 = vmatpush3.bf16.msra.mxu0 %v297_v4  ;;  %217 = vperm.xlu0 %293, %v213_v13   ;;  %v309_v19 = vld [vmem:[%s397_s1 + $0x38] sm:$0xff]   ;;  %v310_v20 = vld [vmem:[%s398_s0] ss:$8 sps:$4 sm:$0xff]  }
   0x8   :  { %274 = vmatprep.subr.bf16.mxu0 %v298_v5 }
   0xb   :  { %275 = vmatpush3.bf16.msra.mxu0 %v299_v6  ;;  %222 = vperm.xlu0 %293, %v214_v15  }
   0xc   :  { %276 = vmatprep.subr.bf16.mxu0 %v300_v7 }
   0xf   :  { %277 = vmatpush3.bf16.msra.mxu0 %v301_v8 }
  0x10   :  { %278 = vmatprep.subr.bf16.mxu0 %v302_v9 }
  0x13   :  { %279 = vmatpush3.bf16.msra.mxu0 %v303_v10 }
  0x14   :  { %280 = vmatprep.subr.bf16.mxu0 %v304_v11 }
  0x17   :  { %281 = vmatpush3.bf16.msra.mxu0 %v305_v14 }
  0x18   :  { %282 = vmatprep.subr.bf16.mxu0 %v306_v16 }
  0x1b   :  { %283 = vmatpush3.bf16.msra.mxu0 %v307_v17 }
  0x1c   :  { %284 = vmatprep.subr.bf16.mxu0 %v308_v18 }
  0x1f   :  { %285 = vmatpush3.bf16.msra.mxu0 %v309_v19 }
  0x22   :  { %196 = vmatmul.mubr.bf16.vlgmr.msra.gmra.mrb[0].mxu0 %v310_v20 }
  0x86   :  { %v218_v21 = vpop.permute.xlu0 %217 }
  0x8a   :  { %v223_v29 = vpop.permute.xlu0 %222 }
  0xf5   :  { %v286_v22 = vpop.f32.mrb[0].mxu0 }
  0xf6   :  { %v287_v23 = vpop.f32.mrb[1].mxu0 }
  0xf7   :  { %v288_v24 = vadd.f32 %v287_v23, %v286_v22  ;;  %v289_v25 = vpop.f32.mrb[2].mxu0 }
  0xf8   :  { %v290_v26 = vpop.f32.mrb[3].mxu0 }
  0xf9   :  { %v225_v27 = vadd.f32 %v288_v24, %v218_v21  ;;  %v291_v28 = vadd.f32 %v290_v26, %v289_v25 }
  0xfb   :  { %v226_v30 = vadd.f32 %v291_v28, %v223_v29  ;;  %v227_v31 = vmax.f32 %v225_v27, 0.0 }
  0xfd   :  { %v228_v32 = vmax.f32 %v226_v30, 0.0 }
  0xff   :  { %v268_v33 = vpack.c.bf16 %v228_v32, %v227_v31 }
 0x101   :  { %269 = vst [vmem:[%s400_s3] sm:$0xff] %v268_v33  }

// kernel: unet_with_attention_3d.33
= control target key start
LH: loop header
LB: loop body
LE: loop exit
PB: predicated region body
PF: predicated region fallthrough
CT: control target
= control target key end

     0   :  { %s989_s12 = smov 0   ;;  %s991_s13 = smov 0   ;;  %s1168_s0 = inlined_call_operand.vmem [shape: bf16[8,128], index: 0, kind: input, shape index: {}]   ;;  %s1169_s1 = inlined_call_operand.vmem [shape: bf16[128,1024], index: 1, kind: input, shape index: {}]   ;;  %s1170_s2 = inlined_call_operand.vmem [shape: f32[8,1], index: 2, kind: input, shape index: {}]   ;;  %s1171_s3 = inlined_call_operand.vmem [shape: f32[8,1024], index: 3, kind: output, shape index: {}]  }
   0x1   :  { %s993_s14 = smov 0   ;;  %s995_s15 = smov 0  }
   0x2   :  { %s997_s16 = smov 0  }
   0x3 LB: > { %s28_s17 = sadd.s32 1, %s962_s15  ;;  %p76_p1 = scmp.ne.s32.totalorder %s954_s13, %s950_s12  ;;  %s966_s16 = sphi %s997_s16, %s13_s16   ;;  %s962_s15 = sphi %s995_s15, %s1176_s15   ;;  %s958_s14 = sphi %s993_s14, %s1175_s14   ;;  %s954_s13 = sphi %s991_s13, %s1174_s13   ;;  %s950_s12 = sphi %s989_s12, %s1173_s12  }
   0x4   : > { %p30_p0 = scmp.ge.s32.totalorder %s28_s17, 2  ;;  %p77_p2 = scmp.eq.s32.totalorder %s966_s16, 0 }
   0x5   : > { %s69_s19 = sadd.s32 1, %s954_s13  ;;  %p787_p5 = scmp.ge.s32.totalorder %s966_s16, 2 }
   0x6   : > { %s1178_s17 = smov (%p30_p0, %s28_s17), 0  ;;  %p78_p3 = por %p77_p2, %p76_p1 }
   0x7   : > { %s65_s18 = ssub.s32 %s962_s15, %s1178_s17  ;;  %173 = sbr.rel (%p787_p5) target bundleno = 34 (0x22), region = 24 }
   0x8   : > { %p67_p4 = scmp.eq.s32.totalorder %s65_s18, 0 }
   0xa   : > { %s1024_s20 = scalar_select %p67_p4, %s954_s13, %s69_s19  }
   0xe   : > { %176 = sbr.rel (!%p78_p3) target bundleno = 34 (0x22), region = 28  ;;  %s178_s21 = sand.u32 (%p78_p3), 1, %s954_s13  }
   0xf   : > { %s829_s22 = sshll.u32 (%p78_p3), %s962_s15, 4  ;;  %s788_s23 = sshll.u32 (%p78_p3), %s178_s21, 8 }
  0x10   : > { %s1032_s26 = scalar_lea.vmem (%p78_p3), %s1169_s1, %s829_s22  ;;  %s1037_s27 = scalar_lea.vmem (%p78_p3), [#allocation3], %s788_s23 }
  0x11   : > { %v199_v0 = vld [vmem:[%s1032_s26] sm:$0xff] (%p78_p3)  ;;  %v201_v1 = vld [vmem:[%s1032_s26 + $0x8] sm:$0xff] (%p78_p3) }
  0x12   : > { %v203_v2 = vld [vmem:[%s1032_s26 + $0x20] sm:$0xff] (%p78_p3)  ;;  %200 = vst [vmem:[%s1037_s27] sm:$0xff] (%p78_p3), %v199_v0  ;;  %202 = vst [vmem:[%s1037_s27 + $0x8] sm:$0xff] (%p78_p3), %v201_v1  ;;  %v205_v3 = vld [vmem:[%s1032_s26 + $0x28] sm:$0xff] (%p78_p3) }
  0x13   : > { %204 = vst [vmem:[%s1037_s27 + $0x10] sm:$0xff] (%p78_p3), %v203_v2  ;;  %v207_v4 = vld [vmem:[%s1032_s26 + $0x40] sm:$0xff] (%p78_p3)  ;;  %v209_v5 = vld [vmem:[%s1032_s26 + $0x48] sm:$0xff] (%p78_p3)  ;;  %206 = vst [vmem:[%s1037_s27 + $0x18] sm:$0xff] (%p78_p3), %v205_v3 }
  0x14   : > { %208 = vst [vmem:[%s1037_s27 + $0x20] sm:$0xff] (%p78_p3), %v207_v4  ;;  %210 = vst [vmem:[%s1037_s27 + $0x28] sm:$0xff] (%p78_p3), %v209_v5  ;;  %v211_v6 = vld [vmem:[%s1032_s26 + $0x60] sm:$0xff] (%p78_p3)  ;;  %v213_v7 = vld [vmem:[%s1032_s26 + $0x68] sm:$0xff] (%p78_p3) }
  0x15   : > { %v215_v8 = vld [vmem:[%s1032_s26 + $0x80] sm:$0xff]  ;;  %212 = vst [vmem:[%s1037_s27 + $0x30] sm:$0xff] %v211_v6  ;;  %214 = vst [vmem:[%s1037_s27 + $0x38] sm:$0xff] %v213_v7  ;;  %v217_v9 = vld [vmem:[%s1032_s26 + $0x88] sm:$0xff] }
  0x16   : > { %216 = vst [vmem:[%s1037_s27 + $0x40] sm:$0xff] %v215_v8  ;;  %v219_v10 = vld [vmem:[%s1032_s26 + $0xa0] sm:$0xff]  ;;  %v221_v11 = vld [vmem:[%s1032_s26 + $0xa8] sm:$0xff]  ;;  %218 = vst [vmem:[%s1037_s27 + $0x48] sm:$0xff] %v217_v9 }
  0x17   : > { %220 = vst [vmem:[%s1037_s27 + $0x50] sm:$0xff] %v219_v10  ;;  %222 = vst [vmem:[%s1037_s27 + $0x58] sm:$0xff] %v221_v11  ;;  %v223_v12 = vld [vmem:[%s1032_s26 + $0xc0] sm:$0xff]  ;;  %v225_v13 = vld [vmem:[%s1032_s26 + $0xc8] sm:$0xff] }
  0x18   : > { %v227_v14 = vld [vmem:[%s1032_s26 + $0xe0] sm:$0xff]  ;;  %224 = vst [vmem:[%s1037_s27 + $0x60] sm:$0xff] %v223_v12  ;;  %226 = vst [vmem:[%s1037_s27 + $0x68] sm:$0xff] %v225_v13  ;;  %v229_v15 = vld [vmem:[%s1032_s26 + $0xe8] sm:$0xff] }
  0x19   : > { %228 = vst [vmem:[%s1037_s27 + $0x70] sm:$0xff] %v227_v14  ;;  %v231_v16 = vld [vmem:[%s1032_s26 + $0x100] sm:$0xff]  ;;  %v233_v17 = vld [vmem:[%s1032_s26 + $0x108] sm:$0xff]  ;;  %230 = vst [vmem:[%s1037_s27 + $0x78] sm:$0xff] %v229_v15 }
  0x1a   : > { %232 = vst [vmem:[%s1037_s27 + $0x80] sm:$0xff] %v231_v16  ;;  %234 = vst [vmem:[%s1037_s27 + $0x88] sm:$0xff] %v233_v17  ;;  %v235_v18 = vld [vmem:[%s1032_s26 + $0x120] sm:$0xff]  ;;  %v237_v19 = vld [vmem:[%s1032_s26 + $0x128] sm:$0xff] }
  0x1b   : > { %v239_v20 = vld [vmem:[%s1032_s26 + $0x140] sm:$0xff]  ;;  %236 = vst [vmem:[%s1037_s27 + $0x90] sm:$0xff] %v235_v18  ;;  %238 = vst [vmem:[%s1037_s27 + $0x98] sm:$0xff] %v237_v19  ;;  %v241_v21 = vld [vmem:[%s1032_s26 + $0x148] sm:$0xff] }
  0x1c   : > { %240 = vst [vmem:[%s1037_s27 + $0xa0] sm:$0xff] %v239_v20  ;;  %v243_v22 = vld [vmem:[%s1032_s26 + $0x160] sm:$0xff]  ;;  %v245_v23 = vld [vmem:[%s1032_s26 + $0x168] sm:$0xff]  ;;  %242 = vst [vmem:[%s1037_s27 + $0xa8] sm:$0xff] %v241_v21 }
  0x1d   : > { %244 = vst [vmem:[%s1037_s27 + $0xb0] sm:$0xff] %v243_v22  ;;  %246 = vst [vmem:[%s1037_s27 + $0xb8] sm:$0xff] %v245_v23  ;;  %v247_v24 = vld [vmem:[%s1032_s26 + $0x180] sm:$0xff]  ;;  %v249_v25 = vld [vmem:[%s1032_s26 + $0x188] sm:$0xff] }
  0x1e   : > { %v251_v26 = vld [vmem:[%s1032_s26 + $0x1a0] sm:$0xff]  ;;  %248 = vst [vmem:[%s1037_s27 + $0xc0] sm:$0xff] %v247_v24  ;;  %250 = vst [vmem:[%s1037_s27 + $0xc8] sm:$0xff] %v249_v25  ;;  %v253_v27 = vld [vmem:[%s1032_s26 + $0x1a8] sm:$0xff] }
  0x1f   : > { %252 = vst [vmem:[%s1037_s27 + $0xd0] sm:$0xff] %v251_v26  ;;  %v255_v28 = vld [vmem:[%s1032_s26 + $0x1c0] sm:$0xff]  ;;  %v257_v29 = vld [vmem:[%s1032_s26 + $0x1c8] sm:$0xff]  ;;  %254 = vst [vmem:[%s1037_s27 + $0xd8] sm:$0xff] %v253_v27 }
  0x20   : > { %256 = vst [vmem:[%s1037_s27 + $0xe0] sm:$0xff] %v255_v28  ;;  %258 = vst [vmem:[%s1037_s27 + $0xe8] sm:$0xff] %v257_v29  ;;  %v259_v30 = vld [vmem:[%s1032_s26 + $0x1e0] sm:$0xff]  ;;  %v261_v31 = vld [vmem:[%s1032_s26 + $0x1e8] sm:$0xff] }
  0x21   : > { %260 = vst [vmem:[%s1037_s27 + $0xf0] sm:$0xff] %v259_v30  ;;  %262 = vst [vmem:[%s1037_s27 + $0xf8] sm:$0xff] %v261_v31 }
  0x22 PF: > { %p791_p6 = scmp.ge.s32.totalorder %s966_s16, 1  ;;  %p267_p7 = scmp.lt.s32.totalorder %s966_s16, 3 }
  0x24   : > { %p268_p8 = pnand %p791_p6, %p267_p7 }
  0x25   : > { %s274_s28 = sand.u32 (!%p268_p8), 1, %s950_s12   ;;  %v638_v32 = vld [vmem:[%s1170_s2] sm:$0xff] (!%p268_p8)  ;;  %v968_v33 = vmov (!%p268_p8), 0   ;;  %s793_s8 = sshll.u32 (!%p268_p8), %s958_s14, 2 }
  0x26   : > { %271 = sbr.rel (%p268_p8) target bundleno = 302 (0x12e), region = 51  ;;  %s792_s4 = sshll.u32 (!%p268_p8), %s274_s28, 8  ;;  %573 = vmatprep.mubr.bf16.mxu0 (!%p268_p8), %v968_v33  ;;  %614 = vmatprep.mubr.bf16.mxu1 (!%p268_p8), %v968_v33  ;;  %v348_v2 = vld [vmem:[%s1168_s0] sm:$0xf] (!%p268_p8) }
  0x27   : > { %871 = vset.pattern.permute.xlu0 (!%p268_p8), %v968_v33  ;;  %s1106_s5 = scalar_lea.vmem (!%p268_p8), [#allocation3], %s792_s4  ;;  %p1144_p9 = scmp.lt.s32.totalorder (!%p268_p8), %s793_s8, 7 }
  0x28   : > { %v872_v34 = vld [vmem:[%s1106_s5 + $0x4] ss:$16 sps:$4 sm:$0xff] (!%p268_p8)   ;;  %641 = vperm.xlu0 (!%p268_p8), %871, %v638_v32   ;;  %v874_v35 = vld [vmem:[%s1106_s5 + $0xc] ss:$16 sps:$4 sm:$0xff] (!%p268_p8)   ;;  %v876_v36 = vld [vmem:[%s1106_s5] ss:$16 sps:$4 sm:$0xff] (!%p268_p8)  }
  0x29   : > { %541 = vmatprep.subr.bf16.mxu0 (!%p268_p8), %v872_v34  ;;  %v877_v37 = vld [vmem:[%s1106_s5 + $0x8] ss:$16 sps:$4 sm:$0xff] (!%p268_p8)   ;;  %582 = vmatprep.subr.bf16.mxu1 (!%p268_p8), %v874_v35  ;;  %v878_v38 = vld [vmem:[%s1106_s5 + $0x24] ss:$16 sps:$4 sm:$0xff] (!%p268_p8)   ;;  %v880_v39 = vld [vmem:[%s1106_s5 + $0x2c] ss:$16 sps:$4 sm:$0xff] (!%p268_p8)  }
  0x2a   : > { %542 = vmatpush1.bf16.msra.mxu0 (!%p268_p8), %v876_v36  ;;  %583 = vmatpush1.bf16.msra.mxu1 (!%p268_p8), %v877_v37  ;;  %v882_v40 = vld [vmem:[%s1106_s5 + $0x20] ss:$16 sps:$4 sm:$0xff] (!%p268_p8)   ;;  %v883_v41 = vld [vmem:[%s1106_s5 + $0x28] ss:$16 sps:$4 sm:$0xff] (!%p268_p8)   ;;  %v884_v42 = vld [vmem:[%s1106_s5 + $0x44] ss:$16 sps:$4 sm:$0xff] (!%p268_p8)  }
  0x2b   : > { %543 = vmatprep.subr.bf16.mxu0 (!%p268_p8), %v878_v38  ;;  %584 = vmatprep.subr.bf16.mxu1 (!%p268_p8), %v880_v39  ;;  %v886_v43 = vld [vmem:[%s1106_s5 + $0x4c] ss:$16 sps:$4 sm:$0xff] (!%p268_p8)   ;;  %v888_v44 = vld [vmem:[%s1106_s5 + $0x40] ss:$16 sps:$4 sm:$0xff] (!%p268_p8)   ;;  %v889_v45 = vld [vmem:[%s1106_s5 + $0x48] ss:$16 sps:$4 sm:$0xff] (!%p268_p8)  }
  0x2c   : > { %v890_v46 = vld [vmem:[%s1106_s5 + $0x64] ss:$16 sps:$4 sm:$0xff] (!%p268_p8)   ;;  %v892_v47 = vld [vmem:[%s1106_s5 + $0x6c] ss:$16 sps:$4 sm:$0xff] (!%p268_p8)   ;;  %v894_v48 = vld [vmem:[%s1106_s5 + $0x60] ss:$16 sps:$4 sm:$0xff] (!%p268_p8)  }
  0x2d   : > { %v895_v49 = vld [vmem:[%s1106_s5 + $0x68] ss:$16 sps:$4 sm:$0xff]   ;;  %v896_v50 = vld [vmem:[%s1106_s5 + $0x84] ss:$16 sps:$4 sm:$0xff]   ;;  %v898_v51 = vld [vmem:[%s1106_s5 + $0x8c] ss:$16 sps:$4 sm:$0xff]  }
  0x2e   : > { %544 = vmatpush1.bf16.msra.mxu0 %v882_v40  ;;  %585 = vmatpush1.bf16.msra.mxu1 %v883_v41  ;;  %v900_v52 = vld [vmem:[%s1106_s5 + $0x80] ss:$16 sps:$4 sm:$0xff]   ;;  %v901_v53 = vld [vmem:[%s1106_s5 + $0x88] ss:$16 sps:$4 sm:$0xff]   ;;  %v902_v54 = vld [vmem:[%s1106_s5 + $0xa4] ss:$16 sps:$4 sm:$0xff]  }
  0x2f   : > { %545 = vmatprep.subr.bf16.mxu0 %v884_v42  ;;  %586 = vmatprep.subr.bf16.mxu1 %v886_v43  ;;  %v904_v55 = vld [vmem:[%s1106_s5 + $0xac] ss:$16 sps:$4 sm:$0xff]   ;;  %v906_v56 = vld [vmem:[%s1106_s5 + $0xa0] ss:$16 sps:$4 sm:$0xff]   ;;  %v907_v57 = vld [vmem:[%s1106_s5 + $0xa8] ss:$16 sps:$4 sm:$0xff]  }
  0x30   : > { %v908_v58 = vld [vmem:[%s1106_s5 + $0xc4] ss:$16 sps:$4 sm:$0xff]   ;;  %v910_v59 = vld [vmem:[%s1106_s5 + $0xcc] ss:$16 sps:$4 sm:$0xff]   ;;  %v912_v60 = vld [vmem:[%s1106_s5 + $0xc0] ss:$16 sps:$4 sm:$0xff]  }
  0x31   : > { %v913_v61 = vld [vmem:[%s1106_s5 + $0xc8] ss:$16 sps:$4 sm:$0xff]   ;;  %v914_v62 = vld [vmem:[%s1106_s5 + $0xe4] ss:$16 sps:$4 sm:$0xff]   ;;  %v916_v63 = vld [vmem:[%s1106_s5 + $0xec] ss:$16 sps:$4 sm:$0xff]  }
  0x32   : > { %546 = vmatpush1.bf16.msra.mxu0 %v888_v44  ;;  %587 = vmatpush1.bf16.msra.mxu1 %v889_v45  ;;  %v918_v0 = vld [vmem:[%s1106_s5 + $0xe0] ss:$16 sps:$4 sm:$0xff]   ;;  %v919_v1 = vld [vmem:[%s1106_s5 + $0xe8] ss:$16 sps:$4 sm:$0xff]   ;;  %s1180_s8 = smov (!%p1144_p9, %s793_s8), 7 }
  0x33   : > { %547 = vmatprep.subr.bf16.mxu0 %v890_v46  ;;  %588 = vmatprep.subr.bf16.mxu1 %v892_v47  ;;  %s794_s10 = sshll.u32 %s1180_s8, 3 }
  0x34   : > { %s333_s14 = scalar_lea.vmem %s1171_s3, %s794_s10 }
  0x36   : > { %548 = vmatpush1.bf16.msra.mxu0 %v894_v48  ;;  %589 = vmatpush1.bf16.msra.mxu1 %v895_v49 }
  0x37   : > { %549 = vmatprep.subr.bf16.mxu0 %v896_v50  ;;  %590 = vmatprep.subr.bf16.mxu1 %v898_v51 }
  0x3a   : > { %550 = vmatpush1.bf16.msra.mxu0 %v900_v52  ;;  %591 = vmatpush1.bf16.msra.mxu1 %v901_v53 }
  0x3b   : > { %551 = vmatprep.subr.bf16.mxu0 %v902_v54  ;;  %592 = vmatprep.subr.bf16.mxu1 %v904_v55 }
  0x3e   : > { %552 = vmatpush1.bf16.msra.mxu0 %v906_v56  ;;  %593 = vmatpush1.bf16.msra.mxu1 %v907_v57 }
  0x3f   : > { %553 = vmatprep.subr.bf16.mxu0 %v908_v58  ;;  %594 = vmatprep.subr.bf16.mxu1 %v910_v59 }
  0x42   : > { %554 = vmatpush1.bf16.msra.mxu0 %v912_v60  ;;  %595 = vmatpush1.bf16.msra.mxu1 %v913_v61 }
  0x43   : > { %555 = vmatprep.subr.bf16.mxu0 %v914_v62  ;;  %596 = vmatprep.subr.bf16.mxu1 %v916_v63 }
  0x46   : > { %556 = vmatpush1.bf16.msra.mxu0 %v918_v0  ;;  %597 = vmatpush1.bf16.msra.mxu1 %v919_v1 }
  0x49   : > { %574 = vmatmul.mubr.bf16.vlgmr.msra.gmra.mrb[0].mxu0 %v348_v2  ;;  %615 = vmatmul.mubr.bf16.vlgmr.msra.gmra.mrb[0].mxu1 %v348_v2 }
  0xa7   : > { %v642_v3 = vpop.permute.xlu0 %641 }
 0x11c   : > { %v575_v4 = vpop.f32.mrb[0].mxu0  ;;  %v616_v5 = vpop.f32.mrb[0].mxu1 }
 0x11d   : > { %v644_v6 = vadd.f32 %v642_v3, %v575_v4  ;;  %v577_v7 = vpop.f32.mrb[1].mxu0  ;;  %v618_v8 = vpop.f32.mrb[1].mxu1  ;;  %v646_v9 = vadd.f32 %v642_v3, %v616_v5 }
 0x11e   : > { %v645_v10 = vadd.f32 %v642_v3, %v577_v7  ;;  %v579_v11 = vpop.f32.mrb[2].mxu0  ;;  %v620_v12 = vpop.f32.mrb[2].mxu1  ;;  %v647_v13 = vadd.f32 %v642_v3, %v618_v8 }
 0x11f   : > { %920 = vtanh.f32 %v644_v6  ;;  %v580_v14 = vpop.f32.mrb[3].mxu0  ;;  %v621_v15 = vpop.f32.mrb[3].mxu1 }
 0x120   : > { %922 = vtanh.f32 %v645_v10 }
 0x121   : > { %924 = vtanh.f32 %v646_v9 }
 0x122   : > { %926 = vtanh.f32 %v647_v13 }
 0x129   : > { %v921_v16 = vpop.eup %920 }
 0x12a   : > { %652 = vst [vmem:[%s333_s14] sm:$0xff] %v921_v16  ;;  %v923_v17 = vpop.eup %922 }
 0x12b   : > { %v925_v18 = vpop.eup %924  ;;  %653 = vst [vmem:[%s333_s14 + $0x8] sm:$0xff] %v923_v17 }
 0x12c   : > { %v927_v19 = vpop.eup %926  ;;  %654 = vst [vmem:[%s333_s14 + $0x10] sm:$0xff] %v925_v18 }
 0x12d   : > { %655 = vst [vmem:[%s333_s14 + $0x18] sm:$0xff] %v927_v19 }
 0x12e PF: > { %s13_s16 = sadd.s32 1, %s966_s16   ;;  %s1173_s12 = smov %s954_s13 }
 0x12f   : > { %p10_p10 = scmp.ge.s32.totalorder %s13_s16, 4   ;;  %s1174_s13 = smov %s1024_s20 }
 0x130   : > { %s1175_s14 = smov %s962_s15  ;;  %s1176_s15 = smov %s1178_s17 }
 0x131   :  { %12 = sbr.rel (!%p10_p10) target bundleno = 3 (0x3), region = 104 }

</bundles_post_ra>
